<compile_context>
chip_gen: v6e
topology: v6e:2x2x1
jax: 0.10.0
libtpu: 0.0.40
codegen_flags: <defaults>
</compile_context>

<pallas_src>
import functools

import jax
import jax.numpy as jnp
from jax import lax
from jax.experimental import pallas as pl
from jax.experimental.pallas import tpu as pltpu


_DT = {"bf16": jnp.bfloat16, "f32": jnp.float32}


def _dtname(dt):
    return "bf16" if jnp.dtype(dt) == jnp.dtype(jnp.bfloat16) else "f32"


def _round_up(x, m):
    return (x + m - 1) // m * m


def _choose_tile(dim, pref):
    """Pad `dim` to a 128 multiple and pick the largest tile <= pref dividing it."""
    dpad = _round_up(max(dim, 1), 128)
    t = min(pref, dpad)
    while t > 128 and dpad % t != 0:
        t -= 128
    return t, dpad


# ----------------------------------------------------------------------------
# Generic tiled matmul kernel (the conv hot path).
# ----------------------------------------------------------------------------
def _mm_kernel(a_ref, b_ref, bias_ref, o_ref, acc_ref,
               *, trans_a, trans_b, act, slope, out_dt):
    @pl.when(pl.program_id(2) == 0)
    def _():
        acc_ref[...] = jnp.zeros_like(acc_ref)

    # Transposed layouts are expressed through dot_general contraction dims so
    # the MXU consumes the operand as stored (no in-kernel XLU transpose).
    dn = (((0 if trans_a else 1,), (1 if trans_b else 0,)), ((), ()))
    acc_ref[...] += lax.dot_general(a_ref[...], b_ref[...], dn,
                                    preferred_element_type=jnp.float32)

    @pl.when(pl.program_id(2) == pl.num_programs(2) - 1)
    def _():
        r = acc_ref[...] + bias_ref[...]
        if act == "relu":
            r = jnp.maximum(r, 0.0)
        elif act == "leaky":
            r = jnp.where(r > 0, r, slope * r)
        elif act == "tanh":
            r = jnp.tanh(r)
        o_ref[...] = r.astype(out_dt)


def _mm(a, b, bias, *, trans_a, trans_b, act, out_dtype, slope=0.2):
    """out = op_a(a) @ op_b(b) (+bias, +activation) as one tiled Pallas call.

    a stored (K,M) if trans_a else (M,K); b stored (N,K) if trans_b else (K,N).
    Operands may arrive pre-padded along K (weights are padded once at init);
    zero padding keeps the product exact."""
    a = a.astype(jnp.bfloat16)
    b = b.astype(jnp.bfloat16)
    if trans_a:
        Ka, M = a.shape
    else:
        M, Ka = a.shape
    if trans_b:
        N, Kb = b.shape
    else:
        Kb, N = b.shape
    assert Ka == Kb or max(Ka, Kb) == _round_up(min(Ka, Kb), 128), (a.shape, b.shape)
    K = max(Ka, Kb)

    tm, Mp = _choose_tile(M, 512)
    tn, Np = _choose_tile(N, 512)
    tk, Kp = _choose_tile(K, 1024)
    # v7x has two TensorCores sharded over "parallel" grid axes: when N fits a
    # single tile, split M into >= 2 blocks so both cores get work.
    if Np // tn == 1 and Mp // tm < 2 and Mp >= 256:
        t = tm
        while t > 128 and (Mp % t != 0 or Mp // t < 2):
            t -= 128
        tm = t

    def _pad2(x, shape):
        if x.shape == tuple(shape):
            return x
        return jnp.pad(x, [(0, shape[0] - x.shape[0]), (0, shape[1] - x.shape[1])])

    ap = _pad2(a, (Kp, Mp) if trans_a else (Mp, Kp))
    bp = _pad2(b, (Np, Kp) if trans_b else (Kp, Np))
    if bias is None:
        biasp = jnp.zeros((1, Np), jnp.float32)
    elif bias.shape[0] == Np:
        biasp = bias.reshape(1, Np).astype(jnp.float32)
    else:
        biasp = jnp.zeros((1, Np), jnp.float32).at[0, :bias.shape[0]].set(
            bias.astype(jnp.float32))

    if trans_a:
        a_spec = pl.BlockSpec((tk, tm), lambda i, j, k: (k, i))
    else:
        a_spec = pl.BlockSpec((tm, tk), lambda i, j, k: (i, k))
    if trans_b:
        b_spec = pl.BlockSpec((tn, tk), lambda i, j, k: (j, k))
    else:
        b_spec = pl.BlockSpec((tk, tn), lambda i, j, k: (k, j))

    out_dt = _DT[out_dtype]
    grid = (Mp // tm, Np // tn, Kp // tk)
    kernel = functools.partial(_mm_kernel, trans_a=trans_a, trans_b=trans_b,
                               act=act, slope=slope, out_dt=out_dt)
    out = pl.pallas_call(
        kernel,
        out_shape=jax.ShapeDtypeStruct((Mp, Np), out_dt),
        grid=grid,
        in_specs=[a_spec, b_spec, pl.BlockSpec((1, tn), lambda i, j, k: (0, j))],
        out_specs=pl.BlockSpec((tm, tn), lambda i, j, k: (i, j)),
        scratch_shapes=[pltpu.VMEM((tm, tn), jnp.float32)],
        compiler_params=pltpu.CompilerParams(
            dimension_semantics=("parallel", "parallel", "arbitrary"),
            vmem_limit_bytes=32 * 1024 * 1024),
        cost_estimate=pl.CostEstimate(
            flops=2 * Mp * Np * Kp,
            transcendentals=Mp * Np if act == "tanh" else 0,
            bytes_accessed=2 * (Mp * Kp + Kp * Np)
                           + jnp.dtype(out_dt).itemsize * Mp * Np),
    )(ap, bp, biasp)
    if Mp != M or Np != N:
        out = out[:M, :N]
    return out


# ----------------------------------------------------------------------------
# Closed custom_vjp family of Pallas matmuls (supports grad / grad-of-grad).
# ----------------------------------------------------------------------------
def _act_deriv(act, out, slope=0.2):
    if act == "relu":
        return (out > 0).astype(out.dtype)
    if act == "leaky":
        return jnp.where(out > 0, 1.0, slope).astype(out.dtype)
    if act == "tanh":
        return 1.0 - out * out
    return None  # "none"


@functools.partial(jax.custom_vjp, nondiff_argnums=(3, 4))
def matmul_bias_act(a, b, bias, act, out_dtype):
    """(M,K) @ (K,N) + bias with activation fused in the MXU-kernel epilogue."""
    return _mm(a, b, bias, trans_a=False, trans_b=False, act=act, out_dtype=out_dtype)


def _mba_fwd(a, b, bias, act, out_dtype):
    out = _mm(a, b, bias, trans_a=False, trans_b=False, act=act, out_dtype=out_dtype)
    return out, (a, b, out)


def _mba_bwd(act, out_dtype, res, g):
    a, b, out = res
    d = _act_deriv(act, out)
    dpre = g if d is None else g * d
    da = matmul_nt(dpre, b, _dtname(a.dtype))          # dpre @ b.T (no HBM transpose)
    if da.shape[1] != a.shape[1]:                      # weight was K-pre-padded
        da = da[:, :a.shape[1]]
    db = matmul_tn(a, dpre, _dtname(b.dtype))          # a.T @ dpre (tiled over M)
    if db.shape[0] != b.shape[0]:
        db = jnp.pad(db, ((0, b.shape[0] - db.shape[0]), (0, 0)))
    # TODO(synk): fuse dbias into the matmul_tn epilogue (same reduction axis);
    # unused in this forward (no weight grads) so XLA DCEs it anyway.
    dbias = jnp.sum(dpre, axis=0, dtype=jnp.float32)
    return da, db, dbias


matmul_bias_act.defvjp(_mba_fwd, _mba_bwd)


def matmul_nn(a, b, out_dtype):
    return matmul_bias_act(a, b, jnp.zeros((b.shape[-1],), jnp.float32),
                           "none", out_dtype)


@functools.partial(jax.custom_vjp, nondiff_argnums=(2,))
def matmul_nt(a, b, out_dtype):      # a (M,C) , b (K,C) -> a @ b.T  (M,K)
    return _mm(a, b, None, trans_a=False, trans_b=True, act="none", out_dtype=out_dtype)


def _nt_fwd(a, b, out_dtype):
    return _mm(a, b, None, trans_a=False, trans_b=True, act="none",
               out_dtype=out_dtype), (a, b)


def _nt_bwd(out_dtype, res, g):
    a, b = res
    return matmul_nn(g, b, _dtname(a.dtype)), matmul_tn(g, a, _dtname(b.dtype))


matmul_nt.defvjp(_nt_fwd, _nt_bwd)


@functools.partial(jax.custom_vjp, nondiff_argnums=(2,))
def matmul_tn(a, b, out_dtype):      # a (P,Q) , b (P,R) -> a.T @ b  (Q,R)
    return _mm(a, b, None, trans_a=True, trans_b=False, act="none", out_dtype=out_dtype)


def _tn_fwd(a, b, out_dtype):
    return _mm(a, b, None, trans_a=True, trans_b=False, act="none",
               out_dtype=out_dtype), (a, b)


def _tn_bwd(out_dtype, res, g):
    a, b = res
    return matmul_nt(b, g, _dtname(a.dtype)), matmul_nn(a, g, _dtname(b.dtype))


matmul_tn.defvjp(_tn_fwd, _tn_bwd)


# ----------------------------------------------------------------------------
# Hoisted weight preparation (runs once, outside the jitted step).
# ----------------------------------------------------------------------------
def _pad_wmat(wmat, bias):
    K, N = wmat.shape
    Kp, Np = _round_up(K, 128), _round_up(N, 128)
    wmat_p = jnp.zeros((Kp, Np), jnp.bfloat16).at[:K, :N].set(
        wmat.astype(jnp.bfloat16))
    bias_p = jnp.zeros((Np,), jnp.float32).at[:N].set(bias.astype(jnp.float32))
    return wmat_p, bias_p


def _prep_conv(w, b, *, stride, padding, act, out_dtype):
    # w: (Cout, Cin, KH, KW) -- PyTorch Conv2d layout.
    Cout, Cin, KH, KW = w.shape
    wmat = jnp.transpose(w, (2, 3, 1, 0)).reshape(KH * KW * Cin, Cout)
    wmat_p, bias_p = _pad_wmat(wmat, b)
    meta = dict(kind="conv", kh=KH, kw=KW, stride=stride, padding=padding,
                n_out=Cout, act=act, out_dtype=out_dtype)
    return (wmat_p, bias_p), meta


def _prep_convT_s1(w, b, *, padding, act, out_dtype):
    # stride-1 ConvTranspose2d == plain conv with flipped, in/out-swapped
    # weights and padding (K-1-padding).  w: (Cin, Cout, KH, KW).
    Cin, Cout, KH, KW = w.shape
    w_conv = jnp.transpose(jnp.flip(w, axis=(2, 3)), (1, 0, 2, 3))
    return _prep_conv(w_conv, b, stride=1, padding=KH - 1 - padding,
                      act=act, out_dtype=out_dtype)


def _prep_convT_s2_subpixel(w, b, *, act, out_dtype):
    # stride-2 / padding-1 / 4x4 ConvTranspose2d as a sub-pixel decomposition:
    # 4 phase sub-kernels packed along the GEMM N axis of a single 3x3/stride-1
    # conv over the UNdilated input; outputs are interleaved afterwards.
    Cin, Cout, KH, KW = w.shape
    assert KH == 4 and KW == 4
    big = jnp.zeros((3 * 3 * Cin, 4 * Cout), jnp.float32)
    for rh in range(2):
        for rw in range(2):
            p = rh * 2 + rw
            for khp in range(2):
                for kwp in range(2):
                    kh = 3 - rh - 2 * khp
                    kw = 3 - rw - 2 * kwp
                    row = ((khp + rh) * 3 + (kwp + rw)) * Cin
                    big = big.at[row:row + Cin, p * Cout:(p + 1) * Cout].set(
                        w[:, :, kh, kw].astype(jnp.float32))
    big_bias = jnp.tile(b.astype(jnp.float32), 4)
    wmat_p, bias_p = _pad_wmat(big, big_bias)
    meta = dict(kind="subpixel", kh=3, kw=3, stride=1, padding=1,
                n_out=4 * Cout, act=act, out_dtype=out_dtype)
    return (wmat_p, bias_p), meta


# ----------------------------------------------------------------------------
# Conv layer apply: im2col + one Pallas GEMM (+ sub-pixel interleave).
# ----------------------------------------------------------------------------
def _conv_gemm(x, wmat, bias, meta):
    kh, kw = meta["kh"], meta["kw"]
    stride, padding = meta["stride"], meta["padding"]
    B, H, W, Cin = x.shape
    if padding > 0:
        x = jnp.pad(x, ((0, 0), (padding, padding), (padding, padding), (0, 0)))
    Hp, Wp = x.shape[1], x.shape[2]
    oh = (Hp - kh) // stride + 1
    ow = (Wp - kw) // stride + 1
    # TODO(synk): replace the materialized im2col with an in-kernel patch
    # gather (kh/kw grid axes indexing the NHWC activation directly).
    cols = []
    for i in range(kh):
        for j in range(kw):
            cols.append(x[:, i:i + stride * oh:stride, j:j + stride * ow:stride, :])
    patches = jnp.concatenate(cols, axis=-1).reshape(B * oh * ow, kh * kw * Cin)
    out = matmul_bias_act(patches, wmat, bias, meta["act"], meta["out_dtype"])
    n_out = meta["n_out"]
    out = out[:, :n_out].reshape(B, oh, ow, n_out)
    if meta["kind"] == "subpixel":
        c = n_out // 4
        out = out.reshape(B, oh, ow, 2, 2, c)
        out = out.transpose(0, 1, 3, 2, 4, 5).reshape(B, 2 * oh, 2 * ow, c)
    return out


def generator_apply(gen_params, gen_meta, z):
    x = z.reshape(z.shape[0], 1, 1, -1)
    for (wmat, bias), meta in zip(gen_params, gen_meta):
        x = _conv_gemm(x, wmat, bias, meta)
    return x


def discriminator_apply(dis_params, dis_meta, x):
    for (wmat, bias), meta in zip(dis_params, dis_meta):
        x = _conv_gemm(x, wmat, bias, meta)
    return x


# ----------------------------------------------------------------------------
# Parameter init (PyTorch layouts) + one-time prep into GEMM form.
# ----------------------------------------------------------------------------
def init_raw_params(key, dim_g, dim_s, base, n_conv):
    ks = jax.random.split(key, 16)

    def w(k, shape):
        return (0.05 * jax.random.normal(k, shape)).astype(jnp.float32)

    # Generator: ConvT(dim_g, d, 4, 1, 0) -> [up x2]* -> ConvT(d, dim_s, 4, 2, 1)
    d = base * 2 ** (n_conv - 1)
    gen = [(w(ks[0], (dim_g, d, 4, 4)), jnp.zeros((d,), jnp.float32))]
    d_last = d
    for i in range(n_conv - 1):
        d = base * 2 ** (n_conv - 2 - i)
        gen.append((w(ks[1 + i], (d_last, d, 4, 4)), jnp.zeros((d,), jnp.float32)))
        d_last = d
    gen.append((w(ks[5], (d_last, dim_s, 4, 4)), jnp.zeros((dim_s,), jnp.float32)))

    # Discriminator: Conv(dim_s, base, 4, 2, 1) -> [down x2]* -> Conv(d, 1, 4, 1, 0)
    d = base
    dis = [(w(ks[6], (d, dim_s, 4, 4)), jnp.zeros((d,), jnp.float32))]
    d_last = d
    for i in range(n_conv - 1):
        d = d_last * 2
        dis.append((w(ks[7 + i], (d, d_last, 4, 4)), jnp.zeros((d,), jnp.float32)))
        d_last = d
    dis.append((w(ks[12], (1, d_last, 4, 4)), jnp.zeros((1,), jnp.float32)))
    return {"gen": gen, "dis": dis}


def prepare_params(raw):
    gen_p, gen_m = [], []
    w0, b0 = raw["gen"][0]
    p, m = _prep_convT_s1(w0, b0, padding=0, act="relu", out_dtype="bf16")
    gen_p.append(p); gen_m.append(m)
    # TODO(synk): BatchNorm from the reference generator config is omitted
    # (configs.load_config unavailable); ReLU nonlinearity retained.
    for wi, bi in raw["gen"][1:-1]:
        p, m = _prep_convT_s2_subpixel(wi, bi, act="relu", out_dtype="bf16")
        gen_p.append(p); gen_m.append(m)
    wl, bl = raw["gen"][-1]
    p, m = _prep_convT_s2_subpixel(wl, bl, act="tanh", out_dtype="f32")
    gen_p.append(p); gen_m.append(m)

    dis_p, dis_m = [], []
    for wi, bi in raw["dis"][:-1]:
        p, m = _prep_conv(wi, bi, stride=2, padding=1, act="leaky", out_dtype="bf16")
        dis_p.append(p); dis_m.append(m)
    wl, bl = raw["dis"][-1]
    p, m = _prep_conv(wl, bl, stride=1, padding=0, act="none", out_dtype="f32")
    dis_p.append(p); dis_m.append(m)

    params = {"gen": gen_p, "dis": dis_p}
    meta = {"gen": gen_m, "dis": dis_m}
    return params, meta


# ----------------------------------------------------------------------------
# WGAN-GP losses + gradient-penalty reduction (tiled over D) in Pallas.
# ----------------------------------------------------------------------------
def _loss_kernel(jr_ref, jf_ref, g_ref, gen_ref, dis_ref, gp_ref, norm_ref, sq_acc,
                 *, gamma, inv_b):
    @pl.when(pl.program_id(0) == 0)
    def _():
        sq_acc[...] = jnp.zeros_like(sq_acc)

    gblk = g_ref[...]                                               # (B, td)
    sq_acc[...] += jnp.sum(gblk * gblk, axis=1, keepdims=True)      # (B, 1)

    @pl.when(pl.program_id(0) == pl.num_programs(0) - 1)
    def _():
        norms = jnp.sqrt(sq_acc[...] + 1e-12)                       # (B, 1)
        norm_ref[...] = norms
        mean_r = jnp.sum(jr_ref[...], axis=0, keepdims=True) * inv_b
        mean_f = jnp.sum(jf_ref[...], axis=0, keepdims=True) * inv_b
        gp = jnp.sum((norms - 1.0) ** 2, axis=0, keepdims=True) * inv_b
        gen_ref[...] = -mean_f
        gp_ref[...] = gp
        dis_ref[...] = -mean_r + mean_f + gamma * gp


def _wgan_losses_impl(jr, jf, g, gamma):
    B, D = g.shape
    td, Dp = _choose_tile(D, 512)
    gf = g.astype(jnp.float32)
    if Dp != D:
        gf = jnp.pad(gf, ((0, 0), (0, Dp - D)))
    kernel = functools.partial(_loss_kernel, gamma=float(gamma), inv_b=1.0 / B)
    gen_l, dis_l, gp_l, norms = pl.pallas_call(
        kernel,
        out_shape=(jax.ShapeDtypeStruct((1, 1), jnp.float32),
                   jax.ShapeDtypeStruct((1, 1), jnp.float32),
                   jax.ShapeDtypeStruct((1, 1), jnp.float32),
                   jax.ShapeDtypeStruct((B, 1), jnp.float32)),
        grid=(Dp // td,),
        in_specs=[pl.BlockSpec((B, 1), lambda d: (0, 0)),
                  pl.BlockSpec((B, 1), lambda d: (0, 0)),
                  pl.BlockSpec((B, td), lambda d: (0, d))],
        out_specs=(pl.BlockSpec((1, 1), lambda d: (0, 0)),
                   pl.BlockSpec((1, 1), lambda d: (0, 0)),
                   pl.BlockSpec((1, 1), lambda d: (0, 0)),
                   pl.BlockSpec((B, 1), lambda d: (0, 0))),
        scratch_shapes=[pltpu.VMEM((B, 1), jnp.float32)],
        compiler_params=pltpu.CompilerParams(
            dimension_semantics=("arbitrary",),
            vmem_limit_bytes=32 * 1024 * 1024),
    )(jr.astype(jnp.float32), jf.astype(jnp.float32), gf)
    return gen_l[0, 0], dis_l[0, 0], gp_l[0, 0], norms


@functools.partial(jax.custom_vjp, nondiff_argnums=(3,))
def wgan_losses(jr, jf, g, gamma):
    gen_l, dis_l, gp_l, _ = _wgan_losses_impl(jr, jf, g, gamma)
    return gen_l, dis_l, gp_l


def _loss_fwd(jr, jf, g, gamma):
    gen_l, dis_l, gp_l, norms = _wgan_losses_impl(jr, jf, g, gamma)
    return (gen_l, dis_l, gp_l), (g, norms)


def _loss_bwd(gamma, res, cots):
    g, norms = res
    cg, cd, cp = cots
    B = g.shape[0]
    inv_b = 1.0 / B
    djr = (-cd * inv_b) * jnp.ones((B, 1), jnp.float32)
    djf = ((cd - cg) * inv_b) * jnp.ones((B, 1), jnp.float32)
    gp_cot = cd * gamma + cp
    coef = gp_cot * 2.0 * inv_b * (norms - 1.0) / norms     # (B, 1)
    dg = (coef * g).astype(g.dtype)
    return djr, djf, dg


wgan_losses.defvjp(_loss_fwd, _loss_bwd)


# ----------------------------------------------------------------------------
# WGAN_GP.forward (training branch): returns (gen_loss, dis_loss, fake)
# ----------------------------------------------------------------------------
def wgan_gp_forward(params, seed, true, alpha_key, *, meta, gamma=10.0):
    true_nhwc = jnp.transpose(true, (0, 2, 3, 1))
    fake_nhwc = generator_apply(params["gen"], meta["gen"], seed)

    # One batched (2B) discriminator pass for both judge_fake and judge_real.
    B = true.shape[0]
    both = jnp.concatenate([fake_nhwc, true_nhwc], axis=0)
    judge = discriminator_apply(params["dis"], meta["dis"], both)
    judge_fake = judge[:B]
    judge_real = judge[B:]

    # gradient penalty: d/d(interpolates) sum(D(interpolates))
    alpha = jax.random.uniform(alpha_key, (B, 1, 1, 1), dtype=jnp.float32)
    interpolates = alpha * true_nhwc + (1.0 - alpha) * fake_nhwc
    grads = jax.grad(lambda x: jnp.sum(
        discriminator_apply(params["dis"], meta["dis"], x)))(interpolates)

    gen_loss, dis_loss, _gp = wgan_losses(
        judge_real.reshape(B, 1), judge_fake.reshape(B, 1),
        grads.reshape(B, -1), float(gamma))
    fake = jnp.transpose(fake_nhwc, (0, 3, 1, 2))     # back to NCHW at boundary
    return gen_loss, dis_loss, fake


if __name__ == "__main__":
    DIM_G, DIM_S, N_CONV, B = 8, 4, 2, 2     # -> 16x16 images, (B, 4, 16, 16)
    key = jax.random.PRNGKey(0)
    kp, ks, kt, ka = jax.random.split(key, 4)

    raw = init_raw_params(kp, dim_g=DIM_G, dim_s=DIM_S, base=16, n_conv=N_CONV)
    params, meta = prepare_params(raw)       # hoisted weight prep (once)

    seed = jax.random.normal(ks, (B, DIM_G), dtype=jnp.float32)
    true = jax.random.normal(kt, (B, DIM_S, 16, 16), dtype=jnp.float32)

    fwd = jax.jit(functools.partial(wgan_gp_forward, meta=meta, gamma=10.0))
    gen_loss, dis_loss, fake = fwd(params, seed, true, ka)
    jax.block_until_ready((gen_loss, dis_loss, fake))

    assert fake.shape == (B, DIM_S, 16, 16)
    assert gen_loss.shape == () and dis_loss.shape == ()
    print("KERNEL_OK")
</pallas_src>

<mosaic_0001>
module attributes {stable_mosaic.version = 11 : i64} {
  func.func @_mm_kernel(%arg0: i32, %arg1: i32, %arg2: i32, %arg3: memref<128x128xbf16, #tpu.memory_space<vmem>>, %arg4: memref<128x128xbf16, #tpu.memory_space<vmem>>, %arg5: memref<1x128xf32, #tpu.memory_space<vmem>>, %arg6: memref<128x128xbf16, #tpu.memory_space<vmem>>, %arg7: memref<128x128xf32, #tpu.memory_space<vmem>>) attributes {dimension_semantics = [#tpu.dimension_semantics<parallel>, #tpu.dimension_semantics<parallel>, #tpu.dimension_semantics<arbitrary>], iteration_bounds = array<i64: 1, 1, 1>, scalar_prefetch = 0 : i64, scratch_operands = 1 : i64, tpu.core_type = #tpu.core_type<tc>, window_params = [{transform_indices = @transform_0, window_bounds = array<i64: 128, 128>}, {transform_indices = @transform_1, window_bounds = array<i64: 128, 128>}, {transform_indices = @transform_2, window_bounds = array<i64: 1, 128>}, {transform_indices = @transform_3, window_bounds = array<i64: 128, 128>}]} {
    %c0_i32 = arith.constant 0 : i32
    %0 = arith.cmpi eq, %arg2, %c0_i32 : i32
    %1 = arith.extui %0 : i1 to i32
    %c0_i32_0 = arith.constant 0 : i32
    %2 = arith.cmpi ne, %1, %c0_i32_0 : i32
    scf.if %2 {
      %cst_10 = arith.constant 0.000000e+00 : f32
      %12 = vector.broadcast %cst_10 : f32 to vector<128x128xf32>
      %c0_11 = arith.constant 0 : index
      %c0_12 = arith.constant 0 : index
      %13 = vector.load %arg7[%c0_11, %c0_12] : memref<128x128xf32, #tpu.memory_space<vmem>>, vector<128x128xf32>
      tpu.vector_store %arg7[%c0_11, %c0_12], %12 {strides = array<i32>} : memref<128x128xf32, #tpu.memory_space<vmem>>, vector<128x128xf32>,
    } else {
    }
    %c0 = arith.constant 0 : index
    %c0_1 = arith.constant 0 : index
    %3 = vector.load %arg7[%c0, %c0_1] : memref<128x128xf32, #tpu.memory_space<vmem>>, vector<128x128xf32>
    %c0_2 = arith.constant 0 : index
    %c0_3 = arith.constant 0 : index
    %4 = vector.load %arg3[%c0_2, %c0_3] : memref<128x128xbf16, #tpu.memory_space<vmem>>, vector<128x128xbf16>
    %c0_4 = arith.constant 0 : index
    %c0_5 = arith.constant 0 : index
    %5 = vector.load %arg4[%c0_4, %c0_5] : memref<128x128xbf16, #tpu.memory_space<vmem>>, vector<128x128xbf16>
    %cst = arith.constant dense<0.000000e+00> : vector<128x128xf32>
    %6 = tpu.matmul %4, %5, %cst {dimension_numbers = #tpu.dot_dimension_numbers<[1], [0], [0], [1], [0, 0, 1, 1], [], []>} : vector<128x128xbf16>, vector<128x128xbf16>, vector<128x128xf32> -> vector<128x128xf32>
    %7 = arith.addf %3, %6 : vector<128x128xf32>
    %c0_6 = arith.constant 0 : index
    %c0_7 = arith.constant 0 : index
    %8 = vector.load %arg7[%c0_6, %c0_7] : memref<128x128xf32, #tpu.memory_space<vmem>>, vector<128x128xf32>
    tpu.vector_store %arg7[%c0_6, %c0_7], %7 {strides = array<i32>} : memref<128x128xf32, #tpu.memory_space<vmem>>, vector<128x128xf32>,
    %c0_i32_8 = arith.constant 0 : i32
    %9 = arith.cmpi eq, %arg2, %c0_i32_8 : i32
    %10 = arith.extui %9 : i1 to i32
    %c0_i32_9 = arith.constant 0 : i32
    %11 = arith.cmpi ne, %10, %c0_i32_9 : i32
    scf.if %11 {
      %c0_10 = arith.constant 0 : index
      %c0_11 = arith.constant 0 : index
      %12 = vector.load %arg7[%c0_10, %c0_11] : memref<128x128xf32, #tpu.memory_space<vmem>>, vector<128x128xf32>
      %c0_12 = arith.constant 0 : index
      %c0_13 = arith.constant 0 : index
      %13 = vector.load %arg5[%c0_12, %c0_13] : memref<1x128xf32, #tpu.memory_space<vmem>>, vector<1x128xf32>
      %14 = vector.broadcast %13 : vector<1x128xf32> to vector<128x128xf32>
      %15 = arith.addf %12, %14 : vector<128x128xf32>
      %cst_14 = arith.constant 0.000000e+00 : f32
      %16 = vector.broadcast %cst_14 : f32 to vector<128x128xf32>
      %17 = arith.maximumf %15, %16 : vector<128x128xf32>
      %18 = arith.truncf %17 : vector<128x128xf32> to vector<128x128xbf16>
      %c0_15 = arith.constant 0 : index
      %c0_16 = arith.constant 0 : index
      %19 = vector.load %arg6[%c0_15, %c0_16] : memref<128x128xbf16, #tpu.memory_space<vmem>>, vector<128x128xbf16>
      tpu.vector_store %arg6[%c0_15, %c0_16], %18 {strides = array<i32>} : memref<128x128xbf16, #tpu.memory_space<vmem>>, vector<128x128xbf16>,
    } else {
    }
    return
  }
  func.func @transform_0(%arg0: i32, %arg1: i32, %arg2: i32) -> (i32, i32) {
    %c0_i32 = arith.constant 0 : i32
    return %arg0, %arg2 : i32, i32
  }
  func.func @transform_1(%arg0: i32, %arg1: i32, %arg2: i32) -> (i32, i32) {
    %c0_i32 = arith.constant 0 : i32
    return %arg2, %arg1 : i32, i32
  }
  func.func @transform_2(%arg0: i32, %arg1: i32, %arg2: i32) -> (i32, i32) {
    %c0_i32 = arith.constant 0 : i32
    %c0_i32_0 = arith.constant 0 : i32
    return %c0_i32, %arg1 : i32, i32
  }
  func.func @transform_3(%arg0: i32, %arg1: i32, %arg2: i32) -> (i32, i32) {
    %c0_i32 = arith.constant 0 : i32
    return %arg0, %arg1 : i32, i32
  }
}

module attributes {stable_mosaic.version = 11 : i64} {
  func.func @_mm_kernel(%arg0: i32, %arg1: i32, %arg2: i32, %arg3: memref<128x384xbf16, #tpu.memory_space<vmem>>, %arg4: memref<384x128xbf16, #tpu.memory_space<vmem>>, %arg5: memref<1x128xf32, #tpu.memory_space<vmem>>, %arg6: memref<128x128xbf16, #tpu.memory_space<vmem>>, %arg7: memref<128x128xf32, #tpu.memory_space<vmem>>) attributes {dimension_semantics = [#tpu.dimension_semantics<parallel>, #tpu.dimension_semantics<parallel>, #tpu.dimension_semantics<arbitrary>], iteration_bounds = array<i64: 1, 1, 1>, scalar_prefetch = 0 : i64, scratch_operands = 1 : i64, tpu.core_type = #tpu.core_type<tc>, window_params = [{transform_indices = @transform_0, window_bounds = array<i64: 128, 384>}, {transform_indices = @transform_1, window_bounds = array<i64: 384, 128>}, {transform_indices = @transform_2, window_bounds = array<i64: 1, 128>}, {transform_indices = @transform_3, window_bounds = array<i64: 128, 128>}]} {
    %c0_i32 = arith.constant 0 : i32
    %0 = arith.cmpi eq, %arg2, %c0_i32 : i32
    %1 = arith.extui %0 : i1 to i32
    %c0_i32_0 = arith.constant 0 : i32
    %2 = arith.cmpi ne, %1, %c0_i32_0 : i32
    scf.if %2 {
      %cst_10 = arith.constant 0.000000e+00 : f32
      %12 = vector.broadcast %cst_10 : f32 to vector<128x128xf32>
      %c0_11 = arith.constant 0 : index
      %c0_12 = arith.constant 0 : index
      %13 = vector.load %arg7[%c0_11, %c0_12] : memref<128x128xf32, #tpu.memory_space<vmem>>, vector<128x128xf32>
      tpu.vector_store %arg7[%c0_11, %c0_12], %12 {strides = array<i32>} : memref<128x128xf32, #tpu.memory_space<vmem>>, vector<128x128xf32>,
    } else {
    }
    %c0 = arith.constant 0 : index
    %c0_1 = arith.constant 0 : index
    %3 = vector.load %arg7[%c0, %c0_1] : memref<128x128xf32, #tpu.memory_space<vmem>>, vector<128x128xf32>
    %c0_2 = arith.constant 0 : index
    %c0_3 = arith.constant 0 : index
    %4 = vector.load %arg3[%c0_2, %c0_3] : memref<128x384xbf16, #tpu.memory_space<vmem>>, vector<128x384xbf16>
    %c0_4 = arith.constant 0 : index
    %c0_5 = arith.constant 0 : index
    %5 = vector.load %arg4[%c0_4, %c0_5] : memref<384x128xbf16, #tpu.memory_space<vmem>>, vector<384x128xbf16>
    %cst = arith.constant dense<0.000000e+00> : vector<128x128xf32>
    %6 = tpu.matmul %4, %5, %cst {dimension_numbers = #tpu.dot_dimension_numbers<[1], [0], [0], [1], [0, 0, 1, 1], [], []>} : vector<128x384xbf16>, vector<384x128xbf16>, vector<128x128xf32> -> vector<128x128xf32>
    %7 = arith.addf %3, %6 : vector<128x128xf32>
    %c0_6 = arith.constant 0 : index
    %c0_7 = arith.constant 0 : index
    %8 = vector.load %arg7[%c0_6, %c0_7] : memref<128x128xf32, #tpu.memory_space<vmem>>, vector<128x128xf32>
    tpu.vector_store %arg7[%c0_6, %c0_7], %7 {strides = array<i32>} : memref<128x128xf32, #tpu.memory_space<vmem>>, vector<128x128xf32>,
    %c0_i32_8 = arith.constant 0 : i32
    %9 = arith.cmpi eq, %arg2, %c0_i32_8 : i32
    %10 = arith.extui %9 : i1 to i32
    %c0_i32_9 = arith.constant 0 : i32
    %11 = arith.cmpi ne, %10, %c0_i32_9 : i32
    scf.if %11 {
      %c0_10 = arith.constant 0 : index
      %c0_11 = arith.constant 0 : index
      %12 = vector.load %arg7[%c0_10, %c0_11] : memref<128x128xf32, #tpu.memory_space<vmem>>, vector<128x128xf32>
      %c0_12 = arith.constant 0 : index
      %c0_13 = arith.constant 0 : index
      %13 = vector.load %arg5[%c0_12, %c0_13] : memref<1x128xf32, #tpu.memory_space<vmem>>, vector<1x128xf32>
      %14 = vector.broadcast %13 : vector<1x128xf32> to vector<128x128xf32>
      %15 = arith.addf %12, %14 : vector<128x128xf32>
      %cst_14 = arith.constant 0.000000e+00 : f32
      %16 = vector.broadcast %cst_14 : f32 to vector<128x128xf32>
      %17 = arith.maximumf %15, %16 : vector<128x128xf32>
      %18 = arith.truncf %17 : vector<128x128xf32> to vector<128x128xbf16>
      %c0_15 = arith.constant 0 : index
      %c0_16 = arith.constant 0 : index
      %19 = vector.load %arg6[%c0_15, %c0_16] : memref<128x128xbf16, #tpu.memory_space<vmem>>, vector<128x128xbf16>
      tpu.vector_store %arg6[%c0_15, %c0_16], %18 {strides = array<i32>} : memref<128x128xbf16, #tpu.memory_space<vmem>>, vector<128x128xbf16>,
    } else {
    }
    return
  }
  func.func @transform_0(%arg0: i32, %arg1: i32, %arg2: i32) -> (i32, i32) {
    %c0_i32 = arith.constant 0 : i32
    return %arg0, %arg2 : i32, i32
  }
  func.func @transform_1(%arg0: i32, %arg1: i32, %arg2: i32) -> (i32, i32) {
    %c0_i32 = arith.constant 0 : i32
    return %arg2, %arg1 : i32, i32
  }
  func.func @transform_2(%arg0: i32, %arg1: i32, %arg2: i32) -> (i32, i32) {
    %c0_i32 = arith.constant 0 : i32
    %c0_i32_0 = arith.constant 0 : i32
    return %c0_i32, %arg1 : i32, i32
  }
  func.func @transform_3(%arg0: i32, %arg1: i32, %arg2: i32) -> (i32, i32) {
    %c0_i32 = arith.constant 0 : i32
    return %arg0, %arg1 : i32, i32
  }
}

module attributes {stable_mosaic.version = 11 : i64} {
  func.func @_mm_kernel(%arg0: i32, %arg1: i32, %arg2: i32, %arg3: memref<128x256xbf16, #tpu.memory_space<vmem>>, %arg4: memref<256x128xbf16, #tpu.memory_space<vmem>>, %arg5: memref<1x128xf32, #tpu.memory_space<vmem>>, %arg6: memref<128x128xf32, #tpu.memory_space<vmem>>, %arg7: memref<128x128xf32, #tpu.memory_space<vmem>>) attributes {dimension_semantics = [#tpu.dimension_semantics<parallel>, #tpu.dimension_semantics<parallel>, #tpu.dimension_semantics<arbitrary>], iteration_bounds = array<i64: 1, 1, 1>, scalar_prefetch = 0 : i64, scratch_operands = 1 : i64, tpu.core_type = #tpu.core_type<tc>, window_params = [{transform_indices = @transform_0, window_bounds = array<i64: 128, 256>}, {transform_indices = @transform_1, window_bounds = array<i64: 256, 128>}, {transform_indices = @transform_2, window_bounds = array<i64: 1, 128>}, {transform_indices = @transform_3, window_bounds = array<i64: 128, 128>}]} {
    %c0_i32 = arith.constant 0 : i32
    %0 = arith.cmpi eq, %arg2, %c0_i32 : i32
    %1 = arith.extui %0 : i1 to i32
    %c0_i32_0 = arith.constant 0 : i32
    %2 = arith.cmpi ne, %1, %c0_i32_0 : i32
    scf.if %2 {
      %cst_10 = arith.constant 0.000000e+00 : f32
      %12 = vector.broadcast %cst_10 : f32 to vector<128x128xf32>
      %c0_11 = arith.constant 0 : index
      %c0_12 = arith.constant 0 : index
      %13 = vector.load %arg7[%c0_11, %c0_12] : memref<128x128xf32, #tpu.memory_space<vmem>>, vector<128x128xf32>
      tpu.vector_store %arg7[%c0_11, %c0_12], %12 {strides = array<i32>} : memref<128x128xf32, #tpu.memory_space<vmem>>, vector<128x128xf32>,
    } else {
    }
    %c0 = arith.constant 0 : index
    %c0_1 = arith.constant 0 : index
    %3 = vector.load %arg7[%c0, %c0_1] : memref<128x128xf32, #tpu.memory_space<vmem>>, vector<128x128xf32>
    %c0_2 = arith.constant 0 : index
    %c0_3 = arith.constant 0 : index
    %4 = vector.load %arg3[%c0_2, %c0_3] : memref<128x256xbf16, #tpu.memory_space<vmem>>, vector<128x256xbf16>
    %c0_4 = arith.constant 0 : index
    %c0_5 = arith.constant 0 : index
    %5 = vector.load %arg4[%c0_4, %c0_5] : memref<256x128xbf16, #tpu.memory_space<vmem>>, vector<256x128xbf16>
    %cst = arith.constant dense<0.000000e+00> : vector<128x128xf32>
    %6 = tpu.matmul %4, %5, %cst {dimension_numbers = #tpu.dot_dimension_numbers<[1], [0], [0], [1], [0, 0, 1, 1], [], []>} : vector<128x256xbf16>, vector<256x128xbf16>, vector<128x128xf32> -> vector<128x128xf32>
    %7 = arith.addf %3, %6 : vector<128x128xf32>
    %c0_6 = arith.constant 0 : index
    %c0_7 = arith.constant 0 : index
    %8 = vector.load %arg7[%c0_6, %c0_7] : memref<128x128xf32, #tpu.memory_space<vmem>>, vector<128x128xf32>
    tpu.vector_store %arg7[%c0_6, %c0_7], %7 {strides = array<i32>} : memref<128x128xf32, #tpu.memory_space<vmem>>, vector<128x128xf32>,
    %c0_i32_8 = arith.constant 0 : i32
    %9 = arith.cmpi eq, %arg2, %c0_i32_8 : i32
    %10 = arith.extui %9 : i1 to i32
    %c0_i32_9 = arith.constant 0 : i32
    %11 = arith.cmpi ne, %10, %c0_i32_9 : i32
    scf.if %11 {
      %c0_10 = arith.constant 0 : index
      %c0_11 = arith.constant 0 : index
      %12 = vector.load %arg7[%c0_10, %c0_11] : memref<128x128xf32, #tpu.memory_space<vmem>>, vector<128x128xf32>
      %c0_12 = arith.constant 0 : index
      %c0_13 = arith.constant 0 : index
      %13 = vector.load %arg5[%c0_12, %c0_13] : memref<1x128xf32, #tpu.memory_space<vmem>>, vector<1x128xf32>
      %14 = vector.broadcast %13 : vector<1x128xf32> to vector<128x128xf32>
      %15 = arith.addf %12, %14 : vector<128x128xf32>
      %16 = math.tanh %15 : vector<128x128xf32>
      %c0_14 = arith.constant 0 : index
      %c0_15 = arith.constant 0 : index
      %17 = vector.load %arg6[%c0_14, %c0_15] : memref<128x128xf32, #tpu.memory_space<vmem>>, vector<128x128xf32>
      tpu.vector_store %arg6[%c0_14, %c0_15], %16 {strides = array<i32>} : memref<128x128xf32, #tpu.memory_space<vmem>>, vector<128x128xf32>,
    } else {
    }
    return
  }
  func.func @transform_0(%arg0: i32, %arg1: i32, %arg2: i32) -> (i32, i32) {
    %c0_i32 = arith.constant 0 : i32
    return %arg0, %arg2 : i32, i32
  }
  func.func @transform_1(%arg0: i32, %arg1: i32, %arg2: i32) -> (i32, i32) {
    %c0_i32 = arith.constant 0 : i32
    return %arg2, %arg1 : i32, i32
  }
  func.func @transform_2(%arg0: i32, %arg1: i32, %arg2: i32) -> (i32, i32) {
    %c0_i32 = arith.constant 0 : i32
    %c0_i32_0 = arith.constant 0 : i32
    return %c0_i32, %arg1 : i32, i32
  }
  func.func @transform_3(%arg0: i32, %arg1: i32, %arg2: i32) -> (i32, i32) {
    %c0_i32 = arith.constant 0 : i32
    return %arg0, %arg1 : i32, i32
  }
}

module attributes {stable_mosaic.version = 11 : i64} {
  func.func @_mm_kernel(%arg0: i32, %arg1: i32, %arg2: i32, %arg3: memref<128x128xbf16, #tpu.memory_space<vmem>>, %arg4: memref<128x128xbf16, #tpu.memory_space<vmem>>, %arg5: memref<1x128xf32, #tpu.memory_space<vmem>>, %arg6: memref<128x128xbf16, #tpu.memory_space<vmem>>, %arg7: memref<128x128xf32, #tpu.memory_space<vmem>>) attributes {dimension_semantics = [#tpu.dimension_semantics<parallel>, #tpu.dimension_semantics<parallel>, #tpu.dimension_semantics<arbitrary>], iteration_bounds = array<i64: 1, 1, 1>, scalar_prefetch = 0 : i64, scratch_operands = 1 : i64, tpu.core_type = #tpu.core_type<tc>, window_params = [{transform_indices = @transform_0, window_bounds = array<i64: 128, 128>}, {transform_indices = @transform_1, window_bounds = array<i64: 128, 128>}, {transform_indices = @transform_2, window_bounds = array<i64: 1, 128>}, {transform_indices = @transform_3, window_bounds = array<i64: 128, 128>}]} {
    %c0_i32 = arith.constant 0 : i32
    %0 = arith.cmpi eq, %arg2, %c0_i32 : i32
    %1 = arith.extui %0 : i1 to i32
    %c0_i32_0 = arith.constant 0 : i32
    %2 = arith.cmpi ne, %1, %c0_i32_0 : i32
    scf.if %2 {
      %cst_10 = arith.constant 0.000000e+00 : f32
      %12 = vector.broadcast %cst_10 : f32 to vector<128x128xf32>
      %c0_11 = arith.constant 0 : index
      %c0_12 = arith.constant 0 : index
      %13 = vector.load %arg7[%c0_11, %c0_12] : memref<128x128xf32, #tpu.memory_space<vmem>>, vector<128x128xf32>
      tpu.vector_store %arg7[%c0_11, %c0_12], %12 {strides = array<i32>} : memref<128x128xf32, #tpu.memory_space<vmem>>, vector<128x128xf32>,
    } else {
    }
    %c0 = arith.constant 0 : index
    %c0_1 = arith.constant 0 : index
    %3 = vector.load %arg7[%c0, %c0_1] : memref<128x128xf32, #tpu.memory_space<vmem>>, vector<128x128xf32>
    %c0_2 = arith.constant 0 : index
    %c0_3 = arith.constant 0 : index
    %4 = vector.load %arg3[%c0_2, %c0_3] : memref<128x128xbf16, #tpu.memory_space<vmem>>, vector<128x128xbf16>
    %c0_4 = arith.constant 0 : index
    %c0_5 = arith.constant 0 : index
    %5 = vector.load %arg4[%c0_4, %c0_5] : memref<128x128xbf16, #tpu.memory_space<vmem>>, vector<128x128xbf16>
    %cst = arith.constant dense<0.000000e+00> : vector<128x128xf32>
    %6 = tpu.matmul %4, %5, %cst {dimension_numbers = #tpu.dot_dimension_numbers<[1], [0], [0], [1], [0, 0, 1, 1], [], []>} : vector<128x128xbf16>, vector<128x128xbf16>, vector<128x128xf32> -> vector<128x128xf32>
    %7 = arith.addf %3, %6 : vector<128x128xf32>
    %c0_6 = arith.constant 0 : index
    %c0_7 = arith.constant 0 : index
    %8 = vector.load %arg7[%c0_6, %c0_7] : memref<128x128xf32, #tpu.memory_space<vmem>>, vector<128x128xf32>
    tpu.vector_store %arg7[%c0_6, %c0_7], %7 {strides = array<i32>} : memref<128x128xf32, #tpu.memory_space<vmem>>, vector<128x128xf32>,
    %c0_i32_8 = arith.constant 0 : i32
    %9 = arith.cmpi eq, %arg2, %c0_i32_8 : i32
    %10 = arith.extui %9 : i1 to i32
    %c0_i32_9 = arith.constant 0 : i32
    %11 = arith.cmpi ne, %10, %c0_i32_9 : i32
    scf.if %11 {
      %c0_10 = arith.constant 0 : index
      %c0_11 = arith.constant 0 : index
      %12 = vector.load %arg7[%c0_10, %c0_11] : memref<128x128xf32, #tpu.memory_space<vmem>>, vector<128x128xf32>
      %c0_12 = arith.constant 0 : index
      %c0_13 = arith.constant 0 : index
      %13 = vector.load %arg5[%c0_12, %c0_13] : memref<1x128xf32, #tpu.memory_space<vmem>>, vector<1x128xf32>
      %14 = vector.broadcast %13 : vector<1x128xf32> to vector<128x128xf32>
      %15 = arith.addf %12, %14 : vector<128x128xf32>
      %cst_14 = arith.constant 0.000000e+00 : f32
      %16 = vector.broadcast %cst_14 : f32 to vector<128x128xf32>
      %17 = arith.cmpf ogt, %15, %16 : vector<128x128xf32>
      %cst_15 = arith.constant 2.000000e-01 : f32
      %18 = vector.broadcast %cst_15 : f32 to vector<128x128xf32>
      %19 = arith.mulf %18, %15 : vector<128x128xf32>
      %20 = arith.select %17, %15, %19 : vector<128x128xi1>, vector<128x128xf32>
      %21 = arith.truncf %20 : vector<128x128xf32> to vector<128x128xbf16>
      %c0_16 = arith.constant 0 : index
      %c0_17 = arith.constant 0 : index
      %22 = vector.load %arg6[%c0_16, %c0_17] : memref<128x128xbf16, #tpu.memory_space<vmem>>, vector<128x128xbf16>
      tpu.vector_store %arg6[%c0_16, %c0_17], %21 {strides = array<i32>} : memref<128x128xbf16, #tpu.memory_space<vmem>>, vector<128x128xbf16>,
    } else {
    }
    return
  }
  func.func @transform_0(%arg0: i32, %arg1: i32, %arg2: i32) -> (i32, i32) {
    %c0_i32 = arith.constant 0 : i32
    return %arg0, %arg2 : i32, i32
  }
  func.func @transform_1(%arg0: i32, %arg1: i32, %arg2: i32) -> (i32, i32) {
    %c0_i32 = arith.constant 0 : i32
    return %arg2, %arg1 : i32, i32
  }
  func.func @transform_2(%arg0: i32, %arg1: i32, %arg2: i32) -> (i32, i32) {
    %c0_i32 = arith.constant 0 : i32
    %c0_i32_0 = arith.constant 0 : i32
    return %c0_i32, %arg1 : i32, i32
  }
  func.func @transform_3(%arg0: i32, %arg1: i32, %arg2: i32) -> (i32, i32) {
    %c0_i32 = arith.constant 0 : i32
    return %arg0, %arg1 : i32, i32
  }
}

module attributes {stable_mosaic.version = 11 : i64} {
  func.func @_mm_kernel(%arg0: i32, %arg1: i32, %arg2: i32, %arg3: memref<128x256xbf16, #tpu.memory_space<vmem>>, %arg4: memref<256x128xbf16, #tpu.memory_space<vmem>>, %arg5: memref<1x128xf32, #tpu.memory_space<vmem>>, %arg6: memref<128x128xbf16, #tpu.memory_space<vmem>>, %arg7: memref<128x128xf32, #tpu.memory_space<vmem>>) attributes {dimension_semantics = [#tpu.dimension_semantics<parallel>, #tpu.dimension_semantics<parallel>, #tpu.dimension_semantics<arbitrary>], iteration_bounds = array<i64: 1, 1, 1>, scalar_prefetch = 0 : i64, scratch_operands = 1 : i64, tpu.core_type = #tpu.core_type<tc>, window_params = [{transform_indices = @transform_0, window_bounds = array<i64: 128, 256>}, {transform_indices = @transform_1, window_bounds = array<i64: 256, 128>}, {transform_indices = @transform_2, window_bounds = array<i64: 1, 128>}, {transform_indices = @transform_3, window_bounds = array<i64: 128, 128>}]} {
    %c0_i32 = arith.constant 0 : i32
    %0 = arith.cmpi eq, %arg2, %c0_i32 : i32
    %1 = arith.extui %0 : i1 to i32
    %c0_i32_0 = arith.constant 0 : i32
    %2 = arith.cmpi ne, %1, %c0_i32_0 : i32
    scf.if %2 {
      %cst_10 = arith.constant 0.000000e+00 : f32
      %12 = vector.broadcast %cst_10 : f32 to vector<128x128xf32>
      %c0_11 = arith.constant 0 : index
      %c0_12 = arith.constant 0 : index
      %13 = vector.load %arg7[%c0_11, %c0_12] : memref<128x128xf32, #tpu.memory_space<vmem>>, vector<128x128xf32>
      tpu.vector_store %arg7[%c0_11, %c0_12], %12 {strides = array<i32>} : memref<128x128xf32, #tpu.memory_space<vmem>>, vector<128x128xf32>,
    } else {
    }
    %c0 = arith.constant 0 : index
    %c0_1 = arith.constant 0 : index
    %3 = vector.load %arg7[%c0, %c0_1] : memref<128x128xf32, #tpu.memory_space<vmem>>, vector<128x128xf32>
    %c0_2 = arith.constant 0 : index
    %c0_3 = arith.constant 0 : index
    %4 = vector.load %arg3[%c0_2, %c0_3] : memref<128x256xbf16, #tpu.memory_space<vmem>>, vector<128x256xbf16>
    %c0_4 = arith.constant 0 : index
    %c0_5 = arith.constant 0 : index
    %5 = vector.load %arg4[%c0_4, %c0_5] : memref<256x128xbf16, #tpu.memory_space<vmem>>, vector<256x128xbf16>
    %cst = arith.constant dense<0.000000e+00> : vector<128x128xf32>
    %6 = tpu.matmul %4, %5, %cst {dimension_numbers = #tpu.dot_dimension_numbers<[1], [0], [0], [1], [0, 0, 1, 1], [], []>} : vector<128x256xbf16>, vector<256x128xbf16>, vector<128x128xf32> -> vector<128x128xf32>
    %7 = arith.addf %3, %6 : vector<128x128xf32>
    %c0_6 = arith.constant 0 : index
    %c0_7 = arith.constant 0 : index
    %8 = vector.load %arg7[%c0_6, %c0_7] : memref<128x128xf32, #tpu.memory_space<vmem>>, vector<128x128xf32>
    tpu.vector_store %arg7[%c0_6, %c0_7], %7 {strides = array<i32>} : memref<128x128xf32, #tpu.memory_space<vmem>>, vector<128x128xf32>,
    %c0_i32_8 = arith.constant 0 : i32
    %9 = arith.cmpi eq, %arg2, %c0_i32_8 : i32
    %10 = arith.extui %9 : i1 to i32
    %c0_i32_9 = arith.constant 0 : i32
    %11 = arith.cmpi ne, %10, %c0_i32_9 : i32
    scf.if %11 {
      %c0_10 = arith.constant 0 : index
      %c0_11 = arith.constant 0 : index
      %12 = vector.load %arg7[%c0_10, %c0_11] : memref<128x128xf32, #tpu.memory_space<vmem>>, vector<128x128xf32>
      %c0_12 = arith.constant 0 : index
      %c0_13 = arith.constant 0 : index
      %13 = vector.load %arg5[%c0_12, %c0_13] : memref<1x128xf32, #tpu.memory_space<vmem>>, vector<1x128xf32>
      %14 = vector.broadcast %13 : vector<1x128xf32> to vector<128x128xf32>
      %15 = arith.addf %12, %14 : vector<128x128xf32>
      %cst_14 = arith.constant 0.000000e+00 : f32
      %16 = vector.broadcast %cst_14 : f32 to vector<128x128xf32>
      %17 = arith.cmpf ogt, %15, %16 : vector<128x128xf32>
      %cst_15 = arith.constant 2.000000e-01 : f32
      %18 = vector.broadcast %cst_15 : f32 to vector<128x128xf32>
      %19 = arith.mulf %18, %15 : vector<128x128xf32>
      %20 = arith.select %17, %15, %19 : vector<128x128xi1>, vector<128x128xf32>
      %21 = arith.truncf %20 : vector<128x128xf32> to vector<128x128xbf16>
      %c0_16 = arith.constant 0 : index
      %c0_17 = arith.constant 0 : index
      %22 = vector.load %arg6[%c0_16, %c0_17] : memref<128x128xbf16, #tpu.memory_space<vmem>>, vector<128x128xbf16>
      tpu.vector_store %arg6[%c0_16, %c0_17], %21 {strides = array<i32>} : memref<128x128xbf16, #tpu.memory_space<vmem>>, vector<128x128xbf16>,
    } else {
    }
    return
  }
  func.func @transform_0(%arg0: i32, %arg1: i32, %arg2: i32) -> (i32, i32) {
    %c0_i32 = arith.constant 0 : i32
    return %arg0, %arg2 : i32, i32
  }
  func.func @transform_1(%arg0: i32, %arg1: i32, %arg2: i32) -> (i32, i32) {
    %c0_i32 = arith.constant 0 : i32
    return %arg2, %arg1 : i32, i32
  }
  func.func @transform_2(%arg0: i32, %arg1: i32, %arg2: i32) -> (i32, i32) {
    %c0_i32 = arith.constant 0 : i32
    %c0_i32_0 = arith.constant 0 : i32
    return %c0_i32, %arg1 : i32, i32
  }
  func.func @transform_3(%arg0: i32, %arg1: i32, %arg2: i32) -> (i32, i32) {
    %c0_i32 = arith.constant 0 : i32
    return %arg0, %arg1 : i32, i32
  }
}

module attributes {stable_mosaic.version = 11 : i64} {
  func.func @_mm_kernel(%arg0: i32, %arg1: i32, %arg2: i32, %arg3: memref<128x128xbf16, #tpu.memory_space<vmem>>, %arg4: memref<512x128xbf16, #tpu.memory_space<vmem>>, %arg5: memref<1x512xf32, #tpu.memory_space<vmem>>, %arg6: memref<128x512xbf16, #tpu.memory_space<vmem>>, %arg7: memref<128x512xf32, #tpu.memory_space<vmem>>) attributes {dimension_semantics = [#tpu.dimension_semantics<parallel>, #tpu.dimension_semantics<parallel>, #tpu.dimension_semantics<arbitrary>], iteration_bounds = array<i64: 1, 1, 1>, scalar_prefetch = 0 : i64, scratch_operands = 1 : i64, tpu.core_type = #tpu.core_type<tc>, window_params = [{transform_indices = @transform_0, window_bounds = array<i64: 128, 128>}, {transform_indices = @transform_1, window_bounds = array<i64: 512, 128>}, {transform_indices = @transform_2, window_bounds = array<i64: 1, 512>}, {transform_indices = @transform_3, window_bounds = array<i64: 128, 512>}]} {
    %c0_i32 = arith.constant 0 : i32
    %0 = arith.cmpi eq, %arg2, %c0_i32 : i32
    %1 = arith.extui %0 : i1 to i32
    %c0_i32_0 = arith.constant 0 : i32
    %2 = arith.cmpi ne, %1, %c0_i32_0 : i32
    scf.if %2 {
      %cst_10 = arith.constant 0.000000e+00 : f32
      %12 = vector.broadcast %cst_10 : f32 to vector<128x512xf32>
      %c0_11 = arith.constant 0 : index
      %c0_12 = arith.constant 0 : index
      %13 = vector.load %arg7[%c0_11, %c0_12] : memref<128x512xf32, #tpu.memory_space<vmem>>, vector<128x512xf32>
      tpu.vector_store %arg7[%c0_11, %c0_12], %12 {strides = array<i32>} : memref<128x512xf32, #tpu.memory_space<vmem>>, vector<128x512xf32>,
    } else {
    }
    %c0 = arith.constant 0 : index
    %c0_1 = arith.constant 0 : index
    %3 = vector.load %arg7[%c0, %c0_1] : memref<128x512xf32, #tpu.memory_space<vmem>>, vector<128x512xf32>
    %c0_2 = arith.constant 0 : index
    %c0_3 = arith.constant 0 : index
    %4 = vector.load %arg3[%c0_2, %c0_3] : memref<128x128xbf16, #tpu.memory_space<vmem>>, vector<128x128xbf16>
    %c0_4 = arith.constant 0 : index
    %c0_5 = arith.constant 0 : index
    %5 = vector.load %arg4[%c0_4, %c0_5] : memref<512x128xbf16, #tpu.memory_space<vmem>>, vector<512x128xbf16>
    %cst = arith.constant dense<0.000000e+00> : vector<128x512xf32>
    %6 = tpu.matmul %4, %5, %cst {dimension_numbers = #tpu.dot_dimension_numbers<[1], [1], [0], [0], [0, 0, 1, 0], [], []>} : vector<128x128xbf16>, vector<512x128xbf16>, vector<128x512xf32> -> vector<128x512xf32>
    %7 = arith.addf %3, %6 : vector<128x512xf32>
    %c0_6 = arith.constant 0 : index
    %c0_7 = arith.constant 0 : index
    %8 = vector.load %arg7[%c0_6, %c0_7] : memref<128x512xf32, #tpu.memory_space<vmem>>, vector<128x512xf32>
    tpu.vector_store %arg7[%c0_6, %c0_7], %7 {strides = array<i32>} : memref<128x512xf32, #tpu.memory_space<vmem>>, vector<128x512xf32>,
    %c0_i32_8 = arith.constant 0 : i32
    %9 = arith.cmpi eq, %arg2, %c0_i32_8 : i32
    %10 = arith.extui %9 : i1 to i32
    %c0_i32_9 = arith.constant 0 : i32
    %11 = arith.cmpi ne, %10, %c0_i32_9 : i32
    scf.if %11 {
      %c0_10 = arith.constant 0 : index
      %c0_11 = arith.constant 0 : index
      %12 = vector.load %arg7[%c0_10, %c0_11] : memref<128x512xf32, #tpu.memory_space<vmem>>, vector<128x512xf32>
      %c0_12 = arith.constant 0 : index
      %c0_13 = arith.constant 0 : index
      %13 = vector.load %arg5[%c0_12, %c0_13] : memref<1x512xf32, #tpu.memory_space<vmem>>, vector<1x512xf32>
      %14 = vector.broadcast %13 : vector<1x512xf32> to vector<128x512xf32>
      %15 = arith.addf %12, %14 : vector<128x512xf32>
      %16 = arith.truncf %15 : vector<128x512xf32> to vector<128x512xbf16>
      %c0_14 = arith.constant 0 : index
      %c0_15 = arith.constant 0 : index
      %17 = vector.load %arg6[%c0_14, %c0_15] : memref<128x512xbf16, #tpu.memory_space<vmem>>, vector<128x512xbf16>
      tpu.vector_store %arg6[%c0_14, %c0_15], %16 {strides = array<i32>} : memref<128x512xbf16, #tpu.memory_space<vmem>>, vector<128x512xbf16>,
    } else {
    }
    return
  }
  func.func @transform_0(%arg0: i32, %arg1: i32, %arg2: i32) -> (i32, i32) {
    %c0_i32 = arith.constant 0 : i32
    return %arg0, %arg2 : i32, i32
  }
  func.func @transform_1(%arg0: i32, %arg1: i32, %arg2: i32) -> (i32, i32) {
    %c0_i32 = arith.constant 0 : i32
    return %arg1, %arg2 : i32, i32
  }
  func.func @transform_2(%arg0: i32, %arg1: i32, %arg2: i32) -> (i32, i32) {
    %c0_i32 = arith.constant 0 : i32
    %c0_i32_0 = arith.constant 0 : i32
    return %c0_i32, %arg1 : i32, i32
  }
  func.func @transform_3(%arg0: i32, %arg1: i32, %arg2: i32) -> (i32, i32) {
    %c0_i32 = arith.constant 0 : i32
    return %arg0, %arg1 : i32, i32
  }
}

module attributes {stable_mosaic.version = 11 : i64} {
  func.func @_mm_kernel(%arg0: i32, %arg1: i32, %arg2: i32, %arg3: memref<128x128xbf16, #tpu.memory_space<vmem>>, %arg4: memref<256x128xbf16, #tpu.memory_space<vmem>>, %arg5: memref<1x256xf32, #tpu.memory_space<vmem>>, %arg6: memref<128x256xbf16, #tpu.memory_space<vmem>>, %arg7: memref<128x256xf32, #tpu.memory_space<vmem>>) attributes {dimension_semantics = [#tpu.dimension_semantics<parallel>, #tpu.dimension_semantics<parallel>, #tpu.dimension_semantics<arbitrary>], iteration_bounds = array<i64: 1, 1, 1>, scalar_prefetch = 0 : i64, scratch_operands = 1 : i64, tpu.core_type = #tpu.core_type<tc>, window_params = [{transform_indices = @transform_0, window_bounds = array<i64: 128, 128>}, {transform_indices = @transform_1, window_bounds = array<i64: 256, 128>}, {transform_indices = @transform_2, window_bounds = array<i64: 1, 256>}, {transform_indices = @transform_3, window_bounds = array<i64: 128, 256>}]} {
    %c0_i32 = arith.constant 0 : i32
    %0 = arith.cmpi eq, %arg2, %c0_i32 : i32
    %1 = arith.extui %0 : i1 to i32
    %c0_i32_0 = arith.constant 0 : i32
    %2 = arith.cmpi ne, %1, %c0_i32_0 : i32
    scf.if %2 {
      %cst_10 = arith.constant 0.000000e+00 : f32
      %12 = vector.broadcast %cst_10 : f32 to vector<128x256xf32>
      %c0_11 = arith.constant 0 : index
      %c0_12 = arith.constant 0 : index
      %13 = vector.load %arg7[%c0_11, %c0_12] : memref<128x256xf32, #tpu.memory_space<vmem>>, vector<128x256xf32>
      tpu.vector_store %arg7[%c0_11, %c0_12], %12 {strides = array<i32>} : memref<128x256xf32, #tpu.memory_space<vmem>>, vector<128x256xf32>,
    } else {
    }
    %c0 = arith.constant 0 : index
    %c0_1 = arith.constant 0 : index
    %3 = vector.load %arg7[%c0, %c0_1] : memref<128x256xf32, #tpu.memory_space<vmem>>, vector<128x256xf32>
    %c0_2 = arith.constant 0 : index
    %c0_3 = arith.constant 0 : index
    %4 = vector.load %arg3[%c0_2, %c0_3] : memref<128x128xbf16, #tpu.memory_space<vmem>>, vector<128x128xbf16>
    %c0_4 = arith.constant 0 : index
    %c0_5 = arith.constant 0 : index
    %5 = vector.load %arg4[%c0_4, %c0_5] : memref<256x128xbf16, #tpu.memory_space<vmem>>, vector<256x128xbf16>
    %cst = arith.constant dense<0.000000e+00> : vector<128x256xf32>
    %6 = tpu.matmul %4, %5, %cst {dimension_numbers = #tpu.dot_dimension_numbers<[1], [1], [0], [0], [0, 0, 1, 0], [], []>} : vector<128x128xbf16>, vector<256x128xbf16>, vector<128x256xf32> -> vector<128x256xf32>
    %7 = arith.addf %3, %6 : vector<128x256xf32>
    %c0_6 = arith.constant 0 : index
    %c0_7 = arith.constant 0 : index
    %8 = vector.load %arg7[%c0_6, %c0_7] : memref<128x256xf32, #tpu.memory_space<vmem>>, vector<128x256xf32>
    tpu.vector_store %arg7[%c0_6, %c0_7], %7 {strides = array<i32>} : memref<128x256xf32, #tpu.memory_space<vmem>>, vector<128x256xf32>,
    %c0_i32_8 = arith.constant 0 : i32
    %9 = arith.cmpi eq, %arg2, %c0_i32_8 : i32
    %10 = arith.extui %9 : i1 to i32
    %c0_i32_9 = arith.constant 0 : i32
    %11 = arith.cmpi ne, %10, %c0_i32_9 : i32
    scf.if %11 {
      %c0_10 = arith.constant 0 : index
      %c0_11 = arith.constant 0 : index
      %12 = vector.load %arg7[%c0_10, %c0_11] : memref<128x256xf32, #tpu.memory_space<vmem>>, vector<128x256xf32>
      %c0_12 = arith.constant 0 : index
      %c0_13 = arith.constant 0 : index
      %13 = vector.load %arg5[%c0_12, %c0_13] : memref<1x256xf32, #tpu.memory_space<vmem>>, vector<1x256xf32>
      %14 = vector.broadcast %13 : vector<1x256xf32> to vector<128x256xf32>
      %15 = arith.addf %12, %14 : vector<128x256xf32>
      %16 = arith.truncf %15 : vector<128x256xf32> to vector<128x256xbf16>
      %c0_14 = arith.constant 0 : index
      %c0_15 = arith.constant 0 : index
      %17 = vector.load %arg6[%c0_14, %c0_15] : memref<128x256xbf16, #tpu.memory_space<vmem>>, vector<128x256xbf16>
      tpu.vector_store %arg6[%c0_14, %c0_15], %16 {strides = array<i32>} : memref<128x256xbf16, #tpu.memory_space<vmem>>, vector<128x256xbf16>,
    } else {
    }
    return
  }
  func.func @transform_0(%arg0: i32, %arg1: i32, %arg2: i32) -> (i32, i32) {
    %c0_i32 = arith.constant 0 : i32
    return %arg0, %arg2 : i32, i32
  }
  func.func @transform_1(%arg0: i32, %arg1: i32, %arg2: i32) -> (i32, i32) {
    %c0_i32 = arith.constant 0 : i32
    return %arg1, %arg2 : i32, i32
  }
  func.func @transform_2(%arg0: i32, %arg1: i32, %arg2: i32) -> (i32, i32) {
    %c0_i32 = arith.constant 0 : i32
    %c0_i32_0 = arith.constant 0 : i32
    return %c0_i32, %arg1 : i32, i32
  }
  func.func @transform_3(%arg0: i32, %arg1: i32, %arg2: i32) -> (i32, i32) {
    %c0_i32 = arith.constant 0 : i32
    return %arg0, %arg1 : i32, i32
  }
}

module attributes {stable_mosaic.version = 11 : i64} {
  func.func @_mm_kernel(%arg0: i32, %arg1: i32, %arg2: i32, %arg3: memref<128x128xbf16, #tpu.memory_space<vmem>>, %arg4: memref<128x128xbf16, #tpu.memory_space<vmem>>, %arg5: memref<1x128xf32, #tpu.memory_space<vmem>>, %arg6: memref<128x128xf32, #tpu.memory_space<vmem>>, %arg7: memref<128x128xf32, #tpu.memory_space<vmem>>) attributes {dimension_semantics = [#tpu.dimension_semantics<parallel>, #tpu.dimension_semantics<parallel>, #tpu.dimension_semantics<arbitrary>], iteration_bounds = array<i64: 1, 1, 1>, scalar_prefetch = 0 : i64, scratch_operands = 1 : i64, tpu.core_type = #tpu.core_type<tc>, window_params = [{transform_indices = @transform_0, window_bounds = array<i64: 128, 128>}, {transform_indices = @transform_1, window_bounds = array<i64: 128, 128>}, {transform_indices = @transform_2, window_bounds = array<i64: 1, 128>}, {transform_indices = @transform_3, window_bounds = array<i64: 128, 128>}]} {
    %c0_i32 = arith.constant 0 : i32
    %0 = arith.cmpi eq, %arg2, %c0_i32 : i32
    %1 = arith.extui %0 : i1 to i32
    %c0_i32_0 = arith.constant 0 : i32
    %2 = arith.cmpi ne, %1, %c0_i32_0 : i32
    scf.if %2 {
      %cst_10 = arith.constant 0.000000e+00 : f32
      %12 = vector.broadcast %cst_10 : f32 to vector<128x128xf32>
      %c0_11 = arith.constant 0 : index
      %c0_12 = arith.constant 0 : index
      %13 = vector.load %arg7[%c0_11, %c0_12] : memref<128x128xf32, #tpu.memory_space<vmem>>, vector<128x128xf32>
      tpu.vector_store %arg7[%c0_11, %c0_12], %12 {strides = array<i32>} : memref<128x128xf32, #tpu.memory_space<vmem>>, vector<128x128xf32>,
    } else {
    }
    %c0 = arith.constant 0 : index
    %c0_1 = arith.constant 0 : index
    %3 = vector.load %arg7[%c0, %c0_1] : memref<128x128xf32, #tpu.memory_space<vmem>>, vector<128x128xf32>
    %c0_2 = arith.constant 0 : index
    %c0_3 = arith.constant 0 : index
    %4 = vector.load %arg3[%c0_2, %c0_3] : memref<128x128xbf16, #tpu.memory_space<vmem>>, vector<128x128xbf16>
    %c0_4 = arith.constant 0 : index
    %c0_5 = arith.constant 0 : index
    %5 = vector.load %arg4[%c0_4, %c0_5] : memref<128x128xbf16, #tpu.memory_space<vmem>>, vector<128x128xbf16>
    %cst = arith.constant dense<0.000000e+00> : vector<128x128xf32>
    %6 = tpu.matmul %4, %5, %cst {dimension_numbers = #tpu.dot_dimension_numbers<[1], [1], [0], [0], [0, 0, 1, 0], [], []>} : vector<128x128xbf16>, vector<128x128xbf16>, vector<128x128xf32> -> vector<128x128xf32>
    %7 = arith.addf %3, %6 : vector<128x128xf32>
    %c0_6 = arith.constant 0 : index
    %c0_7 = arith.constant 0 : index
    %8 = vector.load %arg7[%c0_6, %c0_7] : memref<128x128xf32, #tpu.memory_space<vmem>>, vector<128x128xf32>
    tpu.vector_store %arg7[%c0_6, %c0_7], %7 {strides = array<i32>} : memref<128x128xf32, #tpu.memory_space<vmem>>, vector<128x128xf32>,
    %c0_i32_8 = arith.constant 0 : i32
    %9 = arith.cmpi eq, %arg2, %c0_i32_8 : i32
    %10 = arith.extui %9 : i1 to i32
    %c0_i32_9 = arith.constant 0 : i32
    %11 = arith.cmpi ne, %10, %c0_i32_9 : i32
    scf.if %11 {
      %c0_10 = arith.constant 0 : index
      %c0_11 = arith.constant 0 : index
      %12 = vector.load %arg7[%c0_10, %c0_11] : memref<128x128xf32, #tpu.memory_space<vmem>>, vector<128x128xf32>
      %c0_12 = arith.constant 0 : index
      %c0_13 = arith.constant 0 : index
      %13 = vector.load %arg5[%c0_12, %c0_13] : memref<1x128xf32, #tpu.memory_space<vmem>>, vector<1x128xf32>
      %14 = vector.broadcast %13 : vector<1x128xf32> to vector<128x128xf32>
      %15 = arith.addf %12, %14 : vector<128x128xf32>
      %c0_14 = arith.constant 0 : index
      %c0_15 = arith.constant 0 : index
      %16 = vector.load %arg6[%c0_14, %c0_15] : memref<128x128xf32, #tpu.memory_space<vmem>>, vector<128x128xf32>
      tpu.vector_store %arg6[%c0_14, %c0_15], %15 {strides = array<i32>} : memref<128x128xf32, #tpu.memory_space<vmem>>, vector<128x128xf32>,
    } else {
    }
    return
  }
  func.func @transform_0(%arg0: i32, %arg1: i32, %arg2: i32) -> (i32, i32) {
    %c0_i32 = arith.constant 0 : i32
    return %arg0, %arg2 : i32, i32
  }
  func.func @transform_1(%arg0: i32, %arg1: i32, %arg2: i32) -> (i32, i32) {
    %c0_i32 = arith.constant 0 : i32
    return %arg1, %arg2 : i32, i32
  }
  func.func @transform_2(%arg0: i32, %arg1: i32, %arg2: i32) -> (i32, i32) {
    %c0_i32 = arith.constant 0 : i32
    %c0_i32_0 = arith.constant 0 : i32
    return %c0_i32, %arg1 : i32, i32
  }
  func.func @transform_3(%arg0: i32, %arg1: i32, %arg2: i32) -> (i32, i32) {
    %c0_i32 = arith.constant 0 : i32
    return %arg0, %arg1 : i32, i32
  }
}

module attributes {stable_mosaic.version = 11 : i64} {
  func.func @_mm_kernel(%arg0: i32, %arg1: i32, %arg2: i32, %arg3: memref<128x128xbf16, #tpu.memory_space<vmem>>, %arg4: memref<128x128xbf16, #tpu.memory_space<vmem>>, %arg5: memref<1x128xf32, #tpu.memory_space<vmem>>, %arg6: memref<128x128xbf16, #tpu.memory_space<vmem>>, %arg7: memref<128x128xf32, #tpu.memory_space<vmem>>) attributes {dimension_semantics = [#tpu.dimension_semantics<parallel>, #tpu.dimension_semantics<parallel>, #tpu.dimension_semantics<arbitrary>], iteration_bounds = array<i64: 2, 1, 1>, scalar_prefetch = 0 : i64, scratch_operands = 1 : i64, tpu.core_type = #tpu.core_type<tc>, window_params = [{transform_indices = @transform_0, window_bounds = array<i64: 128, 128>}, {transform_indices = @transform_1, window_bounds = array<i64: 128, 128>}, {transform_indices = @transform_2, window_bounds = array<i64: 1, 128>}, {transform_indices = @transform_3, window_bounds = array<i64: 128, 128>}]} {
    %c0_i32 = arith.constant 0 : i32
    %0 = arith.cmpi eq, %arg2, %c0_i32 : i32
    %1 = arith.extui %0 : i1 to i32
    %c0_i32_0 = arith.constant 0 : i32
    %2 = arith.cmpi ne, %1, %c0_i32_0 : i32
    scf.if %2 {
      %cst_10 = arith.constant 0.000000e+00 : f32
      %12 = vector.broadcast %cst_10 : f32 to vector<128x128xf32>
      %c0_11 = arith.constant 0 : index
      %c0_12 = arith.constant 0 : index
      %13 = vector.load %arg7[%c0_11, %c0_12] : memref<128x128xf32, #tpu.memory_space<vmem>>, vector<128x128xf32>
      tpu.vector_store %arg7[%c0_11, %c0_12], %12 {strides = array<i32>} : memref<128x128xf32, #tpu.memory_space<vmem>>, vector<128x128xf32>,
    } else {
    }
    %c0 = arith.constant 0 : index
    %c0_1 = arith.constant 0 : index
    %3 = vector.load %arg7[%c0, %c0_1] : memref<128x128xf32, #tpu.memory_space<vmem>>, vector<128x128xf32>
    %c0_2 = arith.constant 0 : index
    %c0_3 = arith.constant 0 : index
    %4 = vector.load %arg3[%c0_2, %c0_3] : memref<128x128xbf16, #tpu.memory_space<vmem>>, vector<128x128xbf16>
    %c0_4 = arith.constant 0 : index
    %c0_5 = arith.constant 0 : index
    %5 = vector.load %arg4[%c0_4, %c0_5] : memref<128x128xbf16, #tpu.memory_space<vmem>>, vector<128x128xbf16>
    %cst = arith.constant dense<0.000000e+00> : vector<128x128xf32>
    %6 = tpu.matmul %4, %5, %cst {dimension_numbers = #tpu.dot_dimension_numbers<[1], [0], [0], [1], [0, 0, 1, 1], [], []>} : vector<128x128xbf16>, vector<128x128xbf16>, vector<128x128xf32> -> vector<128x128xf32>
    %7 = arith.addf %3, %6 : vector<128x128xf32>
    %c0_6 = arith.constant 0 : index
    %c0_7 = arith.constant 0 : index
    %8 = vector.load %arg7[%c0_6, %c0_7] : memref<128x128xf32, #tpu.memory_space<vmem>>, vector<128x128xf32>
    tpu.vector_store %arg7[%c0_6, %c0_7], %7 {strides = array<i32>} : memref<128x128xf32, #tpu.memory_space<vmem>>, vector<128x128xf32>,
    %c0_i32_8 = arith.constant 0 : i32
    %9 = arith.cmpi eq, %arg2, %c0_i32_8 : i32
    %10 = arith.extui %9 : i1 to i32
    %c0_i32_9 = arith.constant 0 : i32
    %11 = arith.cmpi ne, %10, %c0_i32_9 : i32
    scf.if %11 {
      %c0_10 = arith.constant 0 : index
      %c0_11 = arith.constant 0 : index
      %12 = vector.load %arg7[%c0_10, %c0_11] : memref<128x128xf32, #tpu.memory_space<vmem>>, vector<128x128xf32>
      %c0_12 = arith.constant 0 : index
      %c0_13 = arith.constant 0 : index
      %13 = vector.load %arg5[%c0_12, %c0_13] : memref<1x128xf32, #tpu.memory_space<vmem>>, vector<1x128xf32>
      %14 = vector.broadcast %13 : vector<1x128xf32> to vector<128x128xf32>
      %15 = arith.addf %12, %14 : vector<128x128xf32>
      %cst_14 = arith.constant 0.000000e+00 : f32
      %16 = vector.broadcast %cst_14 : f32 to vector<128x128xf32>
      %17 = arith.cmpf ogt, %15, %16 : vector<128x128xf32>
      %cst_15 = arith.constant 2.000000e-01 : f32
      %18 = vector.broadcast %cst_15 : f32 to vector<128x128xf32>
      %19 = arith.mulf %18, %15 : vector<128x128xf32>
      %20 = arith.select %17, %15, %19 : vector<128x128xi1>, vector<128x128xf32>
      %21 = arith.truncf %20 : vector<128x128xf32> to vector<128x128xbf16>
      %c0_16 = arith.constant 0 : index
      %c0_17 = arith.constant 0 : index
      %22 = vector.load %arg6[%c0_16, %c0_17] : memref<128x128xbf16, #tpu.memory_space<vmem>>, vector<128x128xbf16>
      tpu.vector_store %arg6[%c0_16, %c0_17], %21 {strides = array<i32>} : memref<128x128xbf16, #tpu.memory_space<vmem>>, vector<128x128xbf16>,
    } else {
    }
    return
  }
  func.func @transform_0(%arg0: i32, %arg1: i32, %arg2: i32) -> (i32, i32) {
    %c0_i32 = arith.constant 0 : i32
    return %arg0, %arg2 : i32, i32
  }
  func.func @transform_1(%arg0: i32, %arg1: i32, %arg2: i32) -> (i32, i32) {
    %c0_i32 = arith.constant 0 : i32
    return %arg2, %arg1 : i32, i32
  }
  func.func @transform_2(%arg0: i32, %arg1: i32, %arg2: i32) -> (i32, i32) {
    %c0_i32 = arith.constant 0 : i32
    %c0_i32_0 = arith.constant 0 : i32
    return %c0_i32, %arg1 : i32, i32
  }
  func.func @transform_3(%arg0: i32, %arg1: i32, %arg2: i32) -> (i32, i32) {
    %c0_i32 = arith.constant 0 : i32
    return %arg0, %arg1 : i32, i32
  }
}

module attributes {stable_mosaic.version = 11 : i64} {
  func.func @_mm_kernel(%arg0: i32, %arg1: i32, %arg2: i32, %arg3: memref<128x512xbf16, #tpu.memory_space<vmem>>, %arg4: memref<512x128xbf16, #tpu.memory_space<vmem>>, %arg5: memref<1x128xf32, #tpu.memory_space<vmem>>, %arg6: memref<128x128xf32, #tpu.memory_space<vmem>>, %arg7: memref<128x128xf32, #tpu.memory_space<vmem>>) attributes {dimension_semantics = [#tpu.dimension_semantics<parallel>, #tpu.dimension_semantics<parallel>, #tpu.dimension_semantics<arbitrary>], iteration_bounds = array<i64: 1, 1, 1>, scalar_prefetch = 0 : i64, scratch_operands = 1 : i64, tpu.core_type = #tpu.core_type<tc>, window_params = [{transform_indices = @transform_0, window_bounds = array<i64: 128, 512>}, {transform_indices = @transform_1, window_bounds = array<i64: 512, 128>}, {transform_indices = @transform_2, window_bounds = array<i64: 1, 128>}, {transform_indices = @transform_3, window_bounds = array<i64: 128, 128>}]} {
    %c0_i32 = arith.constant 0 : i32
    %0 = arith.cmpi eq, %arg2, %c0_i32 : i32
    %1 = arith.extui %0 : i1 to i32
    %c0_i32_0 = arith.constant 0 : i32
    %2 = arith.cmpi ne, %1, %c0_i32_0 : i32
    scf.if %2 {
      %cst_10 = arith.constant 0.000000e+00 : f32
      %12 = vector.broadcast %cst_10 : f32 to vector<128x128xf32>
      %c0_11 = arith.constant 0 : index
      %c0_12 = arith.constant 0 : index
      %13 = vector.load %arg7[%c0_11, %c0_12] : memref<128x128xf32, #tpu.memory_space<vmem>>, vector<128x128xf32>
      tpu.vector_store %arg7[%c0_11, %c0_12], %12 {strides = array<i32>} : memref<128x128xf32, #tpu.memory_space<vmem>>, vector<128x128xf32>,
    } else {
    }
    %c0 = arith.constant 0 : index
    %c0_1 = arith.constant 0 : index
    %3 = vector.load %arg7[%c0, %c0_1] : memref<128x128xf32, #tpu.memory_space<vmem>>, vector<128x128xf32>
    %c0_2 = arith.constant 0 : index
    %c0_3 = arith.constant 0 : index
    %4 = vector.load %arg3[%c0_2, %c0_3] : memref<128x512xbf16, #tpu.memory_space<vmem>>, vector<128x512xbf16>
    %c0_4 = arith.constant 0 : index
    %c0_5 = arith.constant 0 : index
    %5 = vector.load %arg4[%c0_4, %c0_5] : memref<512x128xbf16, #tpu.memory_space<vmem>>, vector<512x128xbf16>
    %cst = arith.constant dense<0.000000e+00> : vector<128x128xf32>
    %6 = tpu.matmul %4, %5, %cst {dimension_numbers = #tpu.dot_dimension_numbers<[1], [0], [0], [1], [0, 0, 1, 1], [], []>} : vector<128x512xbf16>, vector<512x128xbf16>, vector<128x128xf32> -> vector<128x128xf32>
    %7 = arith.addf %3, %6 : vector<128x128xf32>
    %c0_6 = arith.constant 0 : index
    %c0_7 = arith.constant 0 : index
    %8 = vector.load %arg7[%c0_6, %c0_7] : memref<128x128xf32, #tpu.memory_space<vmem>>, vector<128x128xf32>
    tpu.vector_store %arg7[%c0_6, %c0_7], %7 {strides = array<i32>} : memref<128x128xf32, #tpu.memory_space<vmem>>, vector<128x128xf32>,
    %c0_i32_8 = arith.constant 0 : i32
    %9 = arith.cmpi eq, %arg2, %c0_i32_8 : i32
    %10 = arith.extui %9 : i1 to i32
    %c0_i32_9 = arith.constant 0 : i32
    %11 = arith.cmpi ne, %10, %c0_i32_9 : i32
    scf.if %11 {
      %c0_10 = arith.constant 0 : index
      %c0_11 = arith.constant 0 : index
      %12 = vector.load %arg7[%c0_10, %c0_11] : memref<128x128xf32, #tpu.memory_space<vmem>>, vector<128x128xf32>
      %c0_12 = arith.constant 0 : index
      %c0_13 = arith.constant 0 : index
      %13 = vector.load %arg5[%c0_12, %c0_13] : memref<1x128xf32, #tpu.memory_space<vmem>>, vector<1x128xf32>
      %14 = vector.broadcast %13 : vector<1x128xf32> to vector<128x128xf32>
      %15 = arith.addf %12, %14 : vector<128x128xf32>
      %c0_14 = arith.constant 0 : index
      %c0_15 = arith.constant 0 : index
      %16 = vector.load %arg6[%c0_14, %c0_15] : memref<128x128xf32, #tpu.memory_space<vmem>>, vector<128x128xf32>
      tpu.vector_store %arg6[%c0_14, %c0_15], %15 {strides = array<i32>} : memref<128x128xf32, #tpu.memory_space<vmem>>, vector<128x128xf32>,
    } else {
    }
    return
  }
  func.func @transform_0(%arg0: i32, %arg1: i32, %arg2: i32) -> (i32, i32) {
    %c0_i32 = arith.constant 0 : i32
    return %arg0, %arg2 : i32, i32
  }
  func.func @transform_1(%arg0: i32, %arg1: i32, %arg2: i32) -> (i32, i32) {
    %c0_i32 = arith.constant 0 : i32
    return %arg2, %arg1 : i32, i32
  }
  func.func @transform_2(%arg0: i32, %arg1: i32, %arg2: i32) -> (i32, i32) {
    %c0_i32 = arith.constant 0 : i32
    %c0_i32_0 = arith.constant 0 : i32
    return %c0_i32, %arg1 : i32, i32
  }
  func.func @transform_3(%arg0: i32, %arg1: i32, %arg2: i32) -> (i32, i32) {
    %c0_i32 = arith.constant 0 : i32
    return %arg0, %arg1 : i32, i32
  }
}

module attributes {stable_mosaic.version = 11 : i64} {
  func.func @_loss_kernel(%arg0: i32, %arg1: memref<2x1xf32, #tpu.memory_space<vmem>>, %arg2: memref<2x1xf32, #tpu.memory_space<vmem>>, %arg3: memref<2x512xf32, #tpu.memory_space<vmem>>, %arg4: memref<1x1xf32, #tpu.memory_space<vmem>>, %arg5: memref<1x1xf32, #tpu.memory_space<vmem>>, %arg6: memref<1x1xf32, #tpu.memory_space<vmem>>, %arg7: memref<2x1xf32, #tpu.memory_space<vmem>>, %arg8: memref<2x1xf32, #tpu.memory_space<vmem>>) attributes {dimension_semantics = [#tpu.dimension_semantics<arbitrary>], iteration_bounds = array<i64: 2>, scalar_prefetch = 0 : i64, scratch_operands = 1 : i64, tpu.core_type = #tpu.core_type<tc>, window_params = [{pipeline_mode = #tpu.pipeline_mode<synchronous>, transform_indices = @transform_0, window_bounds = array<i64: 2, 1>}, {pipeline_mode = #tpu.pipeline_mode<synchronous>, transform_indices = @transform_1, window_bounds = array<i64: 2, 1>}, {transform_indices = @transform_2, window_bounds = array<i64: 2, 512>}, {pipeline_mode = #tpu.pipeline_mode<synchronous>, transform_indices = @transform_3, window_bounds = array<i64: 1, 1>}, {pipeline_mode = #tpu.pipeline_mode<synchronous>, transform_indices = @transform_4, window_bounds = array<i64: 1, 1>}, {pipeline_mode = #tpu.pipeline_mode<synchronous>, transform_indices = @transform_5, window_bounds = array<i64: 1, 1>}, {pipeline_mode = #tpu.pipeline_mode<synchronous>, transform_indices = @transform_6, window_bounds = array<i64: 2, 1>}]} {
    %c0_i32 = arith.constant 0 : i32
    %0 = arith.cmpi eq, %arg0, %c0_i32 : i32
    %1 = arith.extui %0 : i1 to i32
    %c0_i32_0 = arith.constant 0 : i32
    %2 = arith.cmpi ne, %1, %c0_i32_0 : i32
    scf.if %2 {
      %cst_7 = arith.constant 0.000000e+00 : f32
      %13 = vector.broadcast %cst_7 : f32 to vector<2x1xf32>
      %c0_8 = arith.constant 0 : index
      %c0_9 = arith.constant 0 : index
      %14 = vector.load %arg8[%c0_8, %c0_9] : memref<2x1xf32, #tpu.memory_space<vmem>>, vector<2x1xf32>
      tpu.vector_store %arg8[%c0_8, %c0_9], %13 {strides = array<i32>} : memref<2x1xf32, #tpu.memory_space<vmem>>, vector<2x1xf32>,
    } else {
    }
    %c0 = arith.constant 0 : index
    %c0_1 = arith.constant 0 : index
    %3 = vector.load %arg3[%c0, %c0_1] : memref<2x512xf32, #tpu.memory_space<vmem>>, vector<2x512xf32>
    %c0_2 = arith.constant 0 : index
    %c0_3 = arith.constant 0 : index
    %4 = vector.load %arg8[%c0_2, %c0_3] : memref<2x1xf32, #tpu.memory_space<vmem>>, vector<2x1xf32>
    %5 = arith.mulf %3, %3 : vector<2x512xf32>
    %cst = arith.constant dense<0.000000e+00> : vector<2xf32>
    %6 = vector.multi_reduction <add>, %5, %cst [1] : vector<2x512xf32> to vector<2xf32>
    %7 = vector.shape_cast %6 : vector<2xf32> to vector<2x1xf32>
    %8 = arith.addf %4, %7 : vector<2x1xf32>
    %c0_4 = arith.constant 0 : index
    %c0_5 = arith.constant 0 : index
    %9 = vector.load %arg8[%c0_4, %c0_5] : memref<2x1xf32, #tpu.memory_space<vmem>>, vector<2x1xf32>
    tpu.vector_store %arg8[%c0_4, %c0_5], %8 {strides = array<i32>} : memref<2x1xf32, #tpu.memory_space<vmem>>, vector<2x1xf32>,
    %c1_i32 = arith.constant 1 : i32
    %10 = arith.cmpi eq, %arg0, %c1_i32 : i32
    %11 = arith.extui %10 : i1 to i32
    %c0_i32_6 = arith.constant 0 : i32
    %12 = arith.cmpi ne, %11, %c0_i32_6 : i32
    scf.if %12 {
      %c0_7 = arith.constant 0 : index
      %c0_8 = arith.constant 0 : index
      %13 = vector.load %arg8[%c0_7, %c0_8] : memref<2x1xf32, #tpu.memory_space<vmem>>, vector<2x1xf32>
      %cst_9 = arith.constant 9.99999996E-13 : f32
      %14 = vector.broadcast %cst_9 : f32 to vector<2x1xf32>
      %15 = arith.addf %13, %14 : vector<2x1xf32>
      %16 = math.sqrt %15 : vector<2x1xf32>
      %c0_10 = arith.constant 0 : index
      %c0_11 = arith.constant 0 : index
      %17 = vector.load %arg7[%c0_10, %c0_11] : memref<2x1xf32, #tpu.memory_space<vmem>>, vector<2x1xf32>
      tpu.vector_store %arg7[%c0_10, %c0_11], %16 {strides = array<i32>} : memref<2x1xf32, #tpu.memory_space<vmem>>, vector<2x1xf32>,
      %c0_12 = arith.constant 0 : index
      %c0_13 = arith.constant 0 : index
      %18 = vector.load %arg1[%c0_12, %c0_13] : memref<2x1xf32, #tpu.memory_space<vmem>>, vector<2x1xf32>
      %cst_14 = arith.constant dense<0.000000e+00> : vector<1xf32>
      %19 = vector.multi_reduction <add>, %18, %cst_14 [0] : vector<2x1xf32> to vector<1xf32>
      %20 = vector.shape_cast %19 : vector<1xf32> to vector<1x1xf32>
      %cst_15 = arith.constant 5.000000e-01 : f32
      %21 = vector.broadcast %cst_15 : f32 to vector<1x1xf32>
      %22 = arith.mulf %20, %21 : vector<1x1xf32>
      %c0_16 = arith.constant 0 : index
      %c0_17 = arith.constant 0 : index
      %23 = vector.load %arg2[%c0_16, %c0_17] : memref<2x1xf32, #tpu.memory_space<vmem>>, vector<2x1xf32>
      %cst_18 = arith.constant dense<0.000000e+00> : vector<1xf32>
      %24 = vector.multi_reduction <add>, %23, %cst_18 [0] : vector<2x1xf32> to vector<1xf32>
      %25 = vector.shape_cast %24 : vector<1xf32> to vector<1x1xf32>
      %cst_19 = arith.constant 5.000000e-01 : f32
      %26 = vector.broadcast %cst_19 : f32 to vector<1x1xf32>
      %27 = arith.mulf %25, %26 : vector<1x1xf32>
      %cst_20 = arith.constant 1.000000e+00 : f32
      %28 = vector.broadcast %cst_20 : f32 to vector<2x1xf32>
      %29 = arith.subf %16, %28 : vector<2x1xf32>
      %30 = arith.mulf %29, %29 : vector<2x1xf32>
      %cst_21 = arith.constant dense<0.000000e+00> : vector<1xf32>
      %31 = vector.multi_reduction <add>, %30, %cst_21 [0] : vector<2x1xf32> to vector<1xf32>
      %32 = vector.shape_cast %31 : vector<1xf32> to vector<1x1xf32>
      %cst_22 = arith.constant 5.000000e-01 : f32
      %33 = vector.broadcast %cst_22 : f32 to vector<1x1xf32>
      %34 = arith.mulf %32, %33 : vector<1x1xf32>
      %cst_23 = arith.constant 0.000000e+00 : f32
      %35 = vector.broadcast %cst_23 : f32 to vector<1x1xf32>
      %36 = arith.subf %35, %27 : vector<1x1xf32>
      %c0_24 = arith.constant 0 : index
      %c0_25 = arith.constant 0 : index
      %37 = vector.load %arg4[%c0_24, %c0_25] : memref<1x1xf32, #tpu.memory_space<vmem>>, vector<1x1xf32>
      tpu.vector_store %arg4[%c0_24, %c0_25], %36 {strides = array<i32>} : memref<1x1xf32, #tpu.memory_space<vmem>>, vector<1x1xf32>,
      %c0_26 = arith.constant 0 : index
      %c0_27 = arith.constant 0 : index
      %38 = vector.load %arg6[%c0_26, %c0_27] : memref<1x1xf32, #tpu.memory_space<vmem>>, vector<1x1xf32>
      tpu.vector_store %arg6[%c0_26, %c0_27], %34 {strides = array<i32>} : memref<1x1xf32, #tpu.memory_space<vmem>>, vector<1x1xf32>,
      %cst_28 = arith.constant 0.000000e+00 : f32
      %39 = vector.broadcast %cst_28 : f32 to vector<1x1xf32>
      %40 = arith.subf %39, %22 : vector<1x1xf32>
      %41 = arith.addf %40, %27 : vector<1x1xf32>
      %cst_29 = arith.constant 1.000000e+01 : f32
      %42 = vector.broadcast %cst_29 : f32 to vector<1x1xf32>
      %43 = arith.mulf %42, %34 : vector<1x1xf32>
      %44 = arith.addf %41, %43 : vector<1x1xf32>
      %c0_30 = arith.constant 0 : index
      %c0_31 = arith.constant 0 : index
      %45 = vector.load %arg5[%c0_30, %c0_31] : memref<1x1xf32, #tpu.memory_space<vmem>>, vector<1x1xf32>
      tpu.vector_store %arg5[%c0_30, %c0_31], %44 {strides = array<i32>} : memref<1x1xf32, #tpu.memory_space<vmem>>, vector<1x1xf32>,
    } else {
    }
    return
  }
  func.func @transform_0(%arg0: i32) -> (i32, i32) {
    %c0_i32 = arith.constant 0 : i32
    %c0_i32_0 = arith.constant 0 : i32
    %c0_i32_1 = arith.constant 0 : i32
    return %c0_i32, %c0_i32_0 : i32, i32
  }
  func.func @transform_1(%arg0: i32) -> (i32, i32) {
    %c0_i32 = arith.constant 0 : i32
    %c0_i32_0 = arith.constant 0 : i32
    %c0_i32_1 = arith.constant 0 : i32
    return %c0_i32, %c0_i32_0 : i32, i32
  }
  func.func @transform_2(%arg0: i32) -> (i32, i32) {
    %c0_i32 = arith.constant 0 : i32
    %c0_i32_0 = arith.constant 0 : i32
    return %c0_i32, %arg0 : i32, i32
  }
  func.func @transform_3(%arg0: i32) -> (i32, i32) {
    %c0_i32 = arith.constant 0 : i32
    %c0_i32_0 = arith.constant 0 : i32
    %c0_i32_1 = arith.constant 0 : i32
    return %c0_i32, %c0_i32_0 : i32, i32
  }
  func.func @transform_4(%arg0: i32) -> (i32, i32) {
    %c0_i32 = arith.constant 0 : i32
    %c0_i32_0 = arith.constant 0 : i32
    %c0_i32_1 = arith.constant 0 : i32
    return %c0_i32, %c0_i32_0 : i32, i32
  }
  func.func @transform_5(%arg0: i32) -> (i32, i32) {
    %c0_i32 = arith.constant 0 : i32
    %c0_i32_0 = arith.constant 0 : i32
    %c0_i32_1 = arith.constant 0 : i32
    return %c0_i32, %c0_i32_0 : i32, i32
  }
  func.func @transform_6(%arg0: i32) -> (i32, i32) {
    %c0_i32 = arith.constant 0 : i32
    %c0_i32_0 = arith.constant 0 : i32
    %c0_i32_1 = arith.constant 0 : i32
    return %c0_i32, %c0_i32_0 : i32, i32
  }
}

</mosaic_0001>

<bundles_post_ra>
// kernel: wgan_gp_forward.7
= control target key start
LH: loop header
LB: loop body
LE: loop exit
PB: predicated region body
PF: predicated region fallthrough
CT: control target
= control target key end

     0   :  { %s721_s1 = inlined_call_operand.vmem [shape: bf16[128,128], index: 1, kind: input, shape index: {}]   ;;  %s722_s0 = inlined_call_operand.vmem [shape: bf16[128,128], index: 0, kind: input, shape index: {}]   ;;  %s723_s2 = inlined_call_operand.vmem [shape: f32[1,128], index: 2, kind: input, shape index: {}]   ;;  %s724_s3 = inlined_call_operand.vmem [shape: bf16[128,128], index: 3, kind: output, shape index: {}]  }
   0x1   :  { %v610_v0 = vld [vmem:[%s721_s1 + $0x38] sm:$0xff]   ;;  %v611_v1 = vld [vmem:[%s721_s1 + $0x30] sm:$0xff]   ;;  %v612_v2 = vld [vmem:[%s721_s1 + $0x28] sm:$0xff]  }
   0x2   :  { %562 = vmatprep.subr.bf16.mxu0 %v610_v0  ;;  %594 = vmatprep.subr.bf16.mxu1 %v610_v0  ;;  %v613_v3 = vld [vmem:[%s721_s1 + $0x20] sm:$0xff]   ;;  %v614_v6 = vld [vmem:[%s721_s1 + $0x18] sm:$0xff]   ;;  %v615_v7 = vld [vmem:[%s721_s1 + $0x10] sm:$0xff]  }
   0x3   :  { %563 = vmatpush3.bf16.msra.mxu0 %v610_v0  ;;  %602 = vmatpush3.bf16.msra.mxu1 %v610_v0  ;;  %v618_v4 = vld [vmem:[%s722_s0] sm:$0xff]   ;;  %v616_v8 = vld [vmem:[%s721_s1 + $0x8] sm:$0xff]   ;;  %v622_v12 = vld [vmem:[%s722_s0 + $0x10] sm:$0xff]  }
   0x4   :  { %564 = vmatprep.subr.bf16.mxu0 %v611_v1  ;;  %595 = vmatprep.subr.bf16.mxu1 %v611_v1  ;;  %v619_v5 = vld [vmem:[%s722_s0 + $0x20] sm:$0xff]   ;;  %v620_v10 = vld [vmem:[%s722_s0 + $0x8] sm:$0xff]   ;;  %v623_v13 = vld [vmem:[%s722_s0 + $0x30] sm:$0xff]  }
   0x5   :  { %578 = vmatprep.mubr.bf16.mxu0 %v618_v4  ;;  %586 = vmatprep.mubr.bf16.mxu1 %v619_v5  ;;  %v617_v9 = vld [vmem:[%s721_s1] sm:$0xff]   ;;  %v621_v11 = vld [vmem:[%s722_s0 + $0x28] sm:$0xff]   ;;  %v624_v14 = vld [vmem:[%s722_s0 + $0x18] sm:$0xff]  }
   0x6   :  { %v625_v15 = vld [vmem:[%s722_s0 + $0x38] sm:$0xff]   ;;  %v466_v16 = vld [vmem:[%s723_s2] ss:$0 sm:$0xff] }
   0x7   :  { %565 = vmatpush3.bf16.msra.mxu0 %v611_v1  ;;  %603 = vmatpush3.bf16.msra.mxu1 %v611_v1 }
   0x8   :  { %566 = vmatprep.subr.bf16.mxu0 %v612_v2  ;;  %596 = vmatprep.subr.bf16.mxu1 %v612_v2 }
   0xb   :  { %567 = vmatpush3.bf16.msra.mxu0 %v612_v2  ;;  %604 = vmatpush3.bf16.msra.mxu1 %v612_v2 }
   0xc   :  { %568 = vmatprep.subr.bf16.mxu0 %v613_v3  ;;  %597 = vmatprep.subr.bf16.mxu1 %v613_v3 }
   0xf   :  { %569 = vmatpush3.bf16.msra.mxu0 %v613_v3  ;;  %605 = vmatpush3.bf16.msra.mxu1 %v613_v3 }
  0x10   :  { %570 = vmatprep.subr.bf16.mxu0 %v614_v6  ;;  %598 = vmatprep.subr.bf16.mxu1 %v614_v6 }
  0x13   :  { %571 = vmatpush3.bf16.msra.mxu0 %v614_v6  ;;  %606 = vmatpush3.bf16.msra.mxu1 %v614_v6 }
  0x14   :  { %572 = vmatprep.subr.bf16.mxu0 %v615_v7  ;;  %599 = vmatprep.subr.bf16.mxu1 %v615_v7 }
  0x17   :  { %573 = vmatpush3.bf16.msra.mxu0 %v615_v7  ;;  %607 = vmatpush3.bf16.msra.mxu1 %v615_v7 }
  0x18   :  { %574 = vmatprep.subr.bf16.mxu0 %v616_v8  ;;  %600 = vmatprep.subr.bf16.mxu1 %v616_v8 }
  0x1b   :  { %575 = vmatpush3.bf16.msra.mxu0 %v616_v8  ;;  %608 = vmatpush3.bf16.msra.mxu1 %v616_v8 }
  0x1c   :  { %576 = vmatprep.subr.bf16.mxu0 %v617_v9  ;;  %601 = vmatprep.subr.bf16.mxu1 %v617_v9 }
  0x1f   :  { %577 = vmatpush3.bf16.msra.mxu0 %v617_v9  ;;  %609 = vmatpush3.bf16.msra.mxu1 %v617_v9 }
  0x22   :  { %579 = vmatmul.mubr.bf16.vlgmr.msra.gmra.mxu0 %v620_v10  ;;  %587 = vmatmul.mubr.bf16.vlgmr.msra.gmra.mxu1 %v621_v11 }
  0x23   :  { %582 = vmatprep.mubr.bf16.mxu0 %v622_v12  ;;  %590 = vmatprep.mubr.bf16.mxu1 %v623_v13 }
  0x2a   :  { %583 = vmatmul.mubr.bf16.gmra.mxu0 %v624_v14  ;;  %591 = vmatmul.mubr.bf16.gmra.mxu1 %v625_v15 }
  0xe2   :  { %v580_v17 = vpop.f32.mrf.mxu0  ;;  %v588_v18 = vpop.f32.mrf.mxu1 }
  0xe3   :  { %v336_v19 = vadd.f32 %v580_v17, %v466_v16  ;;  %v344_v20 = vadd.f32 %v588_v18, %v466_v16 }
  0xe4   :  { %v213_v21 = vpop.f32.mrf.mxu0  ;;  %v245_v22 = vpop.f32.mrf.mxu1 }
  0xe5   :  { %v334_v23 = vadd.f32 %v466_v16, %v213_v21  ;;  %v342_v24 = vadd.f32 %v466_v16, %v245_v22  ;;  %v352_v29 = vmax.f32 %v336_v19, 0.0  ;;  %v360_v30 = vmax.f32 %v344_v20, 0.0 }
  0xe6   :  { %v581_v25 = vpop.f32.mrf.mxu0  ;;  %v589_v26 = vpop.f32.mrf.mxu1 }
  0xe7   :  { %v337_v27 = vadd.f32 %v581_v25, %v466_v16  ;;  %v345_v28 = vadd.f32 %v589_v26, %v466_v16  ;;  %v350_v37 = vmax.f32 %v334_v23, 0.0  ;;  %v358_v38 = vmax.f32 %v342_v24, 0.0 }
  0xe8   :  { %v216_v31 = vpop.f32.mrf.mxu0  ;;  %v248_v32 = vpop.f32.mrf.mxu1 }
  0xe9   :  { %v353_v33 = vmax.f32 %v337_v27, 0.0  ;;  %v361_v34 = vmax.f32 %v345_v28, 0.0  ;;  %v335_v35 = vadd.f32 %v466_v16, %v216_v31  ;;  %v343_v36 = vadd.f32 %v466_v16, %v248_v32 }
  0xea   :  { %v584_v39 = vpop.f32.mrf.mxu0  ;;  %v592_v40 = vpop.f32.mrf.mxu1 }
  0xeb   :  { %v507_v41 = vpack.c.bf16 %v353_v33, %v352_v29  ;;  %v527_v42 = vpack.c.bf16 %v361_v34, %v360_v30  ;;  %v351_v43 = vmax.f32 %v335_v35, 0.0  ;;  %v359_v44 = vmax.f32 %v343_v36, 0.0 }
  0xec   :  { %v340_v45 = vadd.f32 %v584_v39, %v466_v16  ;;  %v348_v46 = vadd.f32 %v592_v40, %v466_v16  ;;  %v229_v47 = vpop.f32.mrf.mxu0  ;;  %v261_v48 = vpop.f32.mrf.mxu1 }
  0xed   :  { %539 = vst [vmem:[%s724_s3 + $0x8] sm:$0xff] %v507_v41   ;;  %543 = vst [vmem:[%s724_s3 + $0x28] sm:$0xff] %v527_v42   ;;  %v502_v49 = vpack.c.bf16 %v351_v43, %v350_v37  ;;  %v522_v50 = vpack.c.bf16 %v359_v44, %v358_v38  ;;  %v338_v51 = vadd.f32 %v466_v16, %v229_v47 }
  0xee   :  { %v346_v52 = vadd.f32 %v466_v16, %v261_v48  ;;  %v585_v53 = vpop.f32.mrf.mxu0  ;;  %v593_v54 = vpop.f32.mrf.mxu1  ;;  %v356_v57 = vmax.f32 %v340_v45, 0.0  ;;  %v364_v58 = vmax.f32 %v348_v46, 0.0 }
  0xef   :  { %503 = vst [vmem:[%s724_s3] sm:$0xff] %v502_v49   ;;  %542 = vst [vmem:[%s724_s3 + $0x20] sm:$0xff] %v522_v50   ;;  %v341_v55 = vadd.f32 %v585_v53, %v466_v16  ;;  %v349_v56 = vadd.f32 %v593_v54, %v466_v16  ;;  %v354_v1 = vmax.f32 %v338_v51, 0.0 }
  0xf0   :  { %v232_v59 = vpop.f32.mrf.mxu0  ;;  %v264_v60 = vpop.f32.mrf.mxu1  ;;  %v362_v2 = vmax.f32 %v346_v52, 0.0 }
  0xf1   :  { %v357_v61 = vmax.f32 %v341_v55, 0.0  ;;  %v365_v62 = vmax.f32 %v349_v56, 0.0  ;;  %v339_v63 = vadd.f32 %v466_v16, %v232_v59  ;;  %v347_v0 = vadd.f32 %v466_v16, %v264_v60 }
  0xf3   :  { %v517_v3 = vpack.c.bf16 %v357_v61, %v356_v57  ;;  %v537_v4 = vpack.c.bf16 %v365_v62, %v364_v58  ;;  %v355_v5 = vmax.f32 %v339_v63, 0.0  ;;  %v363_v6 = vmax.f32 %v347_v0, 0.0 }
  0xf5   :  { %541 = vst [vmem:[%s724_s3 + $0x18] sm:$0xff] %v517_v3   ;;  %545 = vst [vmem:[%s724_s3 + $0x38] sm:$0xff] %v537_v4   ;;  %v512_v7 = vpack.c.bf16 %v355_v5, %v354_v1  ;;  %v532_v8 = vpack.c.bf16 %v363_v6, %v362_v2 }
  0xf7   :  { %540 = vst [vmem:[%s724_s3 + $0x10] sm:$0xff] %v512_v7   ;;  %544 = vst [vmem:[%s724_s3 + $0x30] sm:$0xff] %v532_v8  }

// kernel: wgan_gp_forward.8
= control target key start
LH: loop header
LB: loop body
LE: loop exit
PB: predicated region body
PF: predicated region fallthrough
CT: control target
= control target key end

     0   :  { %s1276_s1 = inlined_call_operand.vmem [shape: bf16[384,128], index: 1, kind: input, shape index: {}]   ;;  %s1277_s0 = inlined_call_operand.vmem [shape: bf16[128,384], index: 0, kind: input, shape index: {}]   ;;  %s1278_s2 = inlined_call_operand.vmem [shape: f32[1,128], index: 2, kind: input, shape index: {}]   ;;  %s1279_s3 = inlined_call_operand.vmem [shape: bf16[128,128], index: 3, kind: output, shape index: {}]  }
   0x1   :  { %v1011_v0 = vld [vmem:[%s1276_s1 + $0x78] sm:$0xff]   ;;  %v1014_v3 = vld [vmem:[%s1276_s1 + $0x70] sm:$0xff]   ;;  %v1017_v6 = vld [vmem:[%s1276_s1 + $0x68] sm:$0xff]  }
   0x2   :  { %v1012_v1 = vld [vmem:[%s1276_s1 + $0x38] sm:$0xff]   ;;  %899 = vmatprep.subr.bf16.mxu0 %v1011_v0  ;;  %v1015_v4 = vld [vmem:[%s1276_s1 + $0x30] sm:$0xff]   ;;  %v1018_v7 = vld [vmem:[%s1276_s1 + $0x28] sm:$0xff]  }
   0x3   :  { %v1013_v2 = vld [vmem:[%s1276_s1 + $0xb8] sm:$0xff]   ;;  %900 = vmatpush3.bf16.msra.mxu0 %v1012_v1  ;;  %v1016_v5 = vld [vmem:[%s1276_s1 + $0xb0] sm:$0xff]   ;;  %v1019_v8 = vld [vmem:[%s1276_s1 + $0xa8] sm:$0xff]  }
   0x4   :  { %979 = vmatprep.subr.bf16.mxu1 %v1013_v2  ;;  %901 = vmatprep.subr.bf16.mxu0 %v1014_v3  ;;  %v1020_v9 = vld [vmem:[%s1276_s1 + $0x60] sm:$0xff]   ;;  %v1023_v12 = vld [vmem:[%s1276_s1 + $0x58] sm:$0xff]   ;;  %v1026_v15 = vld [vmem:[%s1276_s1 + $0x50] sm:$0xff]  }
   0x5   :  { %980 = vmatpush3.bf16.msra.mxu1 %v1013_v2  ;;  %v1021_v10 = vld [vmem:[%s1276_s1 + $0x20] sm:$0xff]   ;;  %v1025_v13 = vld [vmem:[%s1276_s1 + $0x98] sm:$0xff]   ;;  %v1028_v16 = vld [vmem:[%s1276_s1 + $0x90] sm:$0xff]  }
   0x6   :  { %981 = vmatprep.subr.bf16.mxu1 %v1016_v5  ;;  %v1022_v11 = vld [vmem:[%s1276_s1 + $0xa0] sm:$0xff]   ;;  %v1024_v14 = vld [vmem:[%s1276_s1 + $0x18] sm:$0xff]   ;;  %v1027_v17 = vld [vmem:[%s1276_s1 + $0x10] sm:$0xff]  }
   0x7   :  { %902 = vmatpush3.bf16.msra.mxu0 %v1015_v4  ;;  %v1029_v18 = vld [vmem:[%s1276_s1 + $0x48] sm:$0xff]   ;;  %v1032_v21 = vld [vmem:[%s1276_s1 + $0x40] sm:$0xff]   ;;  %v1047_v32 = vld [vmem:[%s1277_s0 + $0x50] ss:$12 sps:$4 sm:$0xff]  }
   0x8   :  { %903 = vmatprep.subr.bf16.mxu0 %v1017_v6  ;;  %v1030_v19 = vld [vmem:[%s1276_s1 + $0x8] sm:$0xff]   ;;  %v1034_v22 = vld [vmem:[%s1276_s1 + $0x80] sm:$0xff]   ;;  %v1045_v34 = vld [vmem:[%s1277_s0 + $0x30] ss:$12 sps:$4 sm:$0xff]  }
   0x9   :  { %982 = vmatpush3.bf16.msra.mxu1 %v1016_v5  ;;  %v1031_v20 = vld [vmem:[%s1276_s1 + $0x88] sm:$0xff]   ;;  %v1037_v23 = vld [vmem:[%s1277_s0 + $0x4] ss:$12 sps:$4 sm:$0xff]   ;;  %v1043_v31 = vld [vmem:[%s1277_s0 + $0x34] ss:$12 sps:$4 sm:$0xff]  }
   0xa   :  { %983 = vmatprep.subr.bf16.mxu1 %v1019_v8  ;;  %v1038_v24 = vld [vmem:[%s1277_s0 + $0x8] ss:$12 sps:$4 sm:$0xff]   ;;  %v1033_v25 = vld [vmem:[%s1276_s1] sm:$0xff]   ;;  %435 = vmatprep.mubr.bf16.mxu0 %v1037_v23  ;;  %v1048_v35 = vld [vmem:[%s1277_s0 + $0x4c] ss:$12 sps:$4 sm:$0xff]  }
   0xb   :  { %904 = vmatpush3.bf16.msra.mxu0 %v1018_v7  ;;  %995 = vmatprep.mubr.bf16.mxu1 %v1038_v24  ;;  %v1035_v26 = vld [vmem:[%s1277_s0] ss:$12 sps:$4 sm:$0xff]   ;;  %v1040_v27 = vld [vmem:[%s1277_s0 + $0x1c] ss:$12 sps:$4 sm:$0xff]   ;;  %v1046_v29 = vld [vmem:[%s1277_s0 + $0x38] ss:$12 sps:$4 sm:$0xff]  }
   0xc   :  { %905 = vmatprep.subr.bf16.mxu0 %v1020_v9  ;;  %v1039_v28 = vld [vmem:[%s1277_s0 + $0x20] ss:$12 sps:$4 sm:$0xff]   ;;  %v1042_v30 = vld [vmem:[%s1277_s0 + $0x18] ss:$12 sps:$4 sm:$0xff]   ;;  %v1054_v33 = vld [vmem:[%s1277_s0 + $0x68] ss:$12 sps:$4 sm:$0xff]  }
   0xd   :  { %984 = vmatpush3.bf16.msra.mxu1 %v1019_v8  ;;  %v1055_v36 = vld [vmem:[%s1277_s0 + $0x80] ss:$12 sps:$4 sm:$0xff]   ;;  %v1062_v37 = vld [vmem:[%s1277_s0 + $0x98] ss:$12 sps:$4 sm:$0xff]   ;;  %v1050_v38 = vld [vmem:[%s1277_s0 + $0x48] ss:$12 sps:$4 sm:$0xff]  }
   0xe   :  { %985 = vmatprep.subr.bf16.mxu1 %v1022_v11  ;;  %v1051_v39 = vld [vmem:[%s1277_s0 + $0x64] ss:$12 sps:$4 sm:$0xff]   ;;  %v1053_v41 = vld [vmem:[%s1277_s0 + $0x60] ss:$12 sps:$4 sm:$0xff]   ;;  %v1056_v42 = vld [vmem:[%s1277_s0 + $0x7c] ss:$12 sps:$4 sm:$0xff]  }
   0xf   :  { %906 = vmatpush3.bf16.msra.mxu0 %v1021_v10  ;;  %v1063_v40 = vld [vmem:[%s1277_s0 + $0xb0] ss:$12 sps:$4 sm:$0xff]   ;;  %v1058_v43 = vld [vmem:[%s1277_s0 + $0x78] ss:$12 sps:$4 sm:$0xff]   ;;  %v1059_v44 = vld [vmem:[%s1277_s0 + $0x94] ss:$12 sps:$4 sm:$0xff]  }
  0x10   :  { %907 = vmatprep.subr.bf16.mxu0 %v1023_v12  ;;  %v1061_v45 = vld [vmem:[%s1277_s0 + $0x90] ss:$12 sps:$4 sm:$0xff]   ;;  %v1064_v46 = vld [vmem:[%s1277_s0 + $0xac] ss:$12 sps:$4 sm:$0xff]   ;;  %v1066_v47 = vld [vmem:[%s1277_s0 + $0xa8] ss:$12 sps:$4 sm:$0xff]  }
  0x11   :  { %986 = vmatpush3.bf16.msra.mxu1 %v1022_v11  ;;  %v1234_v55 = vld [vmem:[%s1278_s2] ss:$0 sm:$0xff] }
  0x12   :  { %987 = vmatprep.subr.bf16.mxu1 %v1025_v13 }
  0x13   :  { %908 = vmatpush3.bf16.msra.mxu0 %v1024_v14 }
  0x14   :  { %909 = vmatprep.subr.bf16.mxu0 %v1026_v15 }
  0x15   :  { %988 = vmatpush3.bf16.msra.mxu1 %v1025_v13 }
  0x16   :  { %989 = vmatprep.subr.bf16.mxu1 %v1028_v16 }
  0x17   :  { %910 = vmatpush3.bf16.msra.mxu0 %v1027_v17 }
  0x18   :  { %911 = vmatprep.subr.bf16.mxu0 %v1029_v18 }
  0x19   :  { %990 = vmatpush3.bf16.msra.mxu1 %v1028_v16 }
  0x1a   :  { %991 = vmatprep.subr.bf16.mxu1 %v1031_v20 }
  0x1b   :  { %912 = vmatpush3.bf16.msra.mxu0 %v1030_v19 }
  0x1c   :  { %913 = vmatprep.subr.bf16.mxu0 %v1032_v21 }
  0x1d   :  { %992 = vmatpush3.bf16.msra.mxu1 %v1031_v20 }
  0x1e   :  { %993 = vmatprep.subr.bf16.mxu1 %v1034_v22 }
  0x1f   :  { %914 = vmatpush3.bf16.msra.mxu0 %v1033_v25 }
  0x21   :  { %994 = vmatpush3.bf16.msra.mxu1 %v1034_v22 }
  0x22   :  { %436 = vmatmul.mubr.bf16.vlgmr.msra.gmra.mxu0 %v1035_v26 }
  0x23   :  { %443 = vmatprep.mubr.bf16.mxu0 %v1040_v27 }
  0x24   :  { %996 = vmatmul.mubr.bf16.vlgmr.msra.gmra.mxu1 %v1039_v28 }
  0x25   :  { %999 = vmatprep.mubr.bf16.mxu1 %v1046_v29 }
  0x2a   :  { %444 = vmatmul.mubr.bf16.gmra.mxu0 %v1042_v30 }
  0x2b   :  { %451 = vmatprep.mubr.bf16.mxu0 %v1043_v31 }
  0x2c   :  { %1000 = vmatmul.mubr.bf16.gmra.mxu1 %v1047_v32 }
  0x2d   :  { %1003 = vmatprep.mubr.bf16.mxu1 %v1054_v33 }
  0x32   :  { %452 = vmatmul.mubr.bf16.gmra.mxu0 %v1045_v34 }
  0x33   :  { %459 = vmatprep.mubr.bf16.mxu0 %v1048_v35 }
  0x34   :  { %1004 = vmatmul.mubr.bf16.gmra.mxu1 %v1055_v36 }
  0x35   :  { %1007 = vmatprep.mubr.bf16.mxu1 %v1062_v37 }
  0x3a   :  { %460 = vmatmul.mubr.bf16.gmra.mxu0 %v1050_v38 }
  0x3b   :  { %467 = vmatprep.mubr.bf16.mxu0 %v1051_v39 }
  0x3c   :  { %1008 = vmatmul.mubr.bf16.gmra.mxu1 %v1063_v40 }
  0x42   :  { %468 = vmatmul.mubr.bf16.gmra.mxu0 %v1053_v41 }
  0x43   :  { %475 = vmatprep.mubr.bf16.mxu0 %v1056_v42 }
  0x4a   :  { %476 = vmatmul.mubr.bf16.gmra.mxu0 %v1058_v43 }
  0x4b   :  { %483 = vmatprep.mubr.bf16.mxu0 %v1059_v44 }
  0x52   :  { %484 = vmatmul.mubr.bf16.gmra.mxu0 %v1061_v45 }
  0x53   :  { %491 = vmatprep.mubr.bf16.mxu0 %v1064_v46 }
  0x5a   :  { %492 = vmatmul.mubr.bf16.gmra.mxu0 %v1066_v47 }
  0xe2   :  { %v915_v48 = vpop.f32.mrf.mxu0 }
  0xe4   :  { %v916_v49 = vpop.f32.mrf.mxu0  ;;  %v997_v50 = vpop.f32.mrf.mxu1 }
  0xe5   :  { %v917_v51 = vadd.f32 %v916_v49, %v915_v48 }
  0xe6   :  { %v918_v52 = vpop.f32.mrf.mxu0  ;;  %v534_v53 = vpop.f32.mrf.mxu1 }
  0xe7   :  { %v535_v54 = vadd.f32 %v917_v51, %v534_v53 }
  0xe8   :  { %v919_v56 = vpop.f32.mrf.mxu0  ;;  %v998_v57 = vpop.f32.mrf.mxu1 }
  0xe9   :  { %v920_v58 = vadd.f32 %v919_v56, %v918_v52  ;;  %v655_v61 = vadd.f32 %v1234_v55, %v535_v54 }
  0xea   :  { %v921_v59 = vpop.f32.mrf.mxu0  ;;  %v537_v60 = vpop.f32.mrf.mxu1 }
  0xeb   :  { %v538_v62 = vadd.f32 %v920_v58, %v537_v60  ;;  %v671_v4 = vmax.f32 %v655_v61, 0.0 }
  0xec   :  { %v922_v63 = vpop.f32.mrf.mxu0  ;;  %v1001_v0 = vpop.f32.mrf.mxu1 }
  0xed   :  { %v656_v1 = vadd.f32 %v1234_v55, %v538_v62  ;;  %v923_v2 = vadd.f32 %v922_v63, %v921_v59 }
  0xee   :  { %v924_v3 = vpop.f32.mrf.mxu0  ;;  %v550_v8 = vpop.f32.mrf.mxu1 }
  0xef   :  { %v672_v5 = vmax.f32 %v656_v1, 0.0  ;;  %v543_v6 = vadd.f32 %v997_v50, %v923_v2 }
  0xf0   :  { %v925_v7 = vpop.f32.mrf.mxu0  ;;  %v1002_v15 = vpop.f32.mrf.mxu1 }
  0xf1   :  { %v855_v9 = vpack.c.bf16 %v672_v5, %v671_v4  ;;  %v926_v10 = vadd.f32 %v925_v7, %v924_v3  ;;  %v657_v12 = vadd.f32 %v1234_v55, %v543_v6 }
  0xf2   :  { %v927_v11 = vpop.f32.mrf.mxu0  ;;  %v553_v23 = vpop.f32.mrf.mxu1 }
  0xf3   :  { %856 = vst [vmem:[%s1279_s3] sm:$0xff] %v855_v9   ;;  %v546_v13 = vadd.f32 %v998_v57, %v926_v10  ;;  %v673_v19 = vmax.f32 %v657_v12, 0.0 }
  0xf4   :  { %v928_v14 = vpop.f32.mrf.mxu0  ;;  %v1005_v30 = vpop.f32.mrf.mxu1 }
  0xf5   :  { %v658_v16 = vadd.f32 %v1234_v55, %v546_v13  ;;  %v929_v17 = vadd.f32 %v928_v14, %v927_v11 }
  0xf6   :  { %v930_v18 = vpop.f32.mrf.mxu0  ;;  %v566_v38 = vpop.f32.mrf.mxu1 }
  0xf7   :  { %v674_v20 = vmax.f32 %v658_v16, 0.0  ;;  %v551_v21 = vadd.f32 %v929_v17, %v550_v8 }
  0xf8   :  { %v931_v22 = vpop.f32.mrf.mxu0  ;;  %v1006_v45 = vpop.f32.mrf.mxu1 }
  0xf9   :  { %v860_v24 = vpack.c.bf16 %v674_v20, %v673_v19  ;;  %v932_v25 = vadd.f32 %v931_v22, %v930_v18  ;;  %v659_v27 = vadd.f32 %v1234_v55, %v551_v21 }
  0xfa   :  { %v933_v26 = vpop.f32.mrf.mxu0  ;;  %v569_v53 = vpop.f32.mrf.mxu1 }
  0xfb   :  { %892 = vst [vmem:[%s1279_s3 + $0x8] sm:$0xff] %v860_v24   ;;  %v554_v28 = vadd.f32 %v932_v25, %v553_v23  ;;  %v675_v34 = vmax.f32 %v659_v27, 0.0 }
  0xfc   :  { %v934_v29 = vpop.f32.mrf.mxu0  ;;  %v1009_v61 = vpop.f32.mrf.mxu1 }
  0xfd   :  { %v660_v31 = vadd.f32 %v1234_v55, %v554_v28  ;;  %v935_v32 = vadd.f32 %v934_v29, %v933_v26 }
  0xfe   :  { %v936_v33 = vpop.f32.mrf.mxu0  ;;  %v582_v5 = vpop.f32.mrf.mxu1 }
  0xff   :  { %v676_v35 = vmax.f32 %v660_v31, 0.0  ;;  %v559_v36 = vadd.f32 %v1001_v0, %v935_v32 }
 0x100   :  { %v937_v37 = vpop.f32.mrf.mxu0  ;;  %v1010_v12 = vpop.f32.mrf.mxu1 }
 0x101   :  { %v865_v39 = vpack.c.bf16 %v676_v35, %v675_v34  ;;  %v938_v40 = vadd.f32 %v937_v37, %v936_v33  ;;  %v661_v42 = vadd.f32 %v1234_v55, %v559_v36 }
 0x102   :  { %v939_v41 = vpop.f32.mrf.mxu0  ;;  %v585_v20 = vpop.f32.mrf.mxu1 }
 0x103   :  { %893 = vst [vmem:[%s1279_s3 + $0x10] sm:$0xff] %v865_v39   ;;  %v562_v43 = vadd.f32 %v1002_v15, %v938_v40  ;;  %v677_v49 = vmax.f32 %v661_v42, 0.0 }
 0x104   :  { %v940_v44 = vpop.f32.mrf.mxu0 }
 0x105   :  { %v662_v46 = vadd.f32 %v1234_v55, %v562_v43  ;;  %v941_v47 = vadd.f32 %v940_v44, %v939_v41 }
 0x106   :  { %v942_v48 = vpop.f32.mrf.mxu0 }
 0x107   :  { %v678_v50 = vmax.f32 %v662_v46, 0.0  ;;  %v567_v51 = vadd.f32 %v941_v47, %v566_v38 }
 0x108   :  { %v943_v52 = vpop.f32.mrf.mxu0 }
 0x109   :  { %v870_v54 = vpack.c.bf16 %v678_v50, %v677_v49  ;;  %v944_v56 = vadd.f32 %v943_v52, %v942_v48  ;;  %v663_v58 = vadd.f32 %v1234_v55, %v567_v51 }
 0x10a   :  { %v945_v57 = vpop.f32.mrf.mxu0 }
 0x10b   :  { %894 = vst [vmem:[%s1279_s3 + $0x18] sm:$0xff] %v870_v54   ;;  %v570_v59 = vadd.f32 %v944_v56, %v569_v53  ;;  %v679_v1 = vmax.f32 %v663_v58, 0.0 }
 0x10c   :  { %v946_v60 = vpop.f32.mrf.mxu0 }
 0x10d   :  { %v664_v62 = vadd.f32 %v1234_v55, %v570_v59  ;;  %v947_v63 = vadd.f32 %v946_v60, %v945_v57 }
 0x10e   :  { %v948_v0 = vpop.f32.mrf.mxu0 }
 0x10f   :  { %v680_v2 = vmax.f32 %v664_v62, 0.0  ;;  %v575_v3 = vadd.f32 %v1005_v30, %v947_v63 }
 0x110   :  { %v949_v4 = vpop.f32.mrf.mxu0 }
 0x111   :  { %v875_v6 = vpack.c.bf16 %v680_v2, %v679_v1  ;;  %v950_v7 = vadd.f32 %v949_v4, %v948_v0  ;;  %v665_v9 = vadd.f32 %v1234_v55, %v575_v3 }
 0x112   :  { %v951_v8 = vpop.f32.mrf.mxu0 }
 0x113   :  { %895 = vst [vmem:[%s1279_s3 + $0x20] sm:$0xff] %v875_v6   ;;  %v578_v10 = vadd.f32 %v1006_v45, %v950_v7  ;;  %v681_v16 = vmax.f32 %v665_v9, 0.0 }
 0x114   :  { %v952_v11 = vpop.f32.mrf.mxu0 }
 0x115   :  { %v666_v13 = vadd.f32 %v1234_v55, %v578_v10  ;;  %v953_v14 = vadd.f32 %v952_v11, %v951_v8 }
 0x116   :  { %v954_v15 = vpop.f32.mrf.mxu0 }
 0x117   :  { %v682_v17 = vmax.f32 %v666_v13, 0.0  ;;  %v583_v18 = vadd.f32 %v953_v14, %v582_v5 }
 0x118   :  { %v955_v19 = vpop.f32.mrf.mxu0 }
 0x119   :  { %v880_v21 = vpack.c.bf16 %v682_v17, %v681_v16  ;;  %v956_v22 = vadd.f32 %v955_v19, %v954_v15  ;;  %v667_v24 = vadd.f32 %v1234_v55, %v583_v18 }
 0x11a   :  { %v957_v23 = vpop.f32.mrf.mxu0 }
 0x11b   :  { %896 = vst [vmem:[%s1279_s3 + $0x28] sm:$0xff] %v880_v21   ;;  %v586_v25 = vadd.f32 %v956_v22, %v585_v20  ;;  %v683_v30 = vmax.f32 %v667_v24, 0.0 }
 0x11c   :  { %v958_v26 = vpop.f32.mrf.mxu0 }
 0x11d   :  { %v668_v27 = vadd.f32 %v1234_v55, %v586_v25  ;;  %v959_v28 = vadd.f32 %v958_v26, %v957_v23 }
 0x11e   :  { %v960_v29 = vpop.f32.mrf.mxu0 }
 0x11f   :  { %v684_v31 = vmax.f32 %v668_v27, 0.0  ;;  %v591_v32 = vadd.f32 %v1009_v61, %v959_v28 }
 0x120   :  { %v961_v33 = vpop.f32.mrf.mxu0 }
 0x121   :  { %v885_v34 = vpack.c.bf16 %v684_v31, %v683_v30  ;;  %v962_v35 = vadd.f32 %v961_v33, %v960_v29  ;;  %v669_v36 = vadd.f32 %v1234_v55, %v591_v32 }
 0x123   :  { %897 = vst [vmem:[%s1279_s3 + $0x30] sm:$0xff] %v885_v34   ;;  %v594_v37 = vadd.f32 %v1010_v12, %v962_v35  ;;  %v685_v39 = vmax.f32 %v669_v36, 0.0 }
 0x125   :  { %v670_v38 = vadd.f32 %v1234_v55, %v594_v37 }
 0x127   :  { %v686_v40 = vmax.f32 %v670_v38, 0.0 }
 0x129   :  { %v890_v41 = vpack.c.bf16 %v686_v40, %v685_v39 }
 0x12b   :  { %898 = vst [vmem:[%s1279_s3 + $0x38] sm:$0xff] %v890_v41  }

// kernel: wgan_gp_forward.9
= control target key start
LH: loop header
LB: loop body
LE: loop exit
PB: predicated region body
PF: predicated region fallthrough
CT: control target
= control target key end

     0   :  { %s852_s1 = inlined_call_operand.vmem [shape: bf16[256,128], index: 1, kind: input, shape index: {}]   ;;  %s853_s0 = inlined_call_operand.vmem [shape: bf16[128,256], index: 0, kind: input, shape index: {}]   ;;  %s854_s2 = inlined_call_operand.vmem [shape: f32[1,128], index: 2, kind: input, shape index: {}]   ;;  %s855_s3 = inlined_call_operand.vmem [shape: f32[128,128], index: 3, kind: output, shape index: {}]  }
   0x1   :  { %v595_v0 = vld [vmem:[%s852_s1 + $0x78] sm:$0xff]   ;;  %v597_v2 = vld [vmem:[%s852_s1 + $0x70] sm:$0xff]   ;;  %v599_v4 = vld [vmem:[%s852_s1 + $0x68] sm:$0xff]  }
   0x2   :  { %v596_v1 = vld [vmem:[%s852_s1 + $0x38] sm:$0xff]   ;;  %515 = vmatprep.subr.bf16.mxu0 %v595_v0  ;;  %579 = vmatprep.subr.bf16.mxu1 %v595_v0  ;;  %v598_v3 = vld [vmem:[%s852_s1 + $0x30] sm:$0xff]   ;;  %v600_v5 = vld [vmem:[%s852_s1 + $0x28] sm:$0xff]  }
   0x3   :  { %516 = vmatpush3.bf16.msra.mxu0 %v596_v1  ;;  %587 = vmatpush3.bf16.msra.mxu1 %v596_v1  ;;  %v601_v6 = vld [vmem:[%s852_s1 + $0x60] sm:$0xff]   ;;  %v603_v8 = vld [vmem:[%s852_s1 + $0x58] sm:$0xff]   ;;  %v605_v10 = vld [vmem:[%s852_s1 + $0x50] sm:$0xff]  }
   0x4   :  { %517 = vmatprep.subr.bf16.mxu0 %v597_v2  ;;  %580 = vmatprep.subr.bf16.mxu1 %v597_v2  ;;  %v602_v7 = vld [vmem:[%s852_s1 + $0x20] sm:$0xff]   ;;  %v604_v9 = vld [vmem:[%s852_s1 + $0x18] sm:$0xff]   ;;  %v606_v13 = vld [vmem:[%s852_s1 + $0x10] sm:$0xff]  }
   0x5   :  { %v613_v11 = vld [vmem:[%s853_s0 + $0x4] ss:$8 sps:$4 sm:$0xff]   ;;  %v611_v18 = vld [vmem:[%s853_s0] ss:$8 sps:$4 sm:$0xff]   ;;  %v617_v20 = vld [vmem:[%s853_s0 + $0x14] ss:$8 sps:$4 sm:$0xff]  }
   0x6   :  { %v616_v12 = vld [vmem:[%s853_s0 + $0x44] ss:$8 sps:$4 sm:$0xff]   ;;  %307 = vmatprep.mubr.bf16.mxu0 %v613_v11  ;;  %v614_v19 = vld [vmem:[%s853_s0 + $0x40] ss:$8 sps:$4 sm:$0xff]   ;;  %v619_v21 = vld [vmem:[%s853_s0 + $0x54] ss:$8 sps:$4 sm:$0xff]  }
   0x7   :  { %518 = vmatpush3.bf16.msra.mxu0 %v598_v3  ;;  %588 = vmatpush3.bf16.msra.mxu1 %v598_v3  ;;  %v607_v14 = vld [vmem:[%s852_s1 + $0x48] sm:$0xff]   ;;  %v609_v16 = vld [vmem:[%s852_s1 + $0x40] sm:$0xff]   ;;  %v621_v22 = vld [vmem:[%s853_s0 + $0x10] ss:$8 sps:$4 sm:$0xff]  }
   0x8   :  { %519 = vmatprep.subr.bf16.mxu0 %v599_v4  ;;  %581 = vmatprep.subr.bf16.mxu1 %v599_v4  ;;  %v608_v15 = vld [vmem:[%s852_s1 + $0x8] sm:$0xff]   ;;  %v610_v17 = vld [vmem:[%s852_s1] sm:$0xff]   ;;  %v622_v23 = vld [vmem:[%s853_s0 + $0x50] ss:$8 sps:$4 sm:$0xff]  }
   0x9   :  { %339 = vmatprep.mubr.bf16.mxu1 %v616_v12  ;;  %v623_v24 = vld [vmem:[%s853_s0 + $0x24] ss:$8 sps:$4 sm:$0xff]   ;;  %v627_v26 = vld [vmem:[%s853_s0 + $0x20] ss:$8 sps:$4 sm:$0xff]   ;;  %v629_v28 = vld [vmem:[%s853_s0 + $0x34] ss:$8 sps:$4 sm:$0xff]  }
   0xa   :  { %v625_v25 = vld [vmem:[%s853_s0 + $0x64] ss:$8 sps:$4 sm:$0xff]   ;;  %v628_v27 = vld [vmem:[%s853_s0 + $0x60] ss:$8 sps:$4 sm:$0xff]   ;;  %v631_v29 = vld [vmem:[%s853_s0 + $0x74] ss:$8 sps:$4 sm:$0xff]  }
   0xb   :  { %520 = vmatpush3.bf16.msra.mxu0 %v600_v5  ;;  %589 = vmatpush3.bf16.msra.mxu1 %v600_v5  ;;  %v633_v30 = vld [vmem:[%s853_s0 + $0x30] ss:$8 sps:$4 sm:$0xff]   ;;  %v786_v35 = vld [vmem:[%s854_s2] ss:$0 sm:$0xff] }
   0xc   :  { %521 = vmatprep.subr.bf16.mxu0 %v601_v6  ;;  %582 = vmatprep.subr.bf16.mxu1 %v601_v6  ;;  %v634_v31 = vld [vmem:[%s853_s0 + $0x70] ss:$8 sps:$4 sm:$0xff]  }
   0xf   :  { %522 = vmatpush3.bf16.msra.mxu0 %v602_v7  ;;  %590 = vmatpush3.bf16.msra.mxu1 %v602_v7 }
  0x10   :  { %523 = vmatprep.subr.bf16.mxu0 %v603_v8  ;;  %583 = vmatprep.subr.bf16.mxu1 %v603_v8 }
  0x13   :  { %524 = vmatpush3.bf16.msra.mxu0 %v604_v9  ;;  %591 = vmatpush3.bf16.msra.mxu1 %v604_v9 }
  0x14   :  { %525 = vmatprep.subr.bf16.mxu0 %v605_v10  ;;  %584 = vmatprep.subr.bf16.mxu1 %v605_v10 }
  0x17   :  { %526 = vmatpush3.bf16.msra.mxu0 %v606_v13  ;;  %592 = vmatpush3.bf16.msra.mxu1 %v606_v13 }
  0x18   :  { %527 = vmatprep.subr.bf16.mxu0 %v607_v14  ;;  %585 = vmatprep.subr.bf16.mxu1 %v607_v14 }
  0x1b   :  { %528 = vmatpush3.bf16.msra.mxu0 %v608_v15  ;;  %593 = vmatpush3.bf16.msra.mxu1 %v608_v15 }
  0x1c   :  { %529 = vmatprep.subr.bf16.mxu0 %v609_v16  ;;  %586 = vmatprep.subr.bf16.mxu1 %v609_v16 }
  0x1f   :  { %530 = vmatpush3.bf16.msra.mxu0 %v610_v17  ;;  %594 = vmatpush3.bf16.msra.mxu1 %v610_v17 }
  0x22   :  { %308 = vmatmul.mubr.bf16.vlgmr.msra.gmra.mxu0 %v611_v18  ;;  %340 = vmatmul.mubr.bf16.vlgmr.msra.gmra.mxu1 %v614_v19 }
  0x23   :  { %315 = vmatprep.mubr.bf16.mxu0 %v617_v20  ;;  %347 = vmatprep.mubr.bf16.mxu1 %v619_v21 }
  0x2a   :  { %316 = vmatmul.mubr.bf16.gmra.mxu0 %v621_v22  ;;  %348 = vmatmul.mubr.bf16.gmra.mxu1 %v622_v23 }
  0x2b   :  { %323 = vmatprep.mubr.bf16.mxu0 %v623_v24  ;;  %355 = vmatprep.mubr.bf16.mxu1 %v625_v25 }
  0x32   :  { %324 = vmatmul.mubr.bf16.gmra.mxu0 %v627_v26  ;;  %356 = vmatmul.mubr.bf16.gmra.mxu1 %v628_v27 }
  0x33   :  { %331 = vmatprep.mubr.bf16.mxu0 %v629_v28  ;;  %363 = vmatprep.mubr.bf16.mxu1 %v631_v29 }
  0x3a   :  { %332 = vmatmul.mubr.bf16.gmra.mxu0 %v633_v30  ;;  %364 = vmatmul.mubr.bf16.gmra.mxu1 %v634_v31 }
  0xe2   :  { %v531_v32 = vpop.f32.mrf.mxu0  ;;  %v555_v33 = vpop.f32.mrf.mxu1 }
  0xe4   :  { %v532_v34 = vpop.f32.mrf.mxu0  ;;  %v556_v36 = vpop.f32.mrf.mxu1 }
  0xe5   :  { %v533_v37 = vadd.f32 %v532_v34, %v531_v32  ;;  %v557_v38 = vadd.f32 %v556_v36, %v555_v33 }
  0xe6   :  { %v534_v39 = vpop.f32.mrf.mxu0  ;;  %v558_v40 = vpop.f32.mrf.mxu1 }
  0xe7   :  { %v430_v41 = vadd.f32 %v533_v37, %v786_v35  ;;  %v438_v42 = vadd.f32 %v557_v38, %v786_v35 }
  0xe8   :  { %v535_v43 = vpop.f32.mrf.mxu0  ;;  %v559_v44 = vpop.f32.mrf.mxu1 }
  0xe9   :  { %635 = vtanh.f32 %v430_v41  ;;  %v536_v45 = vadd.f32 %v535_v43, %v534_v39  ;;  %v560_v46 = vadd.f32 %v559_v44, %v558_v40 }
  0xea   :  { %637 = vtanh.f32 %v438_v42  ;;  %v537_v47 = vpop.f32.mrf.mxu0  ;;  %v561_v48 = vpop.f32.mrf.mxu1 }
  0xeb   :  { %v431_v49 = vadd.f32 %v536_v45, %v786_v35  ;;  %v439_v50 = vadd.f32 %v560_v46, %v786_v35 }
  0xec   :  { %v538_v51 = vpop.f32.mrf.mxu0  ;;  %v562_v52 = vpop.f32.mrf.mxu1 }
  0xed   :  { %639 = vtanh.f32 %v431_v49  ;;  %v539_v53 = vadd.f32 %v538_v51, %v537_v47  ;;  %v563_v54 = vadd.f32 %v562_v52, %v561_v48 }
  0xee   :  { %641 = vtanh.f32 %v439_v50  ;;  %v540_v55 = vpop.f32.mrf.mxu0  ;;  %v564_v56 = vpop.f32.mrf.mxu1 }
  0xef   :  { %v432_v57 = vadd.f32 %v539_v53, %v786_v35  ;;  %v440_v58 = vadd.f32 %v563_v54, %v786_v35 }
  0xf0   :  { %v541_v59 = vpop.f32.mrf.mxu0  ;;  %v565_v60 = vpop.f32.mrf.mxu1 }
  0xf1   :  { %643 = vtanh.f32 %v432_v57  ;;  %v542_v61 = vadd.f32 %v541_v59, %v540_v55  ;;  %v566_v62 = vadd.f32 %v565_v60, %v564_v56 }
  0xf2   :  { %645 = vtanh.f32 %v440_v58  ;;  %v543_v63 = vpop.f32.mrf.mxu0  ;;  %v567_v0 = vpop.f32.mrf.mxu1 }
  0xf3   :  { %v433_v1 = vadd.f32 %v542_v61, %v786_v35  ;;  %v441_v2 = vadd.f32 %v566_v62, %v786_v35 }
  0xf4   :  { %v544_v3 = vpop.f32.mrf.mxu0  ;;  %v568_v4 = vpop.f32.mrf.mxu1 }
  0xf5   :  { %647 = vtanh.f32 %v433_v1  ;;  %v545_v5 = vadd.f32 %v544_v3, %v543_v63  ;;  %v569_v6 = vadd.f32 %v568_v4, %v567_v0 }
  0xf6   :  { %v636_v7 = vpop.eup %635  ;;  %649 = vtanh.f32 %v441_v2  ;;  %v546_v8 = vpop.f32.mrf.mxu0 }
  0xf7   :  { %v570_v9 = vpop.f32.mrf.mxu1  ;;  %v638_v10 = vpop.eup %637  ;;  %462 = vst [vmem:[%s855_s3] sm:$0xff] %v636_v7  ;;  %v434_v11 = vadd.f32 %v545_v5, %v786_v35  ;;  %v442_v12 = vadd.f32 %v569_v6, %v786_v35 }
  0xf8   :  { %470 = vst [vmem:[%s855_s3 + $0x40] sm:$0xff] %v638_v10  ;;  %v547_v13 = vpop.f32.mrf.mxu0 }
  0xf9   :  { %v571_v14 = vpop.f32.mrf.mxu1  ;;  %651 = vtanh.f32 %v434_v11  ;;  %v548_v15 = vadd.f32 %v547_v13, %v546_v8 }
  0xfa   :  { %v572_v16 = vadd.f32 %v571_v14, %v570_v9  ;;  %v640_v17 = vpop.eup %639  ;;  %653 = vtanh.f32 %v442_v12  ;;  %v549_v18 = vpop.f32.mrf.mxu0 }
  0xfb   :  { %v573_v19 = vpop.f32.mrf.mxu1  ;;  %v642_v20 = vpop.eup %641  ;;  %463 = vst [vmem:[%s855_s3 + $0x8] sm:$0xff] %v640_v17  ;;  %v435_v21 = vadd.f32 %v548_v15, %v786_v35 }
  0xfc   :  { %v443_v22 = vadd.f32 %v572_v16, %v786_v35  ;;  %471 = vst [vmem:[%s855_s3 + $0x48] sm:$0xff] %v642_v20  ;;  %v550_v23 = vpop.f32.mrf.mxu0 }
  0xfd   :  { %v574_v24 = vpop.f32.mrf.mxu1  ;;  %655 = vtanh.f32 %v435_v21  ;;  %v551_v25 = vadd.f32 %v550_v23, %v549_v18 }
  0xfe   :  { %v575_v26 = vadd.f32 %v574_v24, %v573_v19  ;;  %v644_v27 = vpop.eup %643  ;;  %657 = vtanh.f32 %v443_v22  ;;  %v552_v28 = vpop.f32.mrf.mxu0 }
  0xff   :  { %v576_v29 = vpop.f32.mrf.mxu1  ;;  %v646_v30 = vpop.eup %645  ;;  %464 = vst [vmem:[%s855_s3 + $0x10] sm:$0xff] %v644_v27  ;;  %v436_v31 = vadd.f32 %v551_v25, %v786_v35 }
 0x100   :  { %v444_v32 = vadd.f32 %v575_v26, %v786_v35  ;;  %472 = vst [vmem:[%s855_s3 + $0x50] sm:$0xff] %v646_v30  ;;  %v553_v33 = vpop.f32.mrf.mxu0 }
 0x101   :  { %v577_v34 = vpop.f32.mrf.mxu1  ;;  %659 = vtanh.f32 %v436_v31  ;;  %v554_v36 = vadd.f32 %v553_v33, %v552_v28 }
 0x102   :  { %v578_v37 = vadd.f32 %v577_v34, %v576_v29  ;;  %v648_v38 = vpop.eup %647  ;;  %661 = vtanh.f32 %v444_v32 }
 0x103   :  { %v650_v39 = vpop.eup %649  ;;  %465 = vst [vmem:[%s855_s3 + $0x18] sm:$0xff] %v648_v38  ;;  %v437_v40 = vadd.f32 %v554_v36, %v786_v35 }
 0x104   :  { %v445_v41 = vadd.f32 %v578_v37, %v786_v35  ;;  %473 = vst [vmem:[%s855_s3 + $0x58] sm:$0xff] %v650_v39 }
 0x105   :  { %663 = vtanh.f32 %v437_v40 }
 0x106   :  { %v652_v42 = vpop.eup %651  ;;  %665 = vtanh.f32 %v445_v41 }
 0x107   :  { %v654_v43 = vpop.eup %653  ;;  %466 = vst [vmem:[%s855_s3 + $0x20] sm:$0xff] %v652_v42 }
 0x108   :  { %474 = vst [vmem:[%s855_s3 + $0x60] sm:$0xff] %v654_v43 }
 0x10a   :  { %v656_v44 = vpop.eup %655 }
 0x10b   :  { %v658_v45 = vpop.eup %657  ;;  %467 = vst [vmem:[%s855_s3 + $0x28] sm:$0xff] %v656_v44 }
 0x10c   :  { %475 = vst [vmem:[%s855_s3 + $0x68] sm:$0xff] %v658_v45 }
 0x10e   :  { %v660_v35 = vpop.eup %659 }
 0x10f   :  { %v662_v46 = vpop.eup %661  ;;  %468 = vst [vmem:[%s855_s3 + $0x30] sm:$0xff] %v660_v35 }
 0x110   :  { %476 = vst [vmem:[%s855_s3 + $0x70] sm:$0xff] %v662_v46 }
 0x112   :  { %v664_v47 = vpop.eup %663 }
 0x113   :  { %v666_v48 = vpop.eup %665  ;;  %469 = vst [vmem:[%s855_s3 + $0x38] sm:$0xff] %v664_v47 }
 0x114   :  { %477 = vst [vmem:[%s855_s3 + $0x78] sm:$0xff] %v666_v48 }

// kernel: jvp__.2
= control target key start
LH: loop header
LB: loop body
LE: loop exit
PB: predicated region body
PF: predicated region fallthrough
CT: control target
= control target key end

     0   :  { %s777_s1 = inlined_call_operand.vmem [shape: bf16[128,128], index: 1, kind: input, shape index: {}]   ;;  %s778_s0 = inlined_call_operand.vmem [shape: bf16[128,128], index: 0, kind: input, shape index: {}]   ;;  %s779_s2 = inlined_call_operand.vmem [shape: f32[1,128], index: 2, kind: input, shape index: {}]   ;;  %s780_s3 = inlined_call_operand.vmem [shape: bf16[128,128], index: 3, kind: output, shape index: {}]  }
   0x1   :  { %v642_v0 = vld [vmem:[%s777_s1 + $0x38] sm:$0xff]   ;;  %v643_v1 = vld [vmem:[%s777_s1 + $0x30] sm:$0xff]   ;;  %v644_v2 = vld [vmem:[%s777_s1 + $0x28] sm:$0xff]  }
   0x2   :  { %594 = vmatprep.subr.bf16.mxu0 %v642_v0  ;;  %626 = vmatprep.subr.bf16.mxu1 %v642_v0  ;;  %v645_v3 = vld [vmem:[%s777_s1 + $0x20] sm:$0xff]   ;;  %v646_v6 = vld [vmem:[%s777_s1 + $0x18] sm:$0xff]   ;;  %v647_v7 = vld [vmem:[%s777_s1 + $0x10] sm:$0xff]  }
   0x3   :  { %595 = vmatpush3.bf16.msra.mxu0 %v642_v0  ;;  %634 = vmatpush3.bf16.msra.mxu1 %v642_v0  ;;  %v650_v4 = vld [vmem:[%s778_s0] sm:$0xff]   ;;  %v648_v8 = vld [vmem:[%s777_s1 + $0x8] sm:$0xff]   ;;  %v654_v12 = vld [vmem:[%s778_s0 + $0x10] sm:$0xff]  }
   0x4   :  { %596 = vmatprep.subr.bf16.mxu0 %v643_v1  ;;  %627 = vmatprep.subr.bf16.mxu1 %v643_v1  ;;  %v651_v5 = vld [vmem:[%s778_s0 + $0x20] sm:$0xff]   ;;  %v652_v10 = vld [vmem:[%s778_s0 + $0x8] sm:$0xff]   ;;  %v655_v13 = vld [vmem:[%s778_s0 + $0x30] sm:$0xff]  }
   0x5   :  { %610 = vmatprep.mubr.bf16.mxu0 %v650_v4  ;;  %618 = vmatprep.mubr.bf16.mxu1 %v651_v5  ;;  %v649_v9 = vld [vmem:[%s777_s1] sm:$0xff]   ;;  %v653_v11 = vld [vmem:[%s778_s0 + $0x28] sm:$0xff]   ;;  %v656_v14 = vld [vmem:[%s778_s0 + $0x18] sm:$0xff]  }
   0x6   :  { %v657_v15 = vld [vmem:[%s778_s0 + $0x38] sm:$0xff]   ;;  %v729_v16 = vld [vmem:[%s779_s2] ss:$0 sm:$0xff] }
   0x7   :  { %597 = vmatpush3.bf16.msra.mxu0 %v643_v1  ;;  %635 = vmatpush3.bf16.msra.mxu1 %v643_v1 }
   0x8   :  { %598 = vmatprep.subr.bf16.mxu0 %v644_v2  ;;  %628 = vmatprep.subr.bf16.mxu1 %v644_v2 }
   0xb   :  { %599 = vmatpush3.bf16.msra.mxu0 %v644_v2  ;;  %636 = vmatpush3.bf16.msra.mxu1 %v644_v2 }
   0xc   :  { %600 = vmatprep.subr.bf16.mxu0 %v645_v3  ;;  %629 = vmatprep.subr.bf16.mxu1 %v645_v3 }
   0xf   :  { %601 = vmatpush3.bf16.msra.mxu0 %v645_v3  ;;  %637 = vmatpush3.bf16.msra.mxu1 %v645_v3 }
  0x10   :  { %602 = vmatprep.subr.bf16.mxu0 %v646_v6  ;;  %630 = vmatprep.subr.bf16.mxu1 %v646_v6 }
  0x13   :  { %603 = vmatpush3.bf16.msra.mxu0 %v646_v6  ;;  %638 = vmatpush3.bf16.msra.mxu1 %v646_v6 }
  0x14   :  { %604 = vmatprep.subr.bf16.mxu0 %v647_v7  ;;  %631 = vmatprep.subr.bf16.mxu1 %v647_v7 }
  0x17   :  { %605 = vmatpush3.bf16.msra.mxu0 %v647_v7  ;;  %639 = vmatpush3.bf16.msra.mxu1 %v647_v7 }
  0x18   :  { %606 = vmatprep.subr.bf16.mxu0 %v648_v8  ;;  %632 = vmatprep.subr.bf16.mxu1 %v648_v8 }
  0x1b   :  { %607 = vmatpush3.bf16.msra.mxu0 %v648_v8  ;;  %640 = vmatpush3.bf16.msra.mxu1 %v648_v8 }
  0x1c   :  { %608 = vmatprep.subr.bf16.mxu0 %v649_v9  ;;  %633 = vmatprep.subr.bf16.mxu1 %v649_v9 }
  0x1f   :  { %609 = vmatpush3.bf16.msra.mxu0 %v649_v9  ;;  %641 = vmatpush3.bf16.msra.mxu1 %v649_v9 }
  0x22   :  { %611 = vmatmul.mubr.bf16.vlgmr.msra.gmra.mxu0 %v652_v10  ;;  %619 = vmatmul.mubr.bf16.vlgmr.msra.gmra.mxu1 %v653_v11 }
  0x23   :  { %614 = vmatprep.mubr.bf16.mxu0 %v654_v12  ;;  %622 = vmatprep.mubr.bf16.mxu1 %v655_v13 }
  0x2a   :  { %615 = vmatmul.mubr.bf16.gmra.mxu0 %v656_v14  ;;  %623 = vmatmul.mubr.bf16.gmra.mxu1 %v657_v15 }
  0xe2   :  { %v612_v17 = vpop.f32.mrf.mxu0  ;;  %v620_v18 = vpop.f32.mrf.mxu1 }
  0xe3   :  { %v336_v19 = vadd.f32 %v612_v17, %v729_v16  ;;  %v344_v20 = vadd.f32 %v620_v18, %v729_v16 }
  0xe4   :  { %v213_v21 = vpop.f32.mrf.mxu0  ;;  %v245_v22 = vpop.f32.mrf.mxu1 }
  0xe5   :  { %vm352_vm0 = vcmp.gt.f32.partialorder %v336_v19, 0.0  ;;  %v368_v23 = vmul.f32 0.2, %v336_v19  ;;  %vm360_vm1 = vcmp.gt.f32.partialorder %v344_v20, 0.0  ;;  %v376_v24 = vmul.f32 0.2, %v344_v20 }
  0xe6   :  { %v334_v25 = vadd.f32 %v729_v16, %v213_v21  ;;  %v342_v26 = vadd.f32 %v729_v16, %v245_v22  ;;  %v613_v27 = vpop.f32.mrf.mxu0  ;;  %v621_v28 = vpop.f32.mrf.mxu1 }
  0xe7   :  { %v337_v29 = vadd.f32 %v613_v27, %v729_v16  ;;  %v345_v30 = vadd.f32 %v621_v28, %v729_v16  ;;  %v384_v31 = vsel %vm352_vm0, %v336_v19, %v368_v23  ;;  %v392_v32 = vsel %vm360_vm1, %v344_v20, %v376_v24 }
  0xe8   :  { %vm350_vm2 = vcmp.gt.f32.partialorder %v334_v25, 0.0  ;;  %v366_v33 = vmul.f32 0.2, %v334_v25  ;;  %v216_v34 = vpop.f32.mrf.mxu0  ;;  %v248_v35 = vpop.f32.mrf.mxu1  ;;  %vm358_vm5 = vcmp.gt.f32.partialorder %v342_v26, 0.0  ;;  %v374_v38 = vmul.f32 0.2, %v342_v26 }
  0xe9   :  { %vm353_vm3 = vcmp.gt.f32.partialorder %v337_v29, 0.0  ;;  %v369_v36 = vmul.f32 0.2, %v337_v29  ;;  %vm361_vm4 = vcmp.gt.f32.partialorder %v345_v30, 0.0  ;;  %v377_v37 = vmul.f32 0.2, %v345_v30 }
  0xea   :  { %v335_v39 = vadd.f32 %v729_v16, %v216_v34  ;;  %v343_v40 = vadd.f32 %v729_v16, %v248_v35  ;;  %v616_v41 = vpop.f32.mrf.mxu0  ;;  %v624_v42 = vpop.f32.mrf.mxu1  ;;  %v382_v53 = vsel %vm350_vm2, %v334_v25, %v366_v33  ;;  %v390_v58 = vsel %vm358_vm5, %v342_v26, %v374_v38 }
  0xeb   :  { %v385_v43 = vsel %vm353_vm3, %v337_v29, %v369_v36  ;;  %v393_v44 = vsel %vm361_vm4, %v345_v30, %v377_v37  ;;  %v340_v45 = vadd.f32 %v616_v41, %v729_v16  ;;  %v348_v46 = vadd.f32 %v624_v42, %v729_v16 }
  0xec   :  { %v539_v47 = vpack.c.bf16 %v385_v43, %v384_v31  ;;  %v559_v48 = vpack.c.bf16 %v393_v44, %v392_v32  ;;  %vm351_vm6 = vcmp.gt.f32.partialorder %v335_v39, 0.0  ;;  %v367_v49 = vmul.f32 0.2, %v335_v39  ;;  %v229_v50 = vpop.f32.mrf.mxu0  ;;  %v261_v51 = vpop.f32.mrf.mxu1 }
  0xed   :  { %vm359_vm7 = vcmp.gt.f32.partialorder %v343_v40, 0.0  ;;  %v375_v52 = vmul.f32 0.2, %v343_v40  ;;  %v338_v55 = vadd.f32 %v729_v16, %v229_v50  ;;  %v346_v61 = vadd.f32 %v729_v16, %v261_v51 }
  0xee   :  { %571 = vst [vmem:[%s780_s3 + $0x8] sm:$0xff] %v539_v47   ;;  %575 = vst [vmem:[%s780_s3 + $0x28] sm:$0xff] %v559_v48   ;;  %v383_v54 = vsel %vm351_vm6, %v335_v39, %v367_v49  ;;  %v617_v56 = vpop.f32.mrf.mxu0  ;;  %v625_v57 = vpop.f32.mrf.mxu1  ;;  %vm356_vm8 = vcmp.gt.f32.partialorder %v340_v45, 0.0  ;;  %v372_v63 = vmul.f32 0.2, %v340_v45  ;;  %vm364_vm9 = vcmp.gt.f32.partialorder %v348_v46, 0.0 }
  0xef   :  { %v534_v59 = vpack.c.bf16 %v383_v54, %v382_v53  ;;  %v391_v60 = vsel %vm359_vm7, %v343_v40, %v375_v52  ;;  %v380_v2 = vmul.f32 0.2, %v348_v46  ;;  %vm354_vm10 = vcmp.gt.f32.partialorder %v338_v55, 0.0 }
  0xf0   :  { %v554_v62 = vpack.c.bf16 %v391_v60, %v390_v58  ;;  %v232_v0 = vpop.f32.mrf.mxu0  ;;  %v264_v1 = vpop.f32.mrf.mxu1  ;;  %v341_v3 = vadd.f32 %v617_v56, %v729_v16  ;;  %v349_v4 = vadd.f32 %v625_v57, %v729_v16  ;;  %v370_v5 = vmul.f32 0.2, %v338_v55 }
  0xf1   :  { %535 = vst [vmem:[%s780_s3] sm:$0xff] %v534_v59   ;;  %vm362_vm11 = vcmp.gt.f32.partialorder %v346_v61, 0.0  ;;  %v339_v6 = vadd.f32 %v729_v16, %v232_v0  ;;  %v347_v7 = vadd.f32 %v729_v16, %v264_v1  ;;  %v378_v8 = vmul.f32 0.2, %v346_v61 }
  0xf2   :  { %574 = vst [vmem:[%s780_s3 + $0x20] sm:$0xff] %v554_v62   ;;  %vm357_vm12 = vcmp.gt.f32.partialorder %v341_v3, 0.0  ;;  %v373_v9 = vmul.f32 0.2, %v341_v3  ;;  %vm365_vm13 = vcmp.gt.f32.partialorder %v349_v4, 0.0  ;;  %v388_v12 = vsel %vm356_vm8, %v340_v45, %v372_v63 }
  0xf3   :  { %v381_v10 = vmul.f32 0.2, %v349_v4  ;;  %vm355_vm14 = vcmp.gt.f32.partialorder %v339_v6, 0.0  ;;  %v371_v11 = vmul.f32 0.2, %v339_v6  ;;  %vm363_vm15 = vcmp.gt.f32.partialorder %v347_v7, 0.0 }
  0xf4   :  { %v396_v13 = vsel %vm364_vm9, %v348_v46, %v380_v2  ;;  %v389_v14 = vsel %vm357_vm12, %v341_v3, %v373_v9  ;;  %v379_v15 = vmul.f32 0.2, %v347_v7  ;;  %v386_v17 = vsel %vm354_vm10, %v338_v55, %v370_v5 }
  0xf5   :  { %v549_v18 = vpack.c.bf16 %v389_v14, %v388_v12  ;;  %v397_v19 = vsel %vm365_vm13, %v349_v4, %v381_v10  ;;  %v387_v20 = vsel %vm355_vm14, %v339_v6, %v371_v11  ;;  %v394_v16 = vsel %vm362_vm11, %v346_v61, %v378_v8 }
  0xf6   :  { %v569_v21 = vpack.c.bf16 %v397_v19, %v396_v13  ;;  %v544_v22 = vpack.c.bf16 %v387_v20, %v386_v17  ;;  %v395_v23 = vsel %vm363_vm15, %v347_v7, %v379_v15 }
  0xf7   :  { %573 = vst [vmem:[%s780_s3 + $0x18] sm:$0xff] %v549_v18   ;;  %v564_v24 = vpack.c.bf16 %v395_v23, %v394_v16 }
  0xf8   :  { %577 = vst [vmem:[%s780_s3 + $0x38] sm:$0xff] %v569_v21   ;;  %572 = vst [vmem:[%s780_s3 + $0x10] sm:$0xff] %v544_v22  }
  0xf9   :  { %576 = vst [vmem:[%s780_s3 + $0x30] sm:$0xff] %v564_v24  }

// kernel: jvp__.3
= control target key start
LH: loop header
LB: loop body
LE: loop exit
PB: predicated region body
PF: predicated region fallthrough
CT: control target
= control target key end

     0   :  { %s971_s1 = inlined_call_operand.vmem [shape: bf16[256,128], index: 1, kind: input, shape index: {}]   ;;  %s972_s0 = inlined_call_operand.vmem [shape: bf16[128,256], index: 0, kind: input, shape index: {}]   ;;  %s973_s2 = inlined_call_operand.vmem [shape: f32[1,128], index: 2, kind: input, shape index: {}]   ;;  %s974_s3 = inlined_call_operand.vmem [shape: bf16[128,128], index: 3, kind: output, shape index: {}]  }
   0x1   :  { %v770_v0 = vld [vmem:[%s971_s1 + $0x78] sm:$0xff]   ;;  %v772_v2 = vld [vmem:[%s971_s1 + $0x70] sm:$0xff]   ;;  %v774_v4 = vld [vmem:[%s971_s1 + $0x68] sm:$0xff]  }
   0x2   :  { %v771_v1 = vld [vmem:[%s971_s1 + $0x38] sm:$0xff]   ;;  %690 = vmatprep.subr.bf16.mxu0 %v770_v0  ;;  %754 = vmatprep.subr.bf16.mxu1 %v770_v0  ;;  %v773_v3 = vld [vmem:[%s971_s1 + $0x30] sm:$0xff]   ;;  %v775_v5 = vld [vmem:[%s971_s1 + $0x28] sm:$0xff]  }
   0x3   :  { %691 = vmatpush3.bf16.msra.mxu0 %v771_v1  ;;  %762 = vmatpush3.bf16.msra.mxu1 %v771_v1  ;;  %v776_v6 = vld [vmem:[%s971_s1 + $0x60] sm:$0xff]   ;;  %v778_v8 = vld [vmem:[%s971_s1 + $0x58] sm:$0xff]   ;;  %v780_v10 = vld [vmem:[%s971_s1 + $0x50] sm:$0xff]  }
   0x4   :  { %692 = vmatprep.subr.bf16.mxu0 %v772_v2  ;;  %755 = vmatprep.subr.bf16.mxu1 %v772_v2  ;;  %v777_v7 = vld [vmem:[%s971_s1 + $0x20] sm:$0xff]   ;;  %v779_v9 = vld [vmem:[%s971_s1 + $0x18] sm:$0xff]   ;;  %v781_v13 = vld [vmem:[%s971_s1 + $0x10] sm:$0xff]  }
   0x5   :  { %v788_v11 = vld [vmem:[%s972_s0 + $0x4] ss:$8 sps:$4 sm:$0xff]   ;;  %v786_v18 = vld [vmem:[%s972_s0] ss:$8 sps:$4 sm:$0xff]   ;;  %v792_v20 = vld [vmem:[%s972_s0 + $0x14] ss:$8 sps:$4 sm:$0xff]  }
   0x6   :  { %v791_v12 = vld [vmem:[%s972_s0 + $0x44] ss:$8 sps:$4 sm:$0xff]   ;;  %307 = vmatprep.mubr.bf16.mxu0 %v788_v11  ;;  %v789_v19 = vld [vmem:[%s972_s0 + $0x40] ss:$8 sps:$4 sm:$0xff]   ;;  %v794_v21 = vld [vmem:[%s972_s0 + $0x54] ss:$8 sps:$4 sm:$0xff]  }
   0x7   :  { %693 = vmatpush3.bf16.msra.mxu0 %v773_v3  ;;  %763 = vmatpush3.bf16.msra.mxu1 %v773_v3  ;;  %v782_v14 = vld [vmem:[%s971_s1 + $0x48] sm:$0xff]   ;;  %v784_v16 = vld [vmem:[%s971_s1 + $0x40] sm:$0xff]   ;;  %v796_v22 = vld [vmem:[%s972_s0 + $0x10] ss:$8 sps:$4 sm:$0xff]  }
   0x8   :  { %694 = vmatprep.subr.bf16.mxu0 %v774_v4  ;;  %756 = vmatprep.subr.bf16.mxu1 %v774_v4  ;;  %v783_v15 = vld [vmem:[%s971_s1 + $0x8] sm:$0xff]   ;;  %v785_v17 = vld [vmem:[%s971_s1] sm:$0xff]   ;;  %v797_v23 = vld [vmem:[%s972_s0 + $0x50] ss:$8 sps:$4 sm:$0xff]  }
   0x9   :  { %339 = vmatprep.mubr.bf16.mxu1 %v791_v12  ;;  %v798_v24 = vld [vmem:[%s972_s0 + $0x24] ss:$8 sps:$4 sm:$0xff]   ;;  %v802_v26 = vld [vmem:[%s972_s0 + $0x20] ss:$8 sps:$4 sm:$0xff]   ;;  %v804_v28 = vld [vmem:[%s972_s0 + $0x34] ss:$8 sps:$4 sm:$0xff]  }
   0xa   :  { %v800_v25 = vld [vmem:[%s972_s0 + $0x64] ss:$8 sps:$4 sm:$0xff]   ;;  %v803_v27 = vld [vmem:[%s972_s0 + $0x60] ss:$8 sps:$4 sm:$0xff]   ;;  %v806_v29 = vld [vmem:[%s972_s0 + $0x74] ss:$8 sps:$4 sm:$0xff]  }
   0xb   :  { %695 = vmatpush3.bf16.msra.mxu0 %v775_v5  ;;  %764 = vmatpush3.bf16.msra.mxu1 %v775_v5  ;;  %v808_v30 = vld [vmem:[%s972_s0 + $0x30] ss:$8 sps:$4 sm:$0xff]   ;;  %v929_v35 = vld [vmem:[%s973_s2] ss:$0 sm:$0xff] }
   0xc   :  { %696 = vmatprep.subr.bf16.mxu0 %v776_v6  ;;  %757 = vmatprep.subr.bf16.mxu1 %v776_v6  ;;  %v809_v31 = vld [vmem:[%s972_s0 + $0x70] ss:$8 sps:$4 sm:$0xff]  }
   0xf   :  { %697 = vmatpush3.bf16.msra.mxu0 %v777_v7  ;;  %765 = vmatpush3.bf16.msra.mxu1 %v777_v7 }
  0x10   :  { %698 = vmatprep.subr.bf16.mxu0 %v778_v8  ;;  %758 = vmatprep.subr.bf16.mxu1 %v778_v8 }
  0x13   :  { %699 = vmatpush3.bf16.msra.mxu0 %v779_v9  ;;  %766 = vmatpush3.bf16.msra.mxu1 %v779_v9 }
  0x14   :  { %700 = vmatprep.subr.bf16.mxu0 %v780_v10  ;;  %759 = vmatprep.subr.bf16.mxu1 %v780_v10 }
  0x17   :  { %701 = vmatpush3.bf16.msra.mxu0 %v781_v13  ;;  %767 = vmatpush3.bf16.msra.mxu1 %v781_v13 }
  0x18   :  { %702 = vmatprep.subr.bf16.mxu0 %v782_v14  ;;  %760 = vmatprep.subr.bf16.mxu1 %v782_v14 }
  0x1b   :  { %703 = vmatpush3.bf16.msra.mxu0 %v783_v15  ;;  %768 = vmatpush3.bf16.msra.mxu1 %v783_v15 }
  0x1c   :  { %704 = vmatprep.subr.bf16.mxu0 %v784_v16  ;;  %761 = vmatprep.subr.bf16.mxu1 %v784_v16 }
  0x1f   :  { %705 = vmatpush3.bf16.msra.mxu0 %v785_v17  ;;  %769 = vmatpush3.bf16.msra.mxu1 %v785_v17 }
  0x22   :  { %308 = vmatmul.mubr.bf16.vlgmr.msra.gmra.mxu0 %v786_v18  ;;  %340 = vmatmul.mubr.bf16.vlgmr.msra.gmra.mxu1 %v789_v19 }
  0x23   :  { %315 = vmatprep.mubr.bf16.mxu0 %v792_v20  ;;  %347 = vmatprep.mubr.bf16.mxu1 %v794_v21 }
  0x2a   :  { %316 = vmatmul.mubr.bf16.gmra.mxu0 %v796_v22  ;;  %348 = vmatmul.mubr.bf16.gmra.mxu1 %v797_v23 }
  0x2b   :  { %323 = vmatprep.mubr.bf16.mxu0 %v798_v24  ;;  %355 = vmatprep.mubr.bf16.mxu1 %v800_v25 }
  0x32   :  { %324 = vmatmul.mubr.bf16.gmra.mxu0 %v802_v26  ;;  %356 = vmatmul.mubr.bf16.gmra.mxu1 %v803_v27 }
  0x33   :  { %331 = vmatprep.mubr.bf16.mxu0 %v804_v28  ;;  %363 = vmatprep.mubr.bf16.mxu1 %v806_v29 }
  0x3a   :  { %332 = vmatmul.mubr.bf16.gmra.mxu0 %v808_v30  ;;  %364 = vmatmul.mubr.bf16.gmra.mxu1 %v809_v31 }
  0xe2   :  { %v706_v32 = vpop.f32.mrf.mxu0  ;;  %v730_v33 = vpop.f32.mrf.mxu1 }
  0xe4   :  { %v707_v34 = vpop.f32.mrf.mxu0  ;;  %v731_v36 = vpop.f32.mrf.mxu1 }
  0xe5   :  { %v708_v37 = vadd.f32 %v707_v34, %v706_v32  ;;  %v732_v38 = vadd.f32 %v731_v36, %v730_v33 }
  0xe6   :  { %v709_v39 = vpop.f32.mrf.mxu0  ;;  %v733_v40 = vpop.f32.mrf.mxu1 }
  0xe7   :  { %v430_v41 = vadd.f32 %v708_v37, %v929_v35  ;;  %v438_v42 = vadd.f32 %v732_v38, %v929_v35 }
  0xe8   :  { %v710_v43 = vpop.f32.mrf.mxu0  ;;  %v734_v44 = vpop.f32.mrf.mxu1 }
  0xe9   :  { %v711_v45 = vadd.f32 %v710_v43, %v709_v39  ;;  %v735_v46 = vadd.f32 %v734_v44, %v733_v40  ;;  %v462_v49 = vmul.f32 0.2, %v430_v41  ;;  %v470_v50 = vmul.f32 0.2, %v438_v42 }
  0xea   :  { %v712_v47 = vpop.f32.mrf.mxu0  ;;  %v736_v48 = vpop.f32.mrf.mxu1  ;;  %vm446_vm0 = vcmp.gt.f32.partialorder %v430_v41, 0.0  ;;  %vm454_vm1 = vcmp.gt.f32.partialorder %v438_v42, 0.0 }
  0xeb   :  { %v431_v51 = vadd.f32 %v711_v45, %v929_v35  ;;  %v439_v52 = vadd.f32 %v735_v46, %v929_v35  ;;  %v478_v61 = vsel %vm446_vm0, %v430_v41, %v462_v49  ;;  %v486_v62 = vsel %vm454_vm1, %v438_v42, %v470_v50 }
  0xec   :  { %v713_v53 = vpop.f32.mrf.mxu0  ;;  %v737_v54 = vpop.f32.mrf.mxu1 }
  0xed   :  { %v714_v55 = vadd.f32 %v713_v53, %v712_v47  ;;  %v738_v56 = vadd.f32 %v737_v54, %v736_v48  ;;  %vm447_vm2 = vcmp.gt.f32.partialorder %v431_v51, 0.0  ;;  %v463_v57 = vmul.f32 0.2, %v431_v51 }
  0xee   :  { %vm455_vm3 = vcmp.gt.f32.partialorder %v439_v52, 0.0  ;;  %v471_v58 = vmul.f32 0.2, %v439_v52  ;;  %v715_v59 = vpop.f32.mrf.mxu0  ;;  %v739_v60 = vpop.f32.mrf.mxu1 }
  0xef   :  { %v479_v63 = vsel %vm447_vm2, %v431_v51, %v463_v57  ;;  %v432_v1 = vadd.f32 %v714_v55, %v929_v35  ;;  %v440_v2 = vadd.f32 %v738_v56, %v929_v35 }
  0xf0   :  { %v487_v0 = vsel %vm455_vm3, %v439_v52, %v471_v58  ;;  %v716_v3 = vpop.f32.mrf.mxu0  ;;  %v740_v4 = vpop.f32.mrf.mxu1  ;;  %v646_v5 = vpack.c.bf16 %v479_v63, %v478_v61 }
  0xf1   :  { %v666_v6 = vpack.c.bf16 %v487_v0, %v486_v62  ;;  %v717_v7 = vadd.f32 %v716_v3, %v715_v59  ;;  %v741_v8 = vadd.f32 %v740_v4, %v739_v60  ;;  %v464_v11 = vmul.f32 0.2, %v432_v1 }
  0xf2   :  { %v718_v9 = vpop.f32.mrf.mxu0  ;;  %v742_v10 = vpop.f32.mrf.mxu1  ;;  %647 = vst [vmem:[%s974_s3] sm:$0xff] %v646_v5   ;;  %v472_v12 = vmul.f32 0.2, %v440_v2  ;;  %vm448_vm4 = vcmp.gt.f32.partialorder %v432_v1, 0.0  ;;  %vm456_vm5 = vcmp.gt.f32.partialorder %v440_v2, 0.0 }
  0xf3   :  { %686 = vst [vmem:[%s974_s3 + $0x20] sm:$0xff] %v666_v6   ;;  %v433_v13 = vadd.f32 %v717_v7, %v929_v35  ;;  %v441_v14 = vadd.f32 %v741_v8, %v929_v35  ;;  %v480_v25 = vsel %vm448_vm4, %v432_v1, %v464_v11 }
  0xf4   :  { %v719_v15 = vpop.f32.mrf.mxu0  ;;  %v743_v16 = vpop.f32.mrf.mxu1  ;;  %v488_v26 = vsel %vm456_vm5, %v440_v2, %v472_v12 }
  0xf5   :  { %v720_v17 = vadd.f32 %v719_v15, %v718_v9  ;;  %v744_v18 = vadd.f32 %v743_v16, %v742_v10  ;;  %vm449_vm6 = vcmp.gt.f32.partialorder %v433_v13, 0.0  ;;  %v465_v19 = vmul.f32 0.2, %v433_v13 }
  0xf6   :  { %vm457_vm7 = vcmp.gt.f32.partialorder %v441_v14, 0.0  ;;  %v473_v20 = vmul.f32 0.2, %v441_v14  ;;  %v721_v21 = vpop.f32.mrf.mxu0  ;;  %v745_v22 = vpop.f32.mrf.mxu1 }
  0xf7   :  { %v434_v23 = vadd.f32 %v720_v17, %v929_v35  ;;  %v442_v24 = vadd.f32 %v744_v18, %v929_v35  ;;  %v481_v27 = vsel %vm449_vm6, %v433_v13, %v465_v19 }
  0xf8   :  { %v489_v28 = vsel %vm457_vm7, %v441_v14, %v473_v20  ;;  %v722_v29 = vpop.f32.mrf.mxu0  ;;  %v746_v30 = vpop.f32.mrf.mxu1  ;;  %v651_v31 = vpack.c.bf16 %v481_v27, %v480_v25 }
  0xf9   :  { %v671_v32 = vpack.c.bf16 %v489_v28, %v488_v26  ;;  %v723_v33 = vadd.f32 %v722_v29, %v721_v21  ;;  %v747_v34 = vadd.f32 %v746_v30, %v745_v22  ;;  %v466_v38 = vmul.f32 0.2, %v434_v23 }
  0xfa   :  { %v724_v36 = vpop.f32.mrf.mxu0  ;;  %v748_v37 = vpop.f32.mrf.mxu1  ;;  %683 = vst [vmem:[%s974_s3 + $0x8] sm:$0xff] %v651_v31   ;;  %v474_v39 = vmul.f32 0.2, %v442_v24  ;;  %vm450_vm8 = vcmp.gt.f32.partialorder %v434_v23, 0.0  ;;  %vm458_vm9 = vcmp.gt.f32.partialorder %v442_v24, 0.0 }
  0xfb   :  { %687 = vst [vmem:[%s974_s3 + $0x28] sm:$0xff] %v671_v32   ;;  %v435_v40 = vadd.f32 %v723_v33, %v929_v35  ;;  %v443_v41 = vadd.f32 %v747_v34, %v929_v35  ;;  %v482_v50 = vsel %vm450_vm8, %v434_v23, %v466_v38 }
  0xfc   :  { %v725_v42 = vpop.f32.mrf.mxu0  ;;  %v749_v43 = vpop.f32.mrf.mxu1  ;;  %v490_v51 = vsel %vm458_vm9, %v442_v24, %v474_v39 }
  0xfd   :  { %v726_v44 = vadd.f32 %v725_v42, %v724_v36  ;;  %v750_v45 = vadd.f32 %v749_v43, %v748_v37  ;;  %vm451_vm10 = vcmp.gt.f32.partialorder %v435_v40, 0.0  ;;  %v467_v46 = vmul.f32 0.2, %v435_v40 }
  0xfe   :  { %vm459_vm11 = vcmp.gt.f32.partialorder %v443_v41, 0.0  ;;  %v475_v47 = vmul.f32 0.2, %v443_v41  ;;  %v727_v48 = vpop.f32.mrf.mxu0  ;;  %v751_v49 = vpop.f32.mrf.mxu1 }
  0xff   :  { %v483_v52 = vsel %vm451_vm10, %v435_v40, %v467_v46  ;;  %v436_v54 = vadd.f32 %v726_v44, %v929_v35  ;;  %v444_v55 = vadd.f32 %v750_v45, %v929_v35 }
 0x100   :  { %v491_v53 = vsel %vm459_vm11, %v443_v41, %v475_v47  ;;  %v728_v56 = vpop.f32.mrf.mxu0  ;;  %v752_v57 = vpop.f32.mrf.mxu1  ;;  %v656_v58 = vpack.c.bf16 %v483_v52, %v482_v50 }
 0x101   :  { %v676_v59 = vpack.c.bf16 %v491_v53, %v490_v51  ;;  %v729_v60 = vadd.f32 %v728_v56, %v727_v48  ;;  %v753_v61 = vadd.f32 %v752_v57, %v751_v49  ;;  %v468_v62 = vmul.f32 0.2, %v436_v54 }
 0x102   :  { %684 = vst [vmem:[%s974_s3 + $0x10] sm:$0xff] %v656_v58   ;;  %v476_v63 = vmul.f32 0.2, %v444_v55  ;;  %vm452_vm12 = vcmp.gt.f32.partialorder %v436_v54, 0.0  ;;  %vm460_vm13 = vcmp.gt.f32.partialorder %v444_v55, 0.0 }
 0x103   :  { %688 = vst [vmem:[%s974_s3 + $0x30] sm:$0xff] %v676_v59   ;;  %v437_v0 = vadd.f32 %v729_v60, %v929_v35  ;;  %v445_v1 = vadd.f32 %v753_v61, %v929_v35  ;;  %v484_v4 = vsel %vm452_vm12, %v436_v54, %v468_v62 }
 0x104   :  { %v492_v5 = vsel %vm460_vm13, %v444_v55, %v476_v63 }
 0x105   :  { %vm453_vm14 = vcmp.gt.f32.partialorder %v437_v0, 0.0  ;;  %v469_v2 = vmul.f32 0.2, %v437_v0  ;;  %vm461_vm15 = vcmp.gt.f32.partialorder %v445_v1, 0.0  ;;  %v477_v3 = vmul.f32 0.2, %v445_v1 }
 0x107   :  { %v485_v6 = vsel %vm453_vm14, %v437_v0, %v469_v2  ;;  %v493_v7 = vsel %vm461_vm15, %v445_v1, %v477_v3 }
 0x108   :  { %v661_v8 = vpack.c.bf16 %v485_v6, %v484_v4  ;;  %v681_v9 = vpack.c.bf16 %v493_v7, %v492_v5 }
 0x10a   :  { %685 = vst [vmem:[%s974_s3 + $0x18] sm:$0xff] %v661_v8   ;;  %689 = vst [vmem:[%s974_s3 + $0x38] sm:$0xff] %v681_v9  }

// kernel: wgan_gp_forward.10
= control target key start
LH: loop header
LB: loop body
LE: loop exit
PB: predicated region body
PF: predicated region fallthrough
CT: control target
= control target key end

     0   :  { %s1091_s12 = smov 0   ;;  %s1093_s13 = smov 0   ;;  %s1202_s0 = inlined_call_operand.vmem [shape: bf16[256,128], index: 0, kind: input, shape index: {}]   ;;  %s1203_s1 = inlined_call_operand.vmem [shape: bf16[128,128], index: 1, kind: input, shape index: {}]   ;;  %s1204_s2 = inlined_call_operand.vmem [shape: f32[1,128], index: 2, kind: input, shape index: {}]   ;;  %s1205_s3 = inlined_call_operand.vmem [shape: bf16[256,128], index: 3, kind: output, shape index: {}]  }
   0x1   :  { %s1095_s14 = smov 0  }
   0x2 LB: > { %s32_s15 = sadd.s32 1, %s1065_s13  ;;  %p840_p0 = scmp.ge.s32.totalorder %s1069_s14, 1  ;;  %s1069_s14 = sphi %s1095_s14, %s13_s14   ;;  %s1065_s13 = sphi %s1093_s13, %s1207_s13   ;;  %s1061_s12 = sphi %s1091_s12, %s1206_s12  }
   0x3   : > { %p34_p1 = scmp.ge.s32.totalorder %s32_s15, 2  ;;  %p188_p2 = scmp.lt.s32.totalorder %s1069_s14, 3 }
   0x5   : > { %s1209_s15 = smov (%p34_p1, %s32_s15), 0  ;;  %p189_p3 = pnand %p840_p0, %p188_p2 }
   0x6   : > { %s841_s18 = sshll.u32 (!%p189_p3), %s1061_s12, 4 }
   0x7   : > { %192 = sbr.rel (%p189_p3) target bundleno = 261 (0x105), region = 32  ;;  %p230_p4 = scmp.lt.s32.totalorder (!%p189_p3), %s841_s18, 31 }
   0xc   : > { %v1031_v0 = vld [vmem:[%s1203_s1 + $0x38] sm:$0xff]   ;;  %v1032_v1 = vld [vmem:[%s1203_s1 + $0x30] sm:$0xff]   ;;  %s1211_s18 = smov (!%p230_p4, %s841_s18), 31  ;;  %v1033_v2 = vld [vmem:[%s1203_s1 + $0x28] sm:$0xff]  }
   0xd   : > { %959 = vmatprep.subr.bf16.mxu0 %v1031_v0  ;;  %991 = vmatprep.subr.bf16.mxu1 %v1031_v0  ;;  %s842_s23 = sshll.u32 %s1211_s18, 2  ;;  %v1034_v3 = vld [vmem:[%s1203_s1 + $0x20] sm:$0xff]   ;;  %v1035_v6 = vld [vmem:[%s1203_s1 + $0x18] sm:$0xff]   ;;  %v1036_v7 = vld [vmem:[%s1203_s1 + $0x10] sm:$0xff]  }
   0xe   : > { %960 = vmatpush3.bf16.msra.mxu0 %v1031_v0  ;;  %999 = vmatpush3.bf16.msra.mxu1 %v1031_v0  ;;  %s1126_s26 = scalar_lea.vmem %s1202_s0, %s842_s23  ;;  %v1037_v8 = vld [vmem:[%s1203_s1 + $0x8] sm:$0xff]   ;;  %v1038_v9 = vld [vmem:[%s1203_s1] sm:$0xff]   ;;  %s1169_s17 = scalar_lea.vmem %s1205_s3, %s842_s23 }
   0xf   : > { %961 = vmatprep.subr.bf16.mxu0 %v1032_v1  ;;  %992 = vmatprep.subr.bf16.mxu1 %v1032_v1  ;;  %v1039_v4 = vld [vmem:[%s1126_s26] sm:$0xff]   ;;  %v1041_v10 = vld [vmem:[%s1126_s26 + $0x8] sm:$0xff]   ;;  %v1043_v12 = vld [vmem:[%s1126_s26 + $0x10] sm:$0xff]  }
  0x10   : > { %v1040_v5 = vld [vmem:[%s1126_s26 + $0x20] sm:$0xff]   ;;  %975 = vmatprep.mubr.bf16.mxu0 %v1039_v4  ;;  %v1042_v11 = vld [vmem:[%s1126_s26 + $0x28] sm:$0xff]   ;;  %v1044_v13 = vld [vmem:[%s1126_s26 + $0x30] sm:$0xff]  }
  0x11   : > { %983 = vmatprep.mubr.bf16.mxu1 %v1040_v5  ;;  %v1045_v14 = vld [vmem:[%s1126_s26 + $0x18] sm:$0xff]   ;;  %v1154_v16 = vld [vmem:[%s1204_s2] ss:$0 sm:$0xff] }
  0x12   : > { %962 = vmatpush3.bf16.msra.mxu0 %v1032_v1  ;;  %1000 = vmatpush3.bf16.msra.mxu1 %v1032_v1  ;;  %v1046_v15 = vld [vmem:[%s1126_s26 + $0x38] sm:$0xff]  }
  0x13   : > { %963 = vmatprep.subr.bf16.mxu0 %v1033_v2  ;;  %993 = vmatprep.subr.bf16.mxu1 %v1033_v2 }
  0x16   : > { %964 = vmatpush3.bf16.msra.mxu0 %v1033_v2  ;;  %1001 = vmatpush3.bf16.msra.mxu1 %v1033_v2 }
  0x17   : > { %965 = vmatprep.subr.bf16.mxu0 %v1034_v3  ;;  %994 = vmatprep.subr.bf16.mxu1 %v1034_v3 }
  0x1a   : > { %966 = vmatpush3.bf16.msra.mxu0 %v1034_v3  ;;  %1002 = vmatpush3.bf16.msra.mxu1 %v1034_v3 }
  0x1b   : > { %967 = vmatprep.subr.bf16.mxu0 %v1035_v6  ;;  %995 = vmatprep.subr.bf16.mxu1 %v1035_v6 }
  0x1e   : > { %968 = vmatpush3.bf16.msra.mxu0 %v1035_v6  ;;  %1003 = vmatpush3.bf16.msra.mxu1 %v1035_v6 }
  0x1f   : > { %969 = vmatprep.subr.bf16.mxu0 %v1036_v7  ;;  %996 = vmatprep.subr.bf16.mxu1 %v1036_v7 }
  0x22   : > { %970 = vmatpush3.bf16.msra.mxu0 %v1036_v7  ;;  %1004 = vmatpush3.bf16.msra.mxu1 %v1036_v7 }
  0x23   : > { %971 = vmatprep.subr.bf16.mxu0 %v1037_v8  ;;  %997 = vmatprep.subr.bf16.mxu1 %v1037_v8 }
  0x26   : > { %972 = vmatpush3.bf16.msra.mxu0 %v1037_v8  ;;  %1005 = vmatpush3.bf16.msra.mxu1 %v1037_v8 }
  0x27   : > { %973 = vmatprep.subr.bf16.mxu0 %v1038_v9  ;;  %998 = vmatprep.subr.bf16.mxu1 %v1038_v9 }
  0x2a   : > { %974 = vmatpush3.bf16.msra.mxu0 %v1038_v9  ;;  %1006 = vmatpush3.bf16.msra.mxu1 %v1038_v9 }
  0x2d   : > { %976 = vmatmul.mubr.bf16.vlgmr.msra.gmra.mxu0 %v1041_v10  ;;  %984 = vmatmul.mubr.bf16.vlgmr.msra.gmra.mxu1 %v1042_v11 }
  0x2e   : > { %979 = vmatprep.mubr.bf16.mxu0 %v1043_v12  ;;  %987 = vmatprep.mubr.bf16.mxu1 %v1044_v13 }
  0x35   : > { %980 = vmatmul.mubr.bf16.gmra.mxu0 %v1045_v14  ;;  %988 = vmatmul.mubr.bf16.gmra.mxu1 %v1046_v15 }
  0xed   : > { %v977_v17 = vpop.f32.mrf.mxu0  ;;  %v985_v18 = vpop.f32.mrf.mxu1 }
  0xee   : > { %v581_v19 = vadd.f32 %v977_v17, %v1154_v16  ;;  %v589_v20 = vadd.f32 %v985_v18, %v1154_v16 }
  0xef   : > { %v458_v21 = vpop.f32.mrf.mxu0  ;;  %v490_v22 = vpop.f32.mrf.mxu1 }
  0xf0   : > { %vm597_vm0 = vcmp.gt.f32.partialorder %v581_v19, 0.0  ;;  %v613_v23 = vmul.f32 0.2, %v581_v19  ;;  %vm605_vm1 = vcmp.gt.f32.partialorder %v589_v20, 0.0  ;;  %v621_v24 = vmul.f32 0.2, %v589_v20 }
  0xf1   : > { %v579_v25 = vadd.f32 %v1154_v16, %v458_v21  ;;  %v587_v26 = vadd.f32 %v1154_v16, %v490_v22  ;;  %v978_v27 = vpop.f32.mrf.mxu0  ;;  %v986_v28 = vpop.f32.mrf.mxu1 }
  0xf2   : > { %v582_v29 = vadd.f32 %v978_v27, %v1154_v16  ;;  %v590_v30 = vadd.f32 %v986_v28, %v1154_v16  ;;  %v629_v31 = vsel %vm597_vm0, %v581_v19, %v613_v23  ;;  %v637_v32 = vsel %vm605_vm1, %v589_v20, %v621_v24 }
  0xf3   : > { %vm595_vm2 = vcmp.gt.f32.partialorder %v579_v25, 0.0  ;;  %v611_v33 = vmul.f32 0.2, %v579_v25  ;;  %v461_v34 = vpop.f32.mrf.mxu0  ;;  %v493_v35 = vpop.f32.mrf.mxu1  ;;  %vm603_vm5 = vcmp.gt.f32.partialorder %v587_v26, 0.0  ;;  %v619_v38 = vmul.f32 0.2, %v587_v26 }
  0xf4   : > { %vm598_vm3 = vcmp.gt.f32.partialorder %v582_v29, 0.0  ;;  %v614_v36 = vmul.f32 0.2, %v582_v29  ;;  %vm606_vm4 = vcmp.gt.f32.partialorder %v590_v30, 0.0  ;;  %v622_v37 = vmul.f32 0.2, %v590_v30 }
  0xf5   : > { %v580_v39 = vadd.f32 %v1154_v16, %v461_v34  ;;  %v588_v40 = vadd.f32 %v1154_v16, %v493_v35  ;;  %v981_v41 = vpop.f32.mrf.mxu0  ;;  %v989_v42 = vpop.f32.mrf.mxu1  ;;  %v627_v53 = vsel %vm595_vm2, %v579_v25, %v611_v33  ;;  %v635_v58 = vsel %vm603_vm5, %v587_v26, %v619_v38 }
  0xf6   : > { %v630_v43 = vsel %vm598_vm3, %v582_v29, %v614_v36  ;;  %v638_v44 = vsel %vm606_vm4, %v590_v30, %v622_v37  ;;  %v585_v45 = vadd.f32 %v981_v41, %v1154_v16  ;;  %v593_v46 = vadd.f32 %v989_v42, %v1154_v16 }
  0xf7   : > { %v904_v47 = vpack.c.bf16 %v630_v43, %v629_v31  ;;  %v924_v48 = vpack.c.bf16 %v638_v44, %v637_v32  ;;  %vm596_vm6 = vcmp.gt.f32.partialorder %v580_v39, 0.0  ;;  %v612_v49 = vmul.f32 0.2, %v580_v39  ;;  %v474_v50 = vpop.f32.mrf.mxu0  ;;  %v506_v51 = vpop.f32.mrf.mxu1 }
  0xf8   : > { %vm604_vm7 = vcmp.gt.f32.partialorder %v588_v40, 0.0  ;;  %v620_v52 = vmul.f32 0.2, %v588_v40  ;;  %v583_v55 = vadd.f32 %v1154_v16, %v474_v50  ;;  %v591_v61 = vadd.f32 %v1154_v16, %v506_v51 }
  0xf9   : > { %936 = vst [vmem:[%s1169_s17 + $0x8] sm:$0xff] %v904_v47   ;;  %940 = vst [vmem:[%s1169_s17 + $0x28] sm:$0xff] %v924_v48   ;;  %v628_v54 = vsel %vm596_vm6, %v580_v39, %v612_v49  ;;  %v982_v56 = vpop.f32.mrf.mxu0  ;;  %v990_v57 = vpop.f32.mrf.mxu1  ;;  %vm601_vm8 = vcmp.gt.f32.partialorder %v585_v45, 0.0  ;;  %v617_v63 = vmul.f32 0.2, %v585_v45  ;;  %vm609_vm9 = vcmp.gt.f32.partialorder %v593_v46, 0.0 }
  0xfa   : > { %v899_v59 = vpack.c.bf16 %v628_v54, %v627_v53  ;;  %v636_v60 = vsel %vm604_vm7, %v588_v40, %v620_v52  ;;  %v625_v2 = vmul.f32 0.2, %v593_v46  ;;  %vm599_vm10 = vcmp.gt.f32.partialorder %v583_v55, 0.0 }
  0xfb   : > { %v919_v62 = vpack.c.bf16 %v636_v60, %v635_v58  ;;  %v477_v0 = vpop.f32.mrf.mxu0  ;;  %v509_v1 = vpop.f32.mrf.mxu1  ;;  %v586_v3 = vadd.f32 %v982_v56, %v1154_v16  ;;  %v594_v4 = vadd.f32 %v990_v57, %v1154_v16  ;;  %v615_v5 = vmul.f32 0.2, %v583_v55 }
  0xfc   : > { %900 = vst [vmem:[%s1169_s17] sm:$0xff] %v899_v59   ;;  %vm607_vm11 = vcmp.gt.f32.partialorder %v591_v61, 0.0  ;;  %v584_v6 = vadd.f32 %v1154_v16, %v477_v0  ;;  %v592_v7 = vadd.f32 %v1154_v16, %v509_v1  ;;  %v623_v8 = vmul.f32 0.2, %v591_v61 }
  0xfd   : > { %939 = vst [vmem:[%s1169_s17 + $0x20] sm:$0xff] %v919_v62   ;;  %vm602_vm12 = vcmp.gt.f32.partialorder %v586_v3, 0.0  ;;  %v618_v9 = vmul.f32 0.2, %v586_v3  ;;  %vm610_vm13 = vcmp.gt.f32.partialorder %v594_v4, 0.0  ;;  %v633_v12 = vsel %vm601_vm8, %v585_v45, %v617_v63 }
  0xfe   : > { %v626_v10 = vmul.f32 0.2, %v594_v4  ;;  %vm600_vm14 = vcmp.gt.f32.partialorder %v584_v6, 0.0  ;;  %v616_v11 = vmul.f32 0.2, %v584_v6  ;;  %vm608_vm15 = vcmp.gt.f32.partialorder %v592_v7, 0.0 }
  0xff   : > { %v641_v13 = vsel %vm609_vm9, %v593_v46, %v625_v2  ;;  %v634_v14 = vsel %vm602_vm12, %v586_v3, %v618_v9  ;;  %v624_v15 = vmul.f32 0.2, %v592_v7  ;;  %v631_v16 = vsel %vm599_vm10, %v583_v55, %v615_v5 }
 0x100   : > { %v914_v17 = vpack.c.bf16 %v634_v14, %v633_v12  ;;  %v642_v18 = vsel %vm610_vm13, %v594_v4, %v626_v10  ;;  %v632_v19 = vsel %vm600_vm14, %v584_v6, %v616_v11  ;;  %v639_v20 = vsel %vm607_vm11, %v591_v61, %v623_v8 }
 0x101   : > { %v934_v21 = vpack.c.bf16 %v642_v18, %v641_v13  ;;  %v909_v22 = vpack.c.bf16 %v632_v19, %v631_v16  ;;  %v640_v23 = vsel %vm608_vm15, %v592_v7, %v624_v15 }
 0x102   : > { %938 = vst [vmem:[%s1169_s17 + $0x18] sm:$0xff] %v914_v17   ;;  %v929_v24 = vpack.c.bf16 %v640_v23, %v639_v20 }
 0x103   : > { %942 = vst [vmem:[%s1169_s17 + $0x38] sm:$0xff] %v934_v21   ;;  %937 = vst [vmem:[%s1169_s17 + $0x10] sm:$0xff] %v909_v22  }
 0x104   : > { %941 = vst [vmem:[%s1169_s17 + $0x30] sm:$0xff] %v929_v24  }
 0x105 PF: > { %s13_s14 = sadd.s32 1, %s1069_s14   ;;  %s1206_s12 = smov %s1065_s13 }
 0x106   : > { %p10_p5 = scmp.ge.s32.totalorder %s13_s14, 4   ;;  %s1207_s13 = smov %s1209_s15 }
 0x108   :  { %12 = sbr.rel (!%p10_p5) target bundleno = 2 (0x2), region = 76 }

// kernel: wgan_gp_forward.12
= control target key start
LH: loop header
LB: loop body
LE: loop exit
PB: predicated region body
PF: predicated region fallthrough
CT: control target
= control target key end

     0   :  { %s1341_s1 = inlined_call_operand.vmem [shape: bf16[512,128], index: 1, kind: input, shape index: {}]   ;;  %s1342_s0 = inlined_call_operand.vmem [shape: bf16[128,512], index: 0, kind: input, shape index: {}]   ;;  %s1343_s2 = inlined_call_operand.vmem [shape: f32[1,128], index: 2, kind: input, shape index: {}]   ;;  %s1344_s3 = inlined_call_operand.vmem [shape: f32[128,128], index: 3, kind: output, shape index: {}]  }
   0x1   :  { %v980_v0 = vld [vmem:[%s1341_s1 + $0x78] sm:$0xff]   ;;  %v984_v4 = vld [vmem:[%s1341_s1 + $0x70] sm:$0xff]   ;;  %v988_v8 = vld [vmem:[%s1341_s1 + $0x68] sm:$0xff]  }
   0x2   :  { %v981_v1 = vld [vmem:[%s1341_s1 + $0xf8] sm:$0xff]   ;;  %852 = vmatprep.subr.bf16.mxu0 %v980_v0  ;;  %v985_v5 = vld [vmem:[%s1341_s1 + $0xf0] sm:$0xff]   ;;  %v989_v9 = vld [vmem:[%s1341_s1 + $0xe8] sm:$0xff]  }
   0x3   :  { %v982_v2 = vld [vmem:[%s1341_s1 + $0x38] sm:$0xff]   ;;  %916 = vmatprep.subr.bf16.mxu1 %v981_v1  ;;  %v986_v6 = vld [vmem:[%s1341_s1 + $0x30] sm:$0xff]   ;;  %v990_v10 = vld [vmem:[%s1341_s1 + $0x28] sm:$0xff]  }
   0x4   :  { %v983_v3 = vld [vmem:[%s1341_s1 + $0xb8] sm:$0xff]   ;;  %853 = vmatpush3.bf16.msra.mxu0 %v982_v2  ;;  %v987_v7 = vld [vmem:[%s1341_s1 + $0xb0] sm:$0xff]   ;;  %v991_v11 = vld [vmem:[%s1341_s1 + $0xa8] sm:$0xff]  }
   0x5   :  { %917 = vmatpush3.bf16.msra.mxu1 %v983_v3  ;;  %854 = vmatprep.subr.bf16.mxu0 %v984_v4  ;;  %v992_v12 = vld [vmem:[%s1341_s1 + $0x60] sm:$0xff]   ;;  %v996_v16 = vld [vmem:[%s1341_s1 + $0x58] sm:$0xff]   ;;  %v1000_v20 = vld [vmem:[%s1341_s1 + $0x50] sm:$0xff]  }
   0x6   :  { %918 = vmatprep.subr.bf16.mxu1 %v985_v5  ;;  %v993_v13 = vld [vmem:[%s1341_s1 + $0xe0] sm:$0xff]   ;;  %v997_v17 = vld [vmem:[%s1341_s1 + $0xd8] sm:$0xff]   ;;  %v1001_v21 = vld [vmem:[%s1341_s1 + $0xd0] sm:$0xff]  }
   0x7   :  { %v994_v14 = vld [vmem:[%s1341_s1 + $0x20] sm:$0xff]   ;;  %v998_v18 = vld [vmem:[%s1341_s1 + $0x18] sm:$0xff]   ;;  %v1002_v22 = vld [vmem:[%s1341_s1 + $0x10] sm:$0xff]  }
   0x8   :  { %855 = vmatpush3.bf16.msra.mxu0 %v986_v6  ;;  %v995_v15 = vld [vmem:[%s1341_s1 + $0xa0] sm:$0xff]   ;;  %v999_v19 = vld [vmem:[%s1341_s1 + $0x98] sm:$0xff]   ;;  %v1003_v23 = vld [vmem:[%s1341_s1 + $0x90] sm:$0xff]  }
   0x9   :  { %919 = vmatpush3.bf16.msra.mxu1 %v987_v7  ;;  %856 = vmatprep.subr.bf16.mxu0 %v988_v8  ;;  %v1004_v24 = vld [vmem:[%s1341_s1 + $0x48] sm:$0xff]   ;;  %v1008_v28 = vld [vmem:[%s1341_s1 + $0x40] sm:$0xff]  }
   0xa   :  { %920 = vmatprep.subr.bf16.mxu1 %v989_v9  ;;  %v1005_v25 = vld [vmem:[%s1341_s1 + $0xc8] sm:$0xff]   ;;  %v1009_v29 = vld [vmem:[%s1341_s1 + $0xc0] sm:$0xff]  }
   0xb   :  { %v1006_v26 = vld [vmem:[%s1341_s1 + $0x8] sm:$0xff]   ;;  %v1010_v30 = vld [vmem:[%s1341_s1] sm:$0xff]  }
   0xc   :  { %857 = vmatpush3.bf16.msra.mxu0 %v990_v10  ;;  %v1007_v27 = vld [vmem:[%s1341_s1 + $0x88] sm:$0xff]   ;;  %v1011_v31 = vld [vmem:[%s1341_s1 + $0x80] sm:$0xff]  }
   0xd   :  { %921 = vmatpush3.bf16.msra.mxu1 %v991_v11  ;;  %858 = vmatprep.subr.bf16.mxu0 %v992_v12  ;;  %v1012_v32 = vld [vmem:[%s1342_s0] ss:$16 sps:$4 sm:$0xff]   ;;  %v1014_v33 = vld [vmem:[%s1342_s0 + $0x4] ss:$16 sps:$4 sm:$0xff]   ;;  %v1015_v34 = vld [vmem:[%s1342_s0 + $0x8] ss:$16 sps:$4 sm:$0xff]  }
   0xe   :  { %922 = vmatprep.subr.bf16.mxu1 %v993_v13  ;;  %v1017_v35 = vld [vmem:[%s1342_s0 + $0xc] ss:$16 sps:$4 sm:$0xff]   ;;  %531 = vmatprep.mubr.bf16.mxu0 %v1014_v33  ;;  %v1018_v36 = vld [vmem:[%s1342_s0 + $0x24] ss:$16 sps:$4 sm:$0xff]   ;;  %v1022_v38 = vld [vmem:[%s1342_s0 + $0x20] ss:$16 sps:$4 sm:$0xff]  }
   0xf   :  { %628 = vmatprep.mubr.bf16.mxu1 %v1017_v35  ;;  %v1020_v37 = vld [vmem:[%s1342_s0 + $0x2c] ss:$16 sps:$4 sm:$0xff]   ;;  %v1023_v39 = vld [vmem:[%s1342_s0 + $0x28] ss:$16 sps:$4 sm:$0xff]   ;;  %v1024_v40 = vld [vmem:[%s1342_s0 + $0x44] ss:$16 sps:$4 sm:$0xff]  }
  0x10   :  { %859 = vmatpush3.bf16.msra.mxu0 %v994_v14  ;;  %v1026_v41 = vld [vmem:[%s1342_s0 + $0x4c] ss:$16 sps:$4 sm:$0xff]   ;;  %v1028_v42 = vld [vmem:[%s1342_s0 + $0x40] ss:$16 sps:$4 sm:$0xff]   ;;  %v1029_v43 = vld [vmem:[%s1342_s0 + $0x48] ss:$16 sps:$4 sm:$0xff]  }
  0x11   :  { %923 = vmatpush3.bf16.msra.mxu1 %v995_v15  ;;  %860 = vmatprep.subr.bf16.mxu0 %v996_v16  ;;  %v1030_v44 = vld [vmem:[%s1342_s0 + $0x64] ss:$16 sps:$4 sm:$0xff]   ;;  %v1032_v45 = vld [vmem:[%s1342_s0 + $0x6c] ss:$16 sps:$4 sm:$0xff]   ;;  %v1034_v46 = vld [vmem:[%s1342_s0 + $0x60] ss:$16 sps:$4 sm:$0xff]  }
  0x12   :  { %924 = vmatprep.subr.bf16.mxu1 %v997_v17  ;;  %v1035_v47 = vld [vmem:[%s1342_s0 + $0x68] ss:$16 sps:$4 sm:$0xff]   ;;  %v1036_v48 = vld [vmem:[%s1342_s0 + $0x84] ss:$16 sps:$4 sm:$0xff]   ;;  %v1038_v49 = vld [vmem:[%s1342_s0 + $0x8c] ss:$16 sps:$4 sm:$0xff]  }
  0x13   :  { %v1040_v50 = vld [vmem:[%s1342_s0 + $0x80] ss:$16 sps:$4 sm:$0xff]   ;;  %v1041_v51 = vld [vmem:[%s1342_s0 + $0x88] ss:$16 sps:$4 sm:$0xff]   ;;  %v1042_v52 = vld [vmem:[%s1342_s0 + $0xa4] ss:$16 sps:$4 sm:$0xff]  }
  0x14   :  { %861 = vmatpush3.bf16.msra.mxu0 %v998_v18  ;;  %v1044_v53 = vld [vmem:[%s1342_s0 + $0xac] ss:$16 sps:$4 sm:$0xff]   ;;  %v1046_v54 = vld [vmem:[%s1342_s0 + $0xa0] ss:$16 sps:$4 sm:$0xff]   ;;  %v1047_v55 = vld [vmem:[%s1342_s0 + $0xa8] ss:$16 sps:$4 sm:$0xff]  }
  0x15   :  { %925 = vmatpush3.bf16.msra.mxu1 %v999_v19  ;;  %862 = vmatprep.subr.bf16.mxu0 %v1000_v20  ;;  %v1048_v56 = vld [vmem:[%s1342_s0 + $0xc4] ss:$16 sps:$4 sm:$0xff]   ;;  %v1050_v57 = vld [vmem:[%s1342_s0 + $0xcc] ss:$16 sps:$4 sm:$0xff]   ;;  %v1052_v58 = vld [vmem:[%s1342_s0 + $0xc0] ss:$16 sps:$4 sm:$0xff]  }
  0x16   :  { %926 = vmatprep.subr.bf16.mxu1 %v1001_v21  ;;  %v1053_v59 = vld [vmem:[%s1342_s0 + $0xc8] ss:$16 sps:$4 sm:$0xff]   ;;  %v1054_v60 = vld [vmem:[%s1342_s0 + $0xe4] ss:$16 sps:$4 sm:$0xff]   ;;  %v1056_v61 = vld [vmem:[%s1342_s0 + $0xec] ss:$16 sps:$4 sm:$0xff]  }
  0x17   :  { %v1058_v62 = vld [vmem:[%s1342_s0 + $0xe0] ss:$16 sps:$4 sm:$0xff]   ;;  %v1059_v63 = vld [vmem:[%s1342_s0 + $0xe8] ss:$16 sps:$4 sm:$0xff]  }
  0x18   :  { %863 = vmatpush3.bf16.msra.mxu0 %v1002_v22  ;;  %v1275_v7 = vld [vmem:[%s1343_s2] ss:$0 sm:$0xff] }
  0x19   :  { %927 = vmatpush3.bf16.msra.mxu1 %v1003_v23  ;;  %864 = vmatprep.subr.bf16.mxu0 %v1004_v24 }
  0x1a   :  { %928 = vmatprep.subr.bf16.mxu1 %v1005_v25 }
  0x1c   :  { %865 = vmatpush3.bf16.msra.mxu0 %v1006_v26 }
  0x1d   :  { %929 = vmatpush3.bf16.msra.mxu1 %v1007_v27  ;;  %866 = vmatprep.subr.bf16.mxu0 %v1008_v28 }
  0x1e   :  { %930 = vmatprep.subr.bf16.mxu1 %v1009_v29 }
  0x20   :  { %867 = vmatpush3.bf16.msra.mxu0 %v1010_v30 }
  0x21   :  { %931 = vmatpush3.bf16.msra.mxu1 %v1011_v31 }
  0x23   :  { %532 = vmatmul.mubr.bf16.vlgmr.msra.gmra.mxu0 %v1012_v32 }
  0x24   :  { %629 = vmatmul.mubr.bf16.vlgmr.msra.gmra.mxu1 %v1015_v34  ;;  %539 = vmatprep.mubr.bf16.mxu0 %v1018_v36 }
  0x25   :  { %636 = vmatprep.mubr.bf16.mxu1 %v1020_v37 }
  0x2b   :  { %540 = vmatmul.mubr.bf16.gmra.mxu0 %v1022_v38 }
  0x2c   :  { %637 = vmatmul.mubr.bf16.gmra.mxu1 %v1023_v39  ;;  %547 = vmatprep.mubr.bf16.mxu0 %v1024_v40 }
  0x2d   :  { %644 = vmatprep.mubr.bf16.mxu1 %v1026_v41 }
  0x33   :  { %548 = vmatmul.mubr.bf16.gmra.mxu0 %v1028_v42 }
  0x34   :  { %645 = vmatmul.mubr.bf16.gmra.mxu1 %v1029_v43  ;;  %555 = vmatprep.mubr.bf16.mxu0 %v1030_v44 }
  0x35   :  { %652 = vmatprep.mubr.bf16.mxu1 %v1032_v45 }
  0x3b   :  { %556 = vmatmul.mubr.bf16.gmra.mxu0 %v1034_v46 }
  0x3c   :  { %653 = vmatmul.mubr.bf16.gmra.mxu1 %v1035_v47  ;;  %563 = vmatprep.mubr.bf16.mxu0 %v1036_v48 }
  0x3d   :  { %660 = vmatprep.mubr.bf16.mxu1 %v1038_v49 }
  0x43   :  { %564 = vmatmul.mubr.bf16.gmra.mxu0 %v1040_v50 }
  0x44   :  { %661 = vmatmul.mubr.bf16.gmra.mxu1 %v1041_v51  ;;  %571 = vmatprep.mubr.bf16.mxu0 %v1042_v52 }
  0x45   :  { %668 = vmatprep.mubr.bf16.mxu1 %v1044_v53 }
  0x4b   :  { %572 = vmatmul.mubr.bf16.gmra.mxu0 %v1046_v54 }
  0x4c   :  { %669 = vmatmul.mubr.bf16.gmra.mxu1 %v1047_v55  ;;  %579 = vmatprep.mubr.bf16.mxu0 %v1048_v56 }
  0x4d   :  { %676 = vmatprep.mubr.bf16.mxu1 %v1050_v57 }
  0x53   :  { %580 = vmatmul.mubr.bf16.gmra.mxu0 %v1052_v58 }
  0x54   :  { %677 = vmatmul.mubr.bf16.gmra.mxu1 %v1053_v59  ;;  %587 = vmatprep.mubr.bf16.mxu0 %v1054_v60 }
  0x55   :  { %684 = vmatprep.mubr.bf16.mxu1 %v1056_v61 }
  0x5b   :  { %588 = vmatmul.mubr.bf16.gmra.mxu0 %v1058_v62 }
  0x5c   :  { %685 = vmatmul.mubr.bf16.gmra.mxu1 %v1059_v63 }
  0xe3   :  { %v868_v0 = vpop.f32.mrf.mxu0 }
  0xe4   :  { %v932_v1 = vpop.f32.mrf.mxu1 }
  0xe5   :  { %v869_v2 = vpop.f32.mrf.mxu0 }
  0xe6   :  { %v870_v3 = vadd.f32 %v869_v2, %v868_v0  ;;  %v933_v4 = vpop.f32.mrf.mxu1 }
  0xe7   :  { %v934_v5 = vadd.f32 %v933_v4, %v932_v1  ;;  %v871_v6 = vpop.f32.mrf.mxu0 }
  0xe8   :  { %v935_v8 = vpop.f32.mrf.mxu1 }
  0xe9   :  { %v631_v9 = vadd.f32 %v934_v5, %v870_v3  ;;  %v872_v10 = vpop.f32.mrf.mxu0 }
  0xea   :  { %v873_v11 = vadd.f32 %v872_v10, %v871_v6  ;;  %v936_v12 = vpop.f32.mrf.mxu1 }
  0xeb   :  { %v751_v13 = vadd.f32 %v1275_v7, %v631_v9  ;;  %v937_v14 = vadd.f32 %v936_v12, %v935_v8  ;;  %v874_v15 = vpop.f32.mrf.mxu0 }
  0xec   :  { %v938_v16 = vpop.f32.mrf.mxu1 }
  0xed   :  { %767 = vst [vmem:[%s1344_s3] sm:$0xff] %v751_v13  ;;  %v634_v17 = vadd.f32 %v937_v14, %v873_v11  ;;  %v875_v18 = vpop.f32.mrf.mxu0 }
  0xee   :  { %v876_v19 = vadd.f32 %v875_v18, %v874_v15  ;;  %v939_v20 = vpop.f32.mrf.mxu1 }
  0xef   :  { %v752_v21 = vadd.f32 %v1275_v7, %v634_v17  ;;  %v940_v22 = vadd.f32 %v939_v20, %v938_v16  ;;  %v877_v23 = vpop.f32.mrf.mxu0 }
  0xf0   :  { %v941_v24 = vpop.f32.mrf.mxu1 }
  0xf1   :  { %768 = vst [vmem:[%s1344_s3 + $0x8] sm:$0xff] %v752_v21  ;;  %v639_v25 = vadd.f32 %v940_v22, %v876_v19  ;;  %v878_v26 = vpop.f32.mrf.mxu0 }
  0xf2   :  { %v879_v27 = vadd.f32 %v878_v26, %v877_v23  ;;  %v942_v28 = vpop.f32.mrf.mxu1 }
  0xf3   :  { %v753_v29 = vadd.f32 %v1275_v7, %v639_v25  ;;  %v943_v30 = vadd.f32 %v942_v28, %v941_v24  ;;  %v880_v31 = vpop.f32.mrf.mxu0 }
  0xf4   :  { %v944_v32 = vpop.f32.mrf.mxu1 }
  0xf5   :  { %769 = vst [vmem:[%s1344_s3 + $0x10] sm:$0xff] %v753_v29  ;;  %v642_v33 = vadd.f32 %v943_v30, %v879_v27  ;;  %v881_v34 = vpop.f32.mrf.mxu0 }
  0xf6   :  { %v882_v35 = vadd.f32 %v881_v34, %v880_v31  ;;  %v945_v36 = vpop.f32.mrf.mxu1 }
  0xf7   :  { %v754_v37 = vadd.f32 %v1275_v7, %v642_v33  ;;  %v946_v38 = vadd.f32 %v945_v36, %v944_v32  ;;  %v883_v39 = vpop.f32.mrf.mxu0 }
  0xf8   :  { %v947_v40 = vpop.f32.mrf.mxu1 }
  0xf9   :  { %770 = vst [vmem:[%s1344_s3 + $0x18] sm:$0xff] %v754_v37  ;;  %v647_v41 = vadd.f32 %v946_v38, %v882_v35  ;;  %v884_v42 = vpop.f32.mrf.mxu0 }
  0xfa   :  { %v885_v43 = vadd.f32 %v884_v42, %v883_v39  ;;  %v948_v44 = vpop.f32.mrf.mxu1 }
  0xfb   :  { %v755_v45 = vadd.f32 %v1275_v7, %v647_v41  ;;  %v949_v46 = vadd.f32 %v948_v44, %v947_v40  ;;  %v886_v47 = vpop.f32.mrf.mxu0 }
  0xfc   :  { %v950_v48 = vpop.f32.mrf.mxu1 }
  0xfd   :  { %771 = vst [vmem:[%s1344_s3 + $0x20] sm:$0xff] %v755_v45  ;;  %v650_v49 = vadd.f32 %v949_v46, %v885_v43  ;;  %v887_v50 = vpop.f32.mrf.mxu0 }
  0xfe   :  { %v888_v51 = vadd.f32 %v887_v50, %v886_v47  ;;  %v951_v52 = vpop.f32.mrf.mxu1 }
  0xff   :  { %v756_v53 = vadd.f32 %v1275_v7, %v650_v49  ;;  %v952_v54 = vadd.f32 %v951_v52, %v950_v48  ;;  %v889_v55 = vpop.f32.mrf.mxu0 }
 0x100   :  { %v953_v56 = vpop.f32.mrf.mxu1 }
 0x101   :  { %772 = vst [vmem:[%s1344_s3 + $0x28] sm:$0xff] %v756_v53  ;;  %v655_v57 = vadd.f32 %v952_v54, %v888_v51  ;;  %v890_v58 = vpop.f32.mrf.mxu0 }
 0x102   :  { %v891_v59 = vadd.f32 %v890_v58, %v889_v55  ;;  %v954_v60 = vpop.f32.mrf.mxu1 }
 0x103   :  { %v757_v61 = vadd.f32 %v1275_v7, %v655_v57  ;;  %v955_v62 = vadd.f32 %v954_v60, %v953_v56  ;;  %v892_v63 = vpop.f32.mrf.mxu0 }
 0x104   :  { %v956_v0 = vpop.f32.mrf.mxu1 }
 0x105   :  { %773 = vst [vmem:[%s1344_s3 + $0x30] sm:$0xff] %v757_v61  ;;  %v658_v1 = vadd.f32 %v955_v62, %v891_v59  ;;  %v893_v2 = vpop.f32.mrf.mxu0 }
 0x106   :  { %v894_v3 = vadd.f32 %v893_v2, %v892_v63  ;;  %v957_v4 = vpop.f32.mrf.mxu1 }
 0x107   :  { %v758_v5 = vadd.f32 %v1275_v7, %v658_v1  ;;  %v958_v6 = vadd.f32 %v957_v4, %v956_v0  ;;  %v895_v8 = vpop.f32.mrf.mxu0 }
 0x108   :  { %v959_v9 = vpop.f32.mrf.mxu1 }
 0x109   :  { %774 = vst [vmem:[%s1344_s3 + $0x38] sm:$0xff] %v758_v5  ;;  %v663_v10 = vadd.f32 %v958_v6, %v894_v3  ;;  %v896_v11 = vpop.f32.mrf.mxu0 }
 0x10a   :  { %v897_v12 = vadd.f32 %v896_v11, %v895_v8  ;;  %v960_v13 = vpop.f32.mrf.mxu1 }
 0x10b   :  { %v759_v14 = vadd.f32 %v1275_v7, %v663_v10  ;;  %v961_v15 = vadd.f32 %v960_v13, %v959_v9  ;;  %v898_v16 = vpop.f32.mrf.mxu0 }
 0x10c   :  { %v962_v17 = vpop.f32.mrf.mxu1 }
 0x10d   :  { %775 = vst [vmem:[%s1344_s3 + $0x40] sm:$0xff] %v759_v14  ;;  %v666_v18 = vadd.f32 %v961_v15, %v897_v12  ;;  %v899_v19 = vpop.f32.mrf.mxu0 }
 0x10e   :  { %v900_v20 = vadd.f32 %v899_v19, %v898_v16  ;;  %v963_v21 = vpop.f32.mrf.mxu1 }
 0x10f   :  { %v760_v22 = vadd.f32 %v1275_v7, %v666_v18  ;;  %v964_v23 = vadd.f32 %v963_v21, %v962_v17  ;;  %v901_v24 = vpop.f32.mrf.mxu0 }
 0x110   :  { %v965_v25 = vpop.f32.mrf.mxu1 }
 0x111   :  { %776 = vst [vmem:[%s1344_s3 + $0x48] sm:$0xff] %v760_v22  ;;  %v671_v26 = vadd.f32 %v964_v23, %v900_v20  ;;  %v902_v27 = vpop.f32.mrf.mxu0 }
 0x112   :  { %v903_v28 = vadd.f32 %v902_v27, %v901_v24  ;;  %v966_v29 = vpop.f32.mrf.mxu1 }
 0x113   :  { %v761_v30 = vadd.f32 %v1275_v7, %v671_v26  ;;  %v967_v31 = vadd.f32 %v966_v29, %v965_v25  ;;  %v904_v32 = vpop.f32.mrf.mxu0 }
 0x114   :  { %v968_v33 = vpop.f32.mrf.mxu1 }
 0x115   :  { %777 = vst [vmem:[%s1344_s3 + $0x50] sm:$0xff] %v761_v30  ;;  %v674_v34 = vadd.f32 %v967_v31, %v903_v28  ;;  %v905_v35 = vpop.f32.mrf.mxu0 }
 0x116   :  { %v906_v36 = vadd.f32 %v905_v35, %v904_v32  ;;  %v969_v37 = vpop.f32.mrf.mxu1 }
 0x117   :  { %v762_v38 = vadd.f32 %v1275_v7, %v674_v34  ;;  %v970_v39 = vadd.f32 %v969_v37, %v968_v33  ;;  %v907_v40 = vpop.f32.mrf.mxu0 }
 0x118   :  { %v971_v41 = vpop.f32.mrf.mxu1 }
 0x119   :  { %778 = vst [vmem:[%s1344_s3 + $0x58] sm:$0xff] %v762_v38  ;;  %v679_v42 = vadd.f32 %v970_v39, %v906_v36  ;;  %v908_v43 = vpop.f32.mrf.mxu0 }
 0x11a   :  { %v909_v44 = vadd.f32 %v908_v43, %v907_v40  ;;  %v972_v45 = vpop.f32.mrf.mxu1 }
 0x11b   :  { %v763_v46 = vadd.f32 %v1275_v7, %v679_v42  ;;  %v973_v47 = vadd.f32 %v972_v45, %v971_v41  ;;  %v910_v48 = vpop.f32.mrf.mxu0 }
 0x11c   :  { %v974_v49 = vpop.f32.mrf.mxu1 }
 0x11d   :  { %779 = vst [vmem:[%s1344_s3 + $0x60] sm:$0xff] %v763_v46  ;;  %v682_v50 = vadd.f32 %v973_v47, %v909_v44  ;;  %v911_v51 = vpop.f32.mrf.mxu0 }
 0x11e   :  { %v912_v52 = vadd.f32 %v911_v51, %v910_v48  ;;  %v975_v53 = vpop.f32.mrf.mxu1 }
 0x11f   :  { %v764_v54 = vadd.f32 %v1275_v7, %v682_v50  ;;  %v976_v55 = vadd.f32 %v975_v53, %v974_v49  ;;  %v913_v56 = vpop.f32.mrf.mxu0 }
 0x120   :  { %v977_v57 = vpop.f32.mrf.mxu1 }
 0x121   :  { %780 = vst [vmem:[%s1344_s3 + $0x68] sm:$0xff] %v764_v54  ;;  %v687_v58 = vadd.f32 %v976_v55, %v912_v52  ;;  %v914_v59 = vpop.f32.mrf.mxu0 }
 0x122   :  { %v915_v60 = vadd.f32 %v914_v59, %v913_v56  ;;  %v978_v61 = vpop.f32.mrf.mxu1 }
 0x123   :  { %v765_v62 = vadd.f32 %v1275_v7, %v687_v58  ;;  %v979_v63 = vadd.f32 %v978_v61, %v977_v57 }
 0x125   :  { %781 = vst [vmem:[%s1344_s3 + $0x70] sm:$0xff] %v765_v62  ;;  %v690_v0 = vadd.f32 %v979_v63, %v915_v60 }
 0x127   :  { %v766_v1 = vadd.f32 %v1275_v7, %v690_v0 }
 0x129   :  { %782 = vst [vmem:[%s1344_s3 + $0x78] sm:$0xff] %v766_v1 }

// kernel: wgan_gp_forward.13
= control target key start
LH: loop header
LB: loop body
LE: loop exit
PB: predicated region body
PF: predicated region fallthrough
CT: control target
= control target key end

     0   :  { %12 = vsyncpa [#allocation4], 0  ;;  %s730_s0 = inlined_call_operand.vmem [shape: f32[2,1], index: 0, kind: input, shape index: {}]   ;;  %s731_s1 = inlined_call_operand.vmem [shape: f32[2,1], index: 1, kind: input, shape index: {}]   ;;  %s732_s2 = inlined_call_operand.vmem [shape: f32[2,1024], index: 2, kind: input, shape index: {}]   ;;  %s733_s3 = inlined_call_operand.hbm [shape: f32[1,1], index: 3, kind: output, shape index: {0}]   ;;  %s734_s4 = inlined_call_operand.hbm [shape: f32[1,1], index: 4, kind: output, shape index: {1}]   ;;  %s735_s5 = inlined_call_operand.hbm [shape: f32[1,1], index: 5, kind: output, shape index: {2}]   ;;  %s736_s6 = inlined_call_operand.hbm [shape: f32[2,1], index: 6, kind: output, shape index: {3}]  }
   0x1   :  { %13 = vsyncpa [#allocation6], 0 }
   0x2   :  { %14 = vsyncpa [#allocation9], 0  ;;  %s656_s21 = smov 0  }
   0x3 LB: > { %s662_s22 = sadd.s32 4294967295, %s613_s21   ;;  %p443_p0 = scmp.ge.s32.totalorder %s613_s21, 1  ;;  %s613_s21 = sphi %s656_s21, %s20_s21  }
   0x4   : > { %p203_p1 = scmp.lt.s32.totalorder %s613_s21, 3 }
   0x6   : > { %p204_p2 = pnand %p443_p0, %p203_p1 }
   0x7   : > { %s444_s23 = sshll.u32 (!%p204_p2), %s662_s22, 2  ;;  %p446_p4 = scmp.ne.s32.totalorder (!%p204_p2), %s662_s22, 0 }
   0x8   : > { %207 = sbr.rel (%p204_p2) target bundleno = 284 (0x11c), region = 32  ;;  %p229_p3 = scmp.lt.s32.totalorder (!%p204_p2), %s444_s23, 7 }
   0xd   : > { %s738_s23 = smov (!%p229_p3, %s444_s23), 7  ;;  %237 = sbr.rel (%p446_p4) target bundleno = 20 (0x14), region = 36 }
   0xe   : > { %s445_s24 = sshll.u32 %s738_s23, 1 }
   0xf   : > { %s232_s27 = scalar_lea.vmem %s732_s2, %s445_s24 }
  0x12   : > { %vm238_vm0 = vcmask 1024   ;;  %v615_v0 = vmov 0.0  }
  0x13   : > { %239 = vst.msk [vmem:[#allocation2] sm:$0x3] %vm238_vm0, %v615_v0 }
  0x14 PF: > { %v240_v1 = vld [vmem:[%s232_s27] sm:$0xff]  ;;  %v248_v2 = vlaneseq  ;;  %v616_v4 = vmov 1983009808   ;;  %vm265_vm1 = vcmask 1041408   ;;  %vm276_vm2 = vcmask 1024   ;;  %p447_p5 = scmp.ne.s32.totalorder %s662_s22, 1 }
  0x15   : > { %v242_v3 = vmul.f32 %v240_v1, %v240_v1  ;;  %v246_v5 = vunpack.c.l.s4 %v616_v4 }
  0x16   : > { %v249_v6 = vshrl.u32 %v248_v2, 7 }
  0x17   : > { %v244_v7 = vcombine.high %v242_v3, %v242_v3  ;;  %v247_v8 = vunpack.c.0.s8 %v246_v5 }
  0x19   : > { %v250_v9 = vsub.s32 %v247_v8, %v249_v6 }
  0x1a   : > { %v241_v21 = vld [vmem:[#allocation2] sm:$0x3] }
  0x1b   : > { %v251_v10 = vrot.slane %v242_v3, %v250_v9  ;;  %v258_v11 = vrot.slane %v244_v7, %v250_v9 }
  0x1d   : > { %v259_v12 = vcombine.high %v251_v10, %v251_v10  ;;  %v260_v13 = vcombine.high %v258_v11, %v258_v11  ;;  %v266_v14 = vsel %vm265_vm1, %v251_v10, 0.0  ;;  %v269_v16 = vsel %vm265_vm1, %v258_v11, 0.0 }
  0x1f   : > { %v267_v15 = vsel %vm265_vm1, %v259_v12, 0.0  ;;  %v271_v18 = vsel %vm265_vm1, %v260_v13, 0.0 }
  0x20   : > { %v268_v17 = vadd.f32 %v267_v15, %v266_v14 }
  0x22   : > { %v270_v19 = vadd.f32 %v269_v16, %v268_v17 }
  0x24   : > { %v272_v20 = vadd.f32 %v271_v18, %v270_v19 }
  0x26   : > { %273 = vadd.xlane.f32.xlu0 %v272_v20 }
  0xae   : > { %281 = sbr.rel (%p447_p5) target bundleno = 230 (0xe6), region = 40 }
  0xaf   : > { %v274_v22 = vpop.xlane.xlu0 %273 }
  0xb0   : > { %v275_v23 = vadd.f32 %v274_v22, %v241_v21 }
  0xb2   : > { %277 = vst.msk [vmem:[#allocation2] sm:$0x3] %vm276_vm2, %v275_v23 }
  0xb3   : > { %v301_v25 = vld [vmem:[%s731_s1] sm:$0x3]  ;;  %vm321_vm3 = vcmask 0  }
  0xb4   : > { %v302_v27 = vsel %vm276_vm2, %v301_v25, 0.0  ;;  %v292_v28 = vld [vmem:[%s730_s0] sm:$0x3] }
  0xb5   : > { %v303_v29 = vrot.slane %v302_v27, 4  ;;  %v293_v30 = vsel %vm276_vm2, %v292_v28, 0.0 }
  0xb6   : > { %v294_v33 = vrot.slane %v293_v30, 4 }
  0xb7   : > { %v304_v31 = vadd.f32 %v303_v29, %v302_v27 }
  0xb8   : > { %v295_v36 = vadd.f32 %v294_v33, %v293_v30 }
  0xb9   : > { %v282_v24 = vld [vmem:[#allocation2] sm:$0x3]  ;;  %v305_v32 = vrot.slane %v304_v31, 2 }
  0xba   : > { %v283_v26 = vadd.f32 1e-12, %v282_v24  ;;  %v296_v39 = vrot.slane %v295_v36, 2 }
  0xbb   : > { %v306_v34 = vadd.f32 %v305_v32, %v304_v31 }
  0xbc   : > { %497 = vrsqrt.f32 %v283_v26  ;;  %vm286_vm4 = vcmp.eq.f32.partialorder %v283_v26, inf  ;;  %v289_v41 = vand.u32 2147483648, %v283_v26  ;;  %vm288_vm5 = vcmp.eq.f32.partialorder %v283_v26, 0.0 }
  0xbd   : > { %v307_v35 = vrot.slane %v306_v34, 1  ;;  %v297_v44 = vadd.f32 %v296_v39, %v295_v36 }
  0xbf   : > { %v308_v37 = vadd.f32 %v307_v35, %v306_v34  ;;  %v298_v48 = vrot.slane %v297_v44, 1 }
  0xc1   : > { %v309_v38 = vmul.f32 0.5, %v308_v37  ;;  %v299_v52 = vadd.f32 %v298_v48, %v297_v44 }
  0xc3   : > { %v320_v42 = vsub.f32 0.0, %v309_v38  ;;  %v300_v55 = vmul.f32 0.5, %v299_v52 }
  0xc5   : > { %322 = vst.msk [vmem:[#allocation3] sm:$0x1] %vm321_vm3, %v320_v42  ;;  %v324_v58 = vsub.f32 0.0, %v300_v55 }
  0xc7   : > { %v325_v61 = vadd.f32 %v324_v58, %v309_v38 }
  0xc9   : > { %v498_v40 = vpop.eup %497 }
  0xca   : > { %v285_v43 = vmul.f32 %v498_v40, %v283_v26 }
  0xcc   : > { %v287_v45 = vsel %vm286_vm4, %v283_v26, %v285_v43 }
  0xcd   : > { %v290_v46 = vsel %vm288_vm5, %v289_v41, %v287_v45 }
  0xce   : > { %291 = vst.msk [vmem:[#allocation8] sm:$0x3] %vm276_vm2, %v290_v46  ;;  %v448_v47 = vadd.f32 -1.0, %v290_v46 }
  0xd0   : > { %v311_v49 = vmul.f32 %v448_v47, %v448_v47 }
  0xd2   : > { %v312_v50 = vsel %vm276_vm2, %v311_v49, 0.0 }
  0xd3   : > { %v313_v51 = vrot.slane %v312_v50, 4 }
  0xd5   : > { %v314_v53 = vadd.f32 %v313_v51, %v312_v50 }
  0xd7   : > { %v315_v54 = vrot.slane %v314_v53, 2 }
  0xd9   : > { %v316_v56 = vadd.f32 %v315_v54, %v314_v53 }
  0xdb   : > { %v317_v57 = vrot.slane %v316_v56, 1 }
  0xdd   : > { %v318_v59 = vadd.f32 %v317_v57, %v316_v56 }
  0xdf   : > { %v319_v60 = vmul.f32 0.5, %v318_v59 }
  0xe1   : > { %323 = vst.msk [vmem:[#allocation7] sm:$0x1] %vm321_vm3, %v319_v60  ;;  %v326_v62 = vmul.f32 10.0, %v319_v60 }
  0xe3   : > { %v327_v63 = vadd.f32 %v326_v62, %v325_v61 }
  0xe5   : > { %328 = vst.msk [vmem:[#allocation5] sm:$0x1] %vm321_vm3, %v327_v63 }
  0xe6 PF: > { %p475_p6 = scmp.eq.s32.totalorder %s662_s22, 1  ;;  %s617_s8 = smov [#allocation5]  }
  0xe7   : > { %s347_s9 = sshll.u32 %s617_s8, 4  ;;  %s618_s10 = smov [#allocation3]   ;;  %s348_s9 = int_to_ptr.vmem [resolvable:$true] %s347_s9 }
  0xe8   : > { %s336_s11 = sshll.u32 %s618_s10, 4  ;;  %s499_s12 = scalar_lea.vmem %s348_s9, 16  ;;  %s337_s11 = int_to_ptr.vmem [resolvable:$true] %s336_s11 }
  0xe9   : > { %p500_p7 = scmp.ne.s32.totalorder %s348_s9, %s499_s12  ;;  %s505_s13 = scalar_lea.vmem %s348_s9, 32 }
  0xea   : > { %p506_p10 = scmp.lt.s32.totalorder %s348_s9, %s348_s9  ;;  %p507_p11 = scmp.lt.s32.totalorder %s505_s13, %s499_s12 }
  0xeb   : > { %p501_p8 = pnand %p500_p7, %p475_p6 }
  0xec   : > { %p508_p12 = por %p507_p11, %p506_p10 }
  0xed   : > { %p502_p9 = pneg %p501_p8 }
  0xef   : > { %p509_p13 = pnand %p508_p12, %p502_p9 }
  0xf1   : > { %512 = shalt.err (!%p509_p13)
}
  0xf2   : > { %462 = dma.vmem_to_hbm [thread:$0]  (%p475_p6), %s348_s9, 16, %s734_s4, [#allocation6]  }
  0xf3   : > { %s523_s16 = scalar_lea.vmem %s337_s11, 16  ;;  %s529_s17 = scalar_lea.vmem %s337_s11, 32 }
  0xf4   : > { %p524_p0 = scmp.ne.s32.totalorder %s337_s11, %s523_s16  ;;  %p530_p3 = scmp.lt.s32.totalorder %s337_s11, %s337_s11 }
  0xf5   : > { %p531_p4 = scmp.lt.s32.totalorder %s529_s17, %s523_s16 }
  0xf6   : > { %p525_p1 = pnand %p524_p0, %p475_p6 }
  0xf7   : > { %p532_p5 = por %p531_p4, %p530_p3 }
  0xf8   : > { %p526_p2 = pneg %p525_p1 }
  0xfa   : > { %p533_p7 = pnand %p532_p5, %p526_p2 }
  0xfc   : > { %536 = shalt.err (!%p533_p7)
}
  0xfd   : > { %460 = dma.vmem_to_hbm [thread:$0]  (%p475_p6), %s337_s11, 16, %s733_s3, [#allocation4]  }
  0xfe   : > { %s619_s20 = smov [#allocation7]   ;;  %s620_s24 = smov [#allocation8]  }
  0xff   : > { %s358_s23 = sshll.u32 %s619_s20, 4  ;;  %s369_s25 = sshll.u32 %s620_s24, 4  ;;  %s359_s23 = int_to_ptr.vmem [resolvable:$true] %s358_s23  ;;  %s370_s25 = int_to_ptr.vmem [resolvable:$true] %s369_s25 }
 0x100   : > { %s547_s26 = scalar_lea.vmem %s359_s23, 16  ;;  %s553_s27 = scalar_lea.vmem %s359_s23, 32 }
 0x101   : > { %p548_p8 = scmp.ne.s32.totalorder %s359_s23, %s547_s26  ;;  %p554_p11 = scmp.lt.s32.totalorder %s359_s23, %s359_s23 }
 0x102   : > { %p555_p12 = scmp.lt.s32.totalorder %s553_s27, %s547_s26 }
 0x103   : > { %p549_p9 = pnand %p548_p8, %p475_p6 }
 0x104   : > { %p556_p13 = por %p555_p12, %p554_p11 }
 0x105   : > { %p550_p10 = pneg %p549_p9 }
 0x107   : > { %p557_p0 = pnand %p556_p13, %p550_p10 }
 0x109   : > { %560 = shalt.err (!%p557_p0)
}
 0x10a   : > { %464 = dma.vmem_to_hbm [thread:$0]  (%p475_p6), %s359_s23, 16, %s735_s5, [#allocation6]  }
 0x10b   : > { %s571_s30 = scalar_lea.vmem %s370_s25, 32  ;;  %p578_p4 = scmp.lt.s32.totalorder %s370_s25, %s370_s25 }
 0x10c   : > { %p572_p1 = scmp.ne.s32.totalorder %s370_s25, %s571_s30  ;;  %p579_p5 = scmp.lt.s32.totalorder %s571_s30, %s571_s30 }
 0x10e   : > { %p573_p2 = pnand %p572_p1, %p475_p6  ;;  %p580_p7 = por %p579_p5, %p578_p4 }
 0x110   : > { %p574_p3 = pneg %p573_p2 }
 0x112   : > { %p581_p8 = pnand %p580_p7, %p574_p3 }
 0x114   : > { %584 = shalt.err (!%p581_p8)
}
 0x115   : > { %466 = dma.vmem_to_hbm [thread:$0]  (%p475_p6), %s370_s25, 32, %s736_s6, [#allocation9]  }
 0x116   : > { %600 = dma.done.wait (%p475_p6), [#allocation4], 16  }
 0x117   : > { %602 = vsyncadd (%p475_p6), [#allocation4], 4294967280 }
 0x118   : > { %604 = dma.done.wait (%p475_p6), [#allocation6], 32  }
 0x119   : > { %606 = vsyncadd (%p475_p6), [#allocation6], 4294967264 }
 0x11a   : > { %608 = dma.done.wait (%p475_p6), [#allocation9], 32  }
 0x11b   : > { %610 = vsyncadd (%p475_p6), [#allocation9], 4294967264 }
 0x11c PF: > { %s20_s21 = sadd.s32 1, %s613_s21  }
 0x11d   : > { %p17_p9 = scmp.ge.s32.totalorder %s20_s21, 4  }
 0x11f   :  { %19 = sbr.rel (!%p17_p9) target bundleno = 3 (0x3), region = 91 }
 0x124   :  { %394 = vsyncpa [#allocation4], 1 }
 0x125   :  { %396 = vsyncpa [#allocation4 + $0x1], 1 }
 0x126   :  { %397 = vsyncpa [#allocation6], 1 }
 0x127   :  { %398 = vsyncpa [#allocation9], 1 }

</bundles_post_ra>
